<compile_context>
chip_gen: v5e
topology: v5e:2x2
jax: 0.10.0
libtpu: 0.0.40
codegen_flags: <defaults>
</compile_context>

<pallas_src>
import functools
import math

import jax
import jax.numpy as jnp
from jax.experimental import pallas as pl
from jax.experimental.pallas import tpu as pltpu

EPS = 1e-6                       # LayerNorm eps (annotated-transformer default)
VMEM_LIMIT = 48 * 1024 * 1024    # fits v7x's 64 MiB physical VMEM with headroom


# ----------------------------- in-kernel helpers -----------------------------

def _ln_f32(x, g, b):
    """Annotated-transformer LayerNorm (unbiased std, eps added to std).
    Statistics always in f32; exact divide (no approx reciprocal)."""
    x = x.astype(jnp.float32)
    d = x.shape[-1]
    mean = jnp.mean(x, axis=-1, keepdims=True)
    var = jnp.sum((x - mean) ** 2, axis=-1, keepdims=True) / (d - 1)
    return (g.astype(jnp.float32) * (x - mean) / (jnp.sqrt(var) + EPS)
            + b.astype(jnp.float32))


def _mha_heads(q, kh, vh, mask_f32, num_heads):
    """Heads-batched attention.
    q: [tq, D] f32 (1/sqrt(dk) already folded into Wq);
    kh/vh: [H, Sk, dk] compute dtype; mask_f32: [mq, Sk] with mq in {1, tq}.
    Returns a lane-dense [tq, D] f32 slab."""
    tq, d = q.shape
    dk = d // num_heads
    cdt = kh.dtype
    qh = jnp.swapaxes(q.reshape(tq, num_heads, dk), 0, 1).astype(cdt)   # [H,tq,dk]
    s = jnp.einsum("hqd,hkd->hqk", qh, kh,
                   preferred_element_type=jnp.float32)                  # [H,tq,Sk]
    s = jnp.where(mask_f32[None] == 0.0, -1e9, s)                       # f32 mask bias
    s = s - jnp.max(s, axis=-1, keepdims=True)
    p = jnp.exp(s)
    p = p * pl.reciprocal(jnp.sum(p, axis=-1, keepdims=True), approx=True)  # EUP
    o = jnp.einsum("hqk,hkd->hqd", p.astype(cdt), vh,
                   preferred_element_type=jnp.float32)                  # [H,tq,dk]
    return jnp.swapaxes(o, 0, 1).reshape(tq, d)                         # [tq, D]


# ----------------------------- fused Pallas kernels ---------------------------

def self_attn_sublayer_kernel(xq_ref, xf_ref, g_ref, b_ref, wq_ref, bq_ref,
                              wkv_ref, bkv_ref, wo_ref, bo_ref, m_ref, o_ref,
                              k_scr, v_scr, *, num_heads):
    """x + MHA(LN(x), LN(x), LN(x), tgt_mask), one query tile per grid step."""
    qi = pl.program_id(1)
    d = xq_ref.shape[-1]
    dk = d // num_heads
    cdt = wq_ref.dtype

    # Project K/V for the whole target sequence once per batch row; scratch
    # persists across the query-tile axis (marked "arbitrary").
    @pl.when(qi == 0)
    def _():
        st = xf_ref.shape[1]
        xn_full = _ln_f32(xf_ref[0], g_ref[...], b_ref[...]).astype(cdt)
        kv = (jnp.dot(xn_full, wkv_ref[...], preferred_element_type=jnp.float32)
              + bkv_ref[...])                                           # [St, 2D] f32
        k_scr[...] = jnp.swapaxes(kv[:, :d].reshape(st, num_heads, dk), 0, 1).astype(cdt)
        v_scr[...] = jnp.swapaxes(kv[:, d:].reshape(st, num_heads, dk), 0, 1).astype(cdt)

    x_tile = xq_ref[0].astype(jnp.float32)                              # [tq, D]
    xn = _ln_f32(xq_ref[0], g_ref[...], b_ref[...]).astype(cdt)
    q = (jnp.dot(xn, wq_ref[...], preferred_element_type=jnp.float32)
         + bq_ref[...])                                                 # scale folded in
    attn = _mha_heads(q, k_scr[...], v_scr[...],
                      m_ref[0].astype(jnp.float32), num_heads)          # [tq, D] f32
    out = (jnp.dot(attn.astype(cdt), wo_ref[...], preferred_element_type=jnp.float32)
           + bo_ref[...] + x_tile)
    o_ref[0] = out.astype(o_ref.dtype)


def cross_attn_sublayer_kernel(x_ref, mem_ref, g_ref, b_ref, wq_ref, bq_ref,
                               wkv_ref, bkv_ref, wo_ref, bo_ref, m_ref, o_ref,
                               k_scr, v_scr, *, num_heads):
    """x + MHA(LN(x), memory, memory, src_mask), one query tile per grid step."""
    qi = pl.program_id(1)
    d = x_ref.shape[-1]
    dk = d // num_heads
    cdt = wq_ref.dtype

    @pl.when(qi == 0)
    def _():
        ss = mem_ref.shape[1]
        mem = mem_ref[0].astype(cdt)
        kv = (jnp.dot(mem, wkv_ref[...], preferred_element_type=jnp.float32)
              + bkv_ref[...])                                           # [Ss, 2D] f32
        k_scr[...] = jnp.swapaxes(kv[:, :d].reshape(ss, num_heads, dk), 0, 1).astype(cdt)
        v_scr[...] = jnp.swapaxes(kv[:, d:].reshape(ss, num_heads, dk), 0, 1).astype(cdt)

    x_tile = x_ref[0].astype(jnp.float32)                               # [tq, D]
    xn = _ln_f32(x_ref[0], g_ref[...], b_ref[...]).astype(cdt)
    q = (jnp.dot(xn, wq_ref[...], preferred_element_type=jnp.float32) + bq_ref[...])
    attn = _mha_heads(q, k_scr[...], v_scr[...],
                      m_ref[0].astype(jnp.float32), num_heads)
    out = (jnp.dot(attn.astype(cdt), wo_ref[...], preferred_element_type=jnp.float32)
           + bo_ref[...] + x_tile)
    o_ref[0] = out.astype(o_ref.dtype)


def ln_ffn_residual_kernel(x_ref, g_ref, b_ref, w1_ref, b1_ref, w2_ref, b2_ref,
                           o_ref):
    """x + W2(relu(W1(LN(x)))) on a row tile; f32 stats + accumulation."""
    cdt = w1_ref.dtype
    x32 = x_ref[...].astype(jnp.float32)
    xn = _ln_f32(x_ref[...], g_ref[...], b_ref[...]).astype(cdt)
    h = jnp.maximum(
        jnp.dot(xn, w1_ref[...], preferred_element_type=jnp.float32) + b1_ref[...],
        0.0)
    # TODO(synk): for production d_ff (e.g. 4096) add an inner K-tiled loop with a
    # VMEM f32 accumulator so the W1/W2 tiles fit v7x's 64 MiB VMEM budget.
    o_ref[...] = (jnp.dot(h.astype(cdt), w2_ref[...],
                          preferred_element_type=jnp.float32)
                  + b2_ref[...] + x32).astype(o_ref.dtype)


def layernorm_kernel(x_ref, g_ref, b_ref, o_ref):
    o_ref[...] = _ln_f32(x_ref[...], g_ref[...], b_ref[...]).astype(o_ref.dtype)


# --------------------------- pallas_call wrappers ----------------------------

def _seq_tile(s):
    """Query-tile size: multiple of 8 that divides S, else the full S."""
    for t in (256, 128):
        if s % t == 0:
            return t
    return s


def _row_tile(m):
    """Largest row tile (multiple of 8/128) that evenly divides m, else full m."""
    for bm in (512, 256, 128):
        if m % bm == 0:
            return bm
    return m


def _mask_spec(mask_shape, batch, tq, s_tgt):
    """BlockSpec for an unbroadcast 0/1 mask [mb, mq, Sk] (mb in {1,B}, mq in {1,S_tgt}).
    Batch-/query-invariant masks map to block index 0 so they are DMA'd once."""
    mb, mq, sk = mask_shape
    per_batch = (mb == batch)
    per_query = (mq == s_tgt)

    def index_map(i, j):
        return (i if per_batch else 0, j if per_query else 0, 0)

    return pl.BlockSpec((1, tq if per_query else 1, sk), index_map)


def fused_self_attn_sublayer(x, tgt_mask, lp, num_heads):
    b, st, d = x.shape
    cdt = x.dtype
    dk = d // num_heads
    tq = _seq_tile(st)
    nq = st // tq
    kern = functools.partial(self_attn_sublayer_kernel, num_heads=num_heads)
    return pl.pallas_call(
        kern,
        out_shape=jax.ShapeDtypeStruct((b, st, d), cdt),
        grid=(b, nq),
        in_specs=[
            pl.BlockSpec((1, tq, d), lambda i, j: (i, j, 0)),   # x (query tile / residual)
            pl.BlockSpec((1, st, d), lambda i, j: (i, 0, 0)),   # x (full seq, K/V @ j==0)
            pl.BlockSpec((1, d), lambda i, j: (0, 0)),          # ln gamma
            pl.BlockSpec((1, d), lambda i, j: (0, 0)),          # ln beta
            pl.BlockSpec((d, d), lambda i, j: (0, 0)),          # Wq (scale folded)
            pl.BlockSpec((1, d), lambda i, j: (0, 0)),          # bq (scale folded)
            pl.BlockSpec((d, 2 * d), lambda i, j: (0, 0)),      # Wkv (fused)
            pl.BlockSpec((1, 2 * d), lambda i, j: (0, 0)),      # bkv
            pl.BlockSpec((d, d), lambda i, j: (0, 0)),          # Wo
            pl.BlockSpec((1, d), lambda i, j: (0, 0)),          # bo
            _mask_spec(tgt_mask.shape, b, tq, st),               # tgt mask (int8)
        ],
        out_specs=pl.BlockSpec((1, tq, d), lambda i, j: (i, j, 0)),
        scratch_shapes=[pltpu.VMEM((num_heads, st, dk), cdt),    # K (head-major)
                        pltpu.VMEM((num_heads, st, dk), cdt)],   # V (head-major)
        compiler_params=pltpu.CompilerParams(
            dimension_semantics=("parallel", "arbitrary"),
            vmem_limit_bytes=VMEM_LIMIT),
        # x is passed twice (tiled + full) -> no input/output aliasing here.
    )(x, x, lp["ln1_g"], lp["ln1_b"], lp["self_wq"], lp["self_bq"],
      lp["self_wkv"], lp["self_bkv"], lp["self_wo"], lp["self_bo"], tgt_mask)


def fused_cross_attn_sublayer(x, memory, src_mask, lp, num_heads):
    b, st, d = x.shape
    ss = memory.shape[1]
    cdt = x.dtype
    dk = d // num_heads
    tq = _seq_tile(st)
    nq = st // tq
    kern = functools.partial(cross_attn_sublayer_kernel, num_heads=num_heads)
    return pl.pallas_call(
        kern,
        out_shape=jax.ShapeDtypeStruct((b, st, d), cdt),
        grid=(b, nq),
        in_specs=[
            pl.BlockSpec((1, tq, d), lambda i, j: (i, j, 0)),   # x (query tile / residual)
            pl.BlockSpec((1, ss, d), lambda i, j: (i, 0, 0)),   # memory (resident over j)
            pl.BlockSpec((1, d), lambda i, j: (0, 0)),          # ln gamma
            pl.BlockSpec((1, d), lambda i, j: (0, 0)),          # ln beta
            pl.BlockSpec((d, d), lambda i, j: (0, 0)),          # Wq (scale folded)
            pl.BlockSpec((1, d), lambda i, j: (0, 0)),          # bq (scale folded)
            pl.BlockSpec((d, 2 * d), lambda i, j: (0, 0)),      # Wkv (fused)
            pl.BlockSpec((1, 2 * d), lambda i, j: (0, 0)),      # bkv
            pl.BlockSpec((d, d), lambda i, j: (0, 0)),          # Wo
            pl.BlockSpec((1, d), lambda i, j: (0, 0)),          # bo
            _mask_spec(src_mask.shape, b, tq, st),               # src mask (int8)
        ],
        out_specs=pl.BlockSpec((1, tq, d), lambda i, j: (i, j, 0)),
        scratch_shapes=[pltpu.VMEM((num_heads, ss, dk), cdt),
                        pltpu.VMEM((num_heads, ss, dk), cdt)],
        compiler_params=pltpu.CompilerParams(
            dimension_semantics=("parallel", "arbitrary"),
            vmem_limit_bytes=VMEM_LIMIT),
        input_output_aliases={0: 0},          # residual input reused as output buffer
    )(x, memory, lp["ln2_g"], lp["ln2_b"], lp["src_wq"], lp["src_bq"],
      lp["src_wkv"], lp["src_bkv"], lp["src_wo"], lp["src_bo"], src_mask)


def pallas_ln_ffn_residual(x2d, g, b, w1, b1, w2, b2):
    m, d = x2d.shape
    dff = w1.shape[1]
    bm = _row_tile(m)
    return pl.pallas_call(
        ln_ffn_residual_kernel,
        out_shape=jax.ShapeDtypeStruct((m, d), x2d.dtype),
        grid=(m // bm,),
        in_specs=[
            pl.BlockSpec((bm, d), lambda i: (i, 0)),
            pl.BlockSpec((1, d), lambda i: (0, 0)),
            pl.BlockSpec((1, d), lambda i: (0, 0)),
            pl.BlockSpec((d, dff), lambda i: (0, 0)),
            pl.BlockSpec((1, dff), lambda i: (0, 0)),
            pl.BlockSpec((dff, d), lambda i: (0, 0)),
            pl.BlockSpec((1, d), lambda i: (0, 0)),
        ],
        out_specs=pl.BlockSpec((bm, d), lambda i: (i, 0)),
        compiler_params=pltpu.CompilerParams(
            dimension_semantics=("parallel",), vmem_limit_bytes=VMEM_LIMIT),
        input_output_aliases={0: 0},
    )(x2d, g, b, w1, b1, w2, b2)


def pallas_layernorm(x2d, g, b):
    m, d = x2d.shape
    bm = _row_tile(m)
    return pl.pallas_call(
        layernorm_kernel,
        out_shape=jax.ShapeDtypeStruct((m, d), x2d.dtype),
        grid=(m // bm,),
        in_specs=[
            pl.BlockSpec((bm, d), lambda i: (i, 0)),
            pl.BlockSpec((1, d), lambda i: (0, 0)),
            pl.BlockSpec((1, d), lambda i: (0, 0)),
        ],
        out_specs=pl.BlockSpec((bm, d), lambda i: (i, 0)),
        compiler_params=pltpu.CompilerParams(
            dimension_semantics=("parallel",), vmem_limit_bytes=VMEM_LIMIT),
    )(x2d, g, b)


# ------------------------------ model forward --------------------------------

def _pack_layer(p, num_heads, cdt):
    """Fold 1/sqrt(dk) into Wq/bq, fuse K/V weights, cast matmul weights to the
    compute dtype.  Biases and LN params stay f32 (added in the f32 accumulator)."""
    wq, bq, wk, bk, wv, bv, wo, bo = p["self_attn"]
    wq2, bq2, wk2, bk2, wv2, bv2, wo2, bo2 = p["src_attn"]
    d = wq.shape[0]
    scale = 1.0 / math.sqrt(d // num_heads)
    return {
        "ln1_g": p["ln1_g"], "ln1_b": p["ln1_b"],
        "self_wq": (wq * scale).astype(cdt), "self_bq": bq * scale,
        "self_wkv": jnp.concatenate([wk, wv], axis=1).astype(cdt),
        "self_bkv": jnp.concatenate([bk, bv], axis=1),
        "self_wo": wo.astype(cdt), "self_bo": bo,
        "ln2_g": p["ln2_g"], "ln2_b": p["ln2_b"],
        "src_wq": (wq2 * scale).astype(cdt), "src_bq": bq2 * scale,
        "src_wkv": jnp.concatenate([wk2, wv2], axis=1).astype(cdt),
        "src_bkv": jnp.concatenate([bk2, bv2], axis=1),
        "src_wo": wo2.astype(cdt), "src_bo": bo2,
        "ln3_g": p["ln3_g"], "ln3_b": p["ln3_b"],
        "ff_w1": p["ff_w1"].astype(cdt), "ff_b1": p["ff_b1"],
        "ff_w2": p["ff_w2"].astype(cdt), "ff_b2": p["ff_b2"],
    }


def decoder_forward(x, memory, src_mask, tgt_mask, params, num_heads,
                    compute_dtype=jnp.float32):
    """Pallas Decoder.forward. src_mask: [B|1, 1|St, Ss], tgt_mask: [B|1, 1|St, St]."""
    b, st, d = x.shape
    cdt = jnp.dtype(compute_dtype)
    x = x.astype(cdt)
    memory = memory.astype(cdt)
    tgt_m = tgt_mask.astype(jnp.int8)   # 4x less mask DMA than f32
    src_m = src_mask.astype(jnp.int8)

    for p in params["layers"]:
        lp = _pack_layer(p, num_heads, cdt)
        # sublayer 1: masked self-attention (pre-norm, residual)   — 1 kernel
        x = fused_self_attn_sublayer(x, tgt_m, lp, num_heads)
        # sublayer 2: source (cross) attention                     — 1 kernel
        x = fused_cross_attn_sublayer(x, memory, src_m, lp, num_heads)
        # sublayer 3: position-wise feed-forward                   — 1 kernel
        x2 = pallas_ln_ffn_residual(x.reshape(b * st, d),
                                    lp["ln3_g"], lp["ln3_b"],
                                    lp["ff_w1"], lp["ff_b1"],
                                    lp["ff_w2"], lp["ff_b2"])
        x = x2.reshape(b, st, d)

    out2d = pallas_layernorm(x.reshape(b * st, d),
                             params["norm_g"], params["norm_b"])
    return out2d.reshape(b, st, d).astype(jnp.float32)


# --------------------------- parameter construction --------------------------

def init_params(key, n_layers, d_model, d_ff):
    def lin(k, fan_in, fan_out):
        w = jax.random.normal(k, (fan_in, fan_out), jnp.float32) / math.sqrt(fan_in)
        b = jnp.zeros((1, fan_out), jnp.float32)
        return w, b

    layers = []
    for _ in range(n_layers):
        keys = jax.random.split(key, 11)
        key = keys[0]
        p = {}
        wq, bq = lin(keys[1], d_model, d_model)
        wk, bk = lin(keys[2], d_model, d_model)
        wv, bv = lin(keys[3], d_model, d_model)
        wo, bo = lin(keys[4], d_model, d_model)
        p["self_attn"] = (wq, bq, wk, bk, wv, bv, wo, bo)
        wq, bq = lin(keys[5], d_model, d_model)
        wk, bk = lin(keys[6], d_model, d_model)
        wv, bv = lin(keys[7], d_model, d_model)
        wo, bo = lin(keys[8], d_model, d_model)
        p["src_attn"] = (wq, bq, wk, bk, wv, bv, wo, bo)
        p["ff_w1"], p["ff_b1"] = lin(keys[9], d_model, d_ff)
        p["ff_w2"], p["ff_b2"] = lin(keys[10], d_ff, d_model)
        for name in ("ln1", "ln2", "ln3"):
            p[name + "_g"] = jnp.ones((1, d_model), jnp.float32)
            p[name + "_b"] = jnp.zeros((1, d_model), jnp.float32)
        layers.append(p)

    return {
        "layers": layers,
        "norm_g": jnp.ones((1, d_model), jnp.float32),
        "norm_b": jnp.zeros((1, d_model), jnp.float32),
    }


# ------------------------------ pure-JAX reference ----------------------------

def _ref_ln(x, g, b):
    mean = jnp.mean(x, axis=-1, keepdims=True)
    var = jnp.sum((x - mean) ** 2, axis=-1, keepdims=True) / (x.shape[-1] - 1)
    return g * (x - mean) / (jnp.sqrt(var) + EPS) + b


def _ref_mha(q_in, k_in, v_in, mask, prm, h):
    b, sq, d = q_in.shape
    dk = d // h
    wq, bq, wk, bk, wv, bv, wo, bo = prm

    def proj(x, w, bias):
        y = x @ w + bias
        return y.reshape(x.shape[0], x.shape[1], h, dk).transpose(0, 2, 1, 3)

    q, k, v = proj(q_in, wq, bq), proj(k_in, wk, bk), proj(v_in, wv, bv)
    scores = jnp.einsum("bhqd,bhkd->bhqk", q, k) / math.sqrt(dk)
    scores = jnp.where(mask[:, None, :, :] == 0.0, -1e9, scores)
    p = jax.nn.softmax(scores, axis=-1)
    o = jnp.einsum("bhqk,bhkd->bhqd", p, v).transpose(0, 2, 1, 3).reshape(b, sq, d)
    return o @ wo + bo


def decoder_reference(x, memory, src_mask, tgt_mask, params, h):
    sm = src_mask.astype(jnp.float32)
    tm = tgt_mask.astype(jnp.float32)
    for p in params["layers"]:
        xn = _ref_ln(x, p["ln1_g"], p["ln1_b"])
        x = x + _ref_mha(xn, xn, xn, tm, p["self_attn"], h)
        xn = _ref_ln(x, p["ln2_g"], p["ln2_b"])
        x = x + _ref_mha(xn, memory, memory, sm, p["src_attn"], h)
        xn = _ref_ln(x, p["ln3_g"], p["ln3_b"])
        x = x + (jnp.maximum(xn @ p["ff_w1"] + p["ff_b1"], 0.0) @ p["ff_w2"] + p["ff_b2"])
    return _ref_ln(x, params["norm_g"], params["norm_b"])


# ----------------------------------- main -------------------------------------

if __name__ == "__main__":
    B, S_TGT, S_SRC = 2, 8, 8
    D_MODEL, HEADS, D_FF, N_LAYERS = 32, 4, 64, 2

    root = jax.random.PRNGKey(0)
    k_x, k_mem, k_p = jax.random.split(root, 3)

    x = jax.random.normal(k_x, (B, S_TGT, D_MODEL), jnp.float32)
    memory = jax.random.normal(k_mem, (B, S_SRC, D_MODEL), jnp.float32)
    src_mask = jnp.ones((B, 1, S_SRC), jnp.float32)                   # all source visible
    tgt_mask = jnp.tril(jnp.ones((S_TGT, S_TGT), jnp.float32))[None]  # causal, unbroadcast [1,St,St]

    params = init_params(k_p, N_LAYERS, D_MODEL, D_FF)

    # f32 path (exact parity with the reference).
    fwd_f32 = jax.jit(functools.partial(decoder_forward, num_heads=HEADS,
                                        compute_dtype=jnp.float32))
    out = jax.block_until_ready(fwd_f32(x, memory, src_mask, tgt_mask, params))

    ref = jax.block_until_ready(
        decoder_reference(x, memory, src_mask, tgt_mask, params, HEADS))

    assert out.shape == (B, S_TGT, D_MODEL)
    assert bool(jnp.all(jnp.isfinite(out)))
    assert bool(jnp.allclose(out, ref, atol=1e-2, rtol=1e-2)), "mismatch vs reference"

    # bf16 production path (bf16 weights/activations, f32 stats & accumulation).
    fwd_bf16 = jax.jit(functools.partial(decoder_forward, num_heads=HEADS,
                                         compute_dtype=jnp.bfloat16))
    out_bf = jax.block_until_ready(fwd_bf16(x, memory, src_mask, tgt_mask, params))
    assert bool(jnp.all(jnp.isfinite(out_bf)))
    assert float(jnp.mean(jnp.abs(out_bf - ref))) < 0.15, "bf16 drift too large"

    print("KERNEL_OK")
</pallas_src>

<mosaic_0001>
module attributes {stable_mosaic.version = 11 : i64} {
  func.func @self_attn_sublayer_kernel(%arg0: i32, %arg1: i32, %arg2: memref<1x8x32xf32, #tpu.memory_space<vmem>>, %arg3: memref<1x8x32xf32, #tpu.memory_space<vmem>>, %arg4: memref<1x32xf32, #tpu.memory_space<vmem>>, %arg5: memref<1x32xf32, #tpu.memory_space<vmem>>, %arg6: memref<32x32xf32, #tpu.memory_space<vmem>>, %arg7: memref<1x32xf32, #tpu.memory_space<vmem>>, %arg8: memref<32x64xf32, #tpu.memory_space<vmem>>, %arg9: memref<1x64xf32, #tpu.memory_space<vmem>>, %arg10: memref<32x32xf32, #tpu.memory_space<vmem>>, %arg11: memref<1x32xf32, #tpu.memory_space<vmem>>, %arg12: memref<1x8x8xi8, #tpu.memory_space<vmem>>, %arg13: memref<1x8x32xf32, #tpu.memory_space<vmem>>, %arg14: memref<4x8x8xf32, #tpu.memory_space<vmem>>, %arg15: memref<4x8x8xf32, #tpu.memory_space<vmem>>) attributes {dimension_semantics = [#tpu.dimension_semantics<parallel>, #tpu.dimension_semantics<arbitrary>], iteration_bounds = array<i64: 2, 1>, scalar_prefetch = 0 : i64, scratch_operands = 2 : i64, tpu.core_type = #tpu.core_type<tc>, window_params = [{transform_indices = @transform_0, window_bounds = array<i64: 1, 8, 32>}, {transform_indices = @transform_1, window_bounds = array<i64: 1, 8, 32>}, {pipeline_mode = #tpu.pipeline_mode<synchronous>, transform_indices = @transform_2, window_bounds = array<i64: 1, 32>}, {pipeline_mode = #tpu.pipeline_mode<synchronous>, transform_indices = @transform_3, window_bounds = array<i64: 1, 32>}, {pipeline_mode = #tpu.pipeline_mode<synchronous>, transform_indices = @transform_4, window_bounds = array<i64: 32, 32>}, {pipeline_mode = #tpu.pipeline_mode<synchronous>, transform_indices = @transform_5, window_bounds = array<i64: 1, 32>}, {pipeline_mode = #tpu.pipeline_mode<synchronous>, transform_indices = @transform_6, window_bounds = array<i64: 32, 64>}, {pipeline_mode = #tpu.pipeline_mode<synchronous>, transform_indices = @transform_7, window_bounds = array<i64: 1, 64>}, {pipeline_mode = #tpu.pipeline_mode<synchronous>, transform_indices = @transform_8, window_bounds = array<i64: 32, 32>}, {pipeline_mode = #tpu.pipeline_mode<synchronous>, transform_indices = @transform_9, window_bounds = array<i64: 1, 32>}, {transform_indices = @transform_10, window_bounds = array<i64: 1, 8, 8>}, {transform_indices = @transform_11, window_bounds = array<i64: 1, 8, 32>}]} {
    %c0_i32 = arith.constant 0 : i32
    %0 = arith.cmpi eq, %arg1, %c0_i32 : i32
    %1 = arith.extui %0 : i1 to i32
    %c0_i32_0 = arith.constant 0 : i32
    %2 = arith.cmpi ne, %1, %c0_i32_0 : i32
    scf.if %2 {
      %c0_42 = arith.constant 0 : index
      %c0_43 = arith.constant 0 : index
      %c0_44 = arith.constant 0 : index
      %73 = vector.load %arg3[%c0_42, %c0_43, %c0_44] : memref<1x8x32xf32, #tpu.memory_space<vmem>>, vector<1x8x32xf32>
      %74 = vector.shape_cast %73 : vector<1x8x32xf32> to vector<8x32xf32>
      %c0_45 = arith.constant 0 : index
      %c0_46 = arith.constant 0 : index
      %75 = vector.load %arg4[%c0_45, %c0_46] : memref<1x32xf32, #tpu.memory_space<vmem>>, vector<1x32xf32>
      %c0_47 = arith.constant 0 : index
      %c0_48 = arith.constant 0 : index
      %76 = vector.load %arg5[%c0_47, %c0_48] : memref<1x32xf32, #tpu.memory_space<vmem>>, vector<1x32xf32>
      %cst_49 = arith.constant dense<0.000000e+00> : vector<8xf32>
      %77 = vector.multi_reduction <add>, %74, %cst_49 [1] : vector<8x32xf32> to vector<8xf32>
      %78 = vector.shape_cast %77 : vector<8xf32> to vector<8x1xf32>
      %cst_50 = arith.constant 3.200000e+01 : f32
      %79 = vector.broadcast %cst_50 : f32 to vector<8x1xf32>
      %80 = arith.divf %78, %79 : vector<8x1xf32>
      %81 = vector.broadcast %80 : vector<8x1xf32> to vector<8x32xf32>
      %82 = arith.subf %74, %81 : vector<8x32xf32>
      %83 = arith.mulf %82, %82 : vector<8x32xf32>
      %cst_51 = arith.constant dense<0.000000e+00> : vector<8xf32>
      %84 = vector.multi_reduction <add>, %83, %cst_51 [1] : vector<8x32xf32> to vector<8xf32>
      %85 = vector.shape_cast %84 : vector<8xf32> to vector<8x1xf32>
      %cst_52 = arith.constant 3.100000e+01 : f32
      %86 = vector.broadcast %cst_52 : f32 to vector<8x1xf32>
      %87 = arith.divf %85, %86 : vector<8x1xf32>
      %88 = vector.broadcast %80 : vector<8x1xf32> to vector<8x32xf32>
      %89 = arith.subf %74, %88 : vector<8x32xf32>
      %90 = vector.broadcast %75 : vector<1x32xf32> to vector<8x32xf32>
      %91 = arith.mulf %90, %89 : vector<8x32xf32>
      %92 = math.sqrt %87 : vector<8x1xf32>
      %cst_53 = arith.constant 9.99999997E-7 : f32
      %93 = vector.broadcast %cst_53 : f32 to vector<8x1xf32>
      %94 = arith.addf %92, %93 : vector<8x1xf32>
      %95 = vector.broadcast %94 : vector<8x1xf32> to vector<8x32xf32>
      %96 = arith.divf %91, %95 : vector<8x32xf32>
      %97 = vector.broadcast %76 : vector<1x32xf32> to vector<8x32xf32>
      %98 = arith.addf %96, %97 : vector<8x32xf32>
      %c0_54 = arith.constant 0 : index
      %c0_55 = arith.constant 0 : index
      %99 = vector.load %arg8[%c0_54, %c0_55] : memref<32x64xf32, #tpu.memory_space<vmem>>, vector<32x64xf32>
      %cst_56 = arith.constant dense<0.000000e+00> : vector<8x64xf32>
      %100 = tpu.matmul %98, %99, %cst_56 {dimension_numbers = #tpu.dot_dimension_numbers<[1], [0], [0], [1], [0, 0, 1, 1], [], []>} : vector<8x32xf32>, vector<32x64xf32>, vector<8x64xf32> -> vector<8x64xf32>
      %c0_57 = arith.constant 0 : index
      %c0_58 = arith.constant 0 : index
      %101 = vector.load %arg9[%c0_57, %c0_58] : memref<1x64xf32, #tpu.memory_space<vmem>>, vector<1x64xf32>
      %102 = vector.broadcast %101 : vector<1x64xf32> to vector<8x64xf32>
      %103 = arith.addf %100, %102 : vector<8x64xf32>
      %104 = vector.extract_strided_slice %103 {offsets = [0, 0], sizes = [8, 32], strides = [1, 1]} : vector<8x64xf32> to vector<8x32xf32>
      %105 = vector.shape_cast %104 : vector<8x32xf32> to vector<8x4x8xf32>
      %106 = tpu.transpose %105, [1, 0, 2] : vector<8x4x8xf32> -> vector<4x8x8xf32>
      %c0_59 = arith.constant 0 : index
      %c0_60 = arith.constant 0 : index
      %c0_61 = arith.constant 0 : index
      %107 = vector.load %arg14[%c0_59, %c0_60, %c0_61] : memref<4x8x8xf32, #tpu.memory_space<vmem>>, vector<4x8x8xf32>
      tpu.vector_store %arg14[%c0_59, %c0_60, %c0_61], %106 {strides = array<i32>} : memref<4x8x8xf32, #tpu.memory_space<vmem>>, vector<4x8x8xf32>,
      %108 = vector.extract_strided_slice %103 {offsets = [0, 32], sizes = [8, 32], strides = [1, 1]} : vector<8x64xf32> to vector<8x32xf32>
      %109 = vector.shape_cast %108 : vector<8x32xf32> to vector<8x4x8xf32>
      %110 = tpu.transpose %109, [1, 0, 2] : vector<8x4x8xf32> -> vector<4x8x8xf32>
      %c0_62 = arith.constant 0 : index
      %c0_63 = arith.constant 0 : index
      %c0_64 = arith.constant 0 : index
      %111 = vector.load %arg15[%c0_62, %c0_63, %c0_64] : memref<4x8x8xf32, #tpu.memory_space<vmem>>, vector<4x8x8xf32>
      tpu.vector_store %arg15[%c0_62, %c0_63, %c0_64], %110 {strides = array<i32>} : memref<4x8x8xf32, #tpu.memory_space<vmem>>, vector<4x8x8xf32>,
    } else {
    }
    %c0 = arith.constant 0 : index
    %c0_1 = arith.constant 0 : index
    %c0_2 = arith.constant 0 : index
    %3 = vector.load %arg2[%c0, %c0_1, %c0_2] : memref<1x8x32xf32, #tpu.memory_space<vmem>>, vector<1x8x32xf32>
    %4 = vector.shape_cast %3 : vector<1x8x32xf32> to vector<8x32xf32>
    %c0_3 = arith.constant 0 : index
    %c0_4 = arith.constant 0 : index
    %c0_5 = arith.constant 0 : index
    %5 = vector.load %arg2[%c0_3, %c0_4, %c0_5] : memref<1x8x32xf32, #tpu.memory_space<vmem>>, vector<1x8x32xf32>
    %6 = vector.shape_cast %5 : vector<1x8x32xf32> to vector<8x32xf32>
    %c0_6 = arith.constant 0 : index
    %c0_7 = arith.constant 0 : index
    %7 = vector.load %arg4[%c0_6, %c0_7] : memref<1x32xf32, #tpu.memory_space<vmem>>, vector<1x32xf32>
    %c0_8 = arith.constant 0 : index
    %c0_9 = arith.constant 0 : index
    %8 = vector.load %arg5[%c0_8, %c0_9] : memref<1x32xf32, #tpu.memory_space<vmem>>, vector<1x32xf32>
    %cst = arith.constant dense<0.000000e+00> : vector<8xf32>
    %9 = vector.multi_reduction <add>, %6, %cst [1] : vector<8x32xf32> to vector<8xf32>
    %10 = vector.shape_cast %9 : vector<8xf32> to vector<8x1xf32>
    %cst_10 = arith.constant 3.200000e+01 : f32
    %11 = vector.broadcast %cst_10 : f32 to vector<8x1xf32>
    %12 = arith.divf %10, %11 : vector<8x1xf32>
    %13 = vector.broadcast %12 : vector<8x1xf32> to vector<8x32xf32>
    %14 = arith.subf %6, %13 : vector<8x32xf32>
    %15 = arith.mulf %14, %14 : vector<8x32xf32>
    %cst_11 = arith.constant dense<0.000000e+00> : vector<8xf32>
    %16 = vector.multi_reduction <add>, %15, %cst_11 [1] : vector<8x32xf32> to vector<8xf32>
    %17 = vector.shape_cast %16 : vector<8xf32> to vector<8x1xf32>
    %cst_12 = arith.constant 3.100000e+01 : f32
    %18 = vector.broadcast %cst_12 : f32 to vector<8x1xf32>
    %19 = arith.divf %17, %18 : vector<8x1xf32>
    %20 = vector.broadcast %12 : vector<8x1xf32> to vector<8x32xf32>
    %21 = arith.subf %6, %20 : vector<8x32xf32>
    %22 = vector.broadcast %7 : vector<1x32xf32> to vector<8x32xf32>
    %23 = arith.mulf %22, %21 : vector<8x32xf32>
    %24 = math.sqrt %19 : vector<8x1xf32>
    %cst_13 = arith.constant 9.99999997E-7 : f32
    %25 = vector.broadcast %cst_13 : f32 to vector<8x1xf32>
    %26 = arith.addf %24, %25 : vector<8x1xf32>
    %27 = vector.broadcast %26 : vector<8x1xf32> to vector<8x32xf32>
    %28 = arith.divf %23, %27 : vector<8x32xf32>
    %29 = vector.broadcast %8 : vector<1x32xf32> to vector<8x32xf32>
    %30 = arith.addf %28, %29 : vector<8x32xf32>
    %c0_14 = arith.constant 0 : index
    %c0_15 = arith.constant 0 : index
    %31 = vector.load %arg6[%c0_14, %c0_15] : memref<32x32xf32, #tpu.memory_space<vmem>>, vector<32x32xf32>
    %cst_16 = arith.constant dense<0.000000e+00> : vector<8x32xf32>
    %32 = tpu.matmul %30, %31, %cst_16 {dimension_numbers = #tpu.dot_dimension_numbers<[1], [0], [0], [1], [0, 0, 1, 1], [], []>} : vector<8x32xf32>, vector<32x32xf32>, vector<8x32xf32> -> vector<8x32xf32>
    %c0_17 = arith.constant 0 : index
    %c0_18 = arith.constant 0 : index
    %33 = vector.load %arg7[%c0_17, %c0_18] : memref<1x32xf32, #tpu.memory_space<vmem>>, vector<1x32xf32>
    %34 = vector.broadcast %33 : vector<1x32xf32> to vector<8x32xf32>
    %35 = arith.addf %32, %34 : vector<8x32xf32>
    %c0_19 = arith.constant 0 : index
    %c0_20 = arith.constant 0 : index
    %c0_21 = arith.constant 0 : index
    %36 = vector.load %arg14[%c0_19, %c0_20, %c0_21] : memref<4x8x8xf32, #tpu.memory_space<vmem>>, vector<4x8x8xf32>
    %c0_22 = arith.constant 0 : index
    %c0_23 = arith.constant 0 : index
    %c0_24 = arith.constant 0 : index
    %37 = vector.load %arg15[%c0_22, %c0_23, %c0_24] : memref<4x8x8xf32, #tpu.memory_space<vmem>>, vector<4x8x8xf32>
    %c0_25 = arith.constant 0 : index
    %c0_26 = arith.constant 0 : index
    %c0_27 = arith.constant 0 : index
    %38 = vector.load %arg12[%c0_25, %c0_26, %c0_27] : memref<1x8x8xi8, #tpu.memory_space<vmem>>, vector<1x8x8xi8>
    %39 = vector.shape_cast %38 : vector<1x8x8xi8> to vector<8x8xi8>
    %40 = arith.sitofp %39 : vector<8x8xi8> to vector<8x8xf32>
    %41 = vector.shape_cast %35 : vector<8x32xf32> to vector<8x4x8xf32>
    %42 = tpu.transpose %41, [1, 0, 2] : vector<8x4x8xf32> -> vector<4x8x8xf32>
    "tpu.trace_start"() <{level = 10 : i32, message = "hqd,hkd->hqk"}> : () -> ()
    %cst_28 = arith.constant dense<0.000000e+00> : vector<4x8x8xf32>
    %43 = tpu.matmul %42, %36, %cst_28 {dimension_numbers = #tpu.dot_dimension_numbers<[2], [2], [1], [1], [0, 0, 0, 1, 1, 1], [0], [0]>} : vector<4x8x8xf32>, vector<4x8x8xf32>, vector<4x8x8xf32> -> vector<4x8x8xf32>
    "tpu.trace_stop"() : () -> ()
    %44 = vector.shape_cast %40 : vector<8x8xf32> to vector<1x8x8xf32>
    %cst_29 = arith.constant 0.000000e+00 : f32
    %45 = vector.broadcast %cst_29 : f32 to vector<1x8x8xf32>
    %46 = arith.cmpf oeq, %44, %45 : vector<1x8x8xf32>
    %cst_30 = arith.constant -1.000000e+09 : f32
    %47 = vector.shape_cast %46 : vector<1x8x8xi1> to vector<1x8x8xi1>
    %48 = vector.broadcast %47 : vector<1x8x8xi1> to vector<4x8x8xi1>
    %49 = vector.broadcast %cst_30 : f32 to vector<4x8x8xf32>
    %50 = arith.select %48, %49, %43 : vector<4x8x8xi1>, vector<4x8x8xf32>
    %cst_31 = arith.constant dense<0xFF800000> : vector<4x8xf32>
    %51 = vector.multi_reduction <maximumf>, %50, %cst_31 [2] : vector<4x8x8xf32> to vector<4x8xf32>
    %52 = vector.shape_cast %51 : vector<4x8xf32> to vector<4x8x1xf32>
    %53 = vector.broadcast %52 : vector<4x8x1xf32> to vector<4x8x8xf32>
    %54 = arith.subf %50, %53 : vector<4x8x8xf32>
    %55 = math.exp %54 : vector<4x8x8xf32>
    %cst_32 = arith.constant dense<0.000000e+00> : vector<4x8xf32>
    %56 = vector.multi_reduction <add>, %55, %cst_32 [2] : vector<4x8x8xf32> to vector<4x8xf32>
    %57 = vector.shape_cast %56 : vector<4x8xf32> to vector<4x8x1xf32>
    %58 = tpu.reciprocal %57 {approx = true} : vector<4x8x1xf32> -> vector<4x8x1xf32>
    %59 = vector.broadcast %58 : vector<4x8x1xf32> to vector<4x8x8xf32>
    %60 = arith.mulf %55, %59 : vector<4x8x8xf32>
    "tpu.trace_start"() <{level = 10 : i32, message = "hqk,hkd->hqd"}> : () -> ()
    %cst_33 = arith.constant dense<0.000000e+00> : vector<4x8x8xf32>
    %61 = tpu.matmul %60, %37, %cst_33 {dimension_numbers = #tpu.dot_dimension_numbers<[2], [1], [1], [2], [0, 0, 0, 1, 1, 2], [0], [0]>} : vector<4x8x8xf32>, vector<4x8x8xf32>, vector<4x8x8xf32> -> vector<4x8x8xf32>
    "tpu.trace_stop"() : () -> ()
    %62 = tpu.transpose %61, [1, 0, 2] : vector<4x8x8xf32> -> vector<8x4x8xf32>
    %63 = vector.shape_cast %62 : vector<8x4x8xf32> to vector<8x32xf32>
    %c0_34 = arith.constant 0 : index
    %c0_35 = arith.constant 0 : index
    %64 = vector.load %arg10[%c0_34, %c0_35] : memref<32x32xf32, #tpu.memory_space<vmem>>, vector<32x32xf32>
    %cst_36 = arith.constant dense<0.000000e+00> : vector<8x32xf32>
    %65 = tpu.matmul %63, %64, %cst_36 {dimension_numbers = #tpu.dot_dimension_numbers<[1], [0], [0], [1], [0, 0, 1, 1], [], []>} : vector<8x32xf32>, vector<32x32xf32>, vector<8x32xf32> -> vector<8x32xf32>
    %c0_37 = arith.constant 0 : index
    %c0_38 = arith.constant 0 : index
    %66 = vector.load %arg11[%c0_37, %c0_38] : memref<1x32xf32, #tpu.memory_space<vmem>>, vector<1x32xf32>
    %67 = vector.broadcast %66 : vector<1x32xf32> to vector<8x32xf32>
    %68 = arith.addf %65, %67 : vector<8x32xf32>
    %69 = arith.addf %68, %4 : vector<8x32xf32>
    %c0_39 = arith.constant 0 : index
    %c0_40 = arith.constant 0 : index
    %c0_41 = arith.constant 0 : index
    %70 = vector.load %arg13[%c0_39, %c0_40, %c0_41] : memref<1x8x32xf32, #tpu.memory_space<vmem>>, vector<1x8x32xf32>
    %71 = vector.shape_cast %70 : vector<1x8x32xf32> to vector<8x32xf32>
    %72 = vector.shape_cast %69 : vector<8x32xf32> to vector<1x8x32xf32>
    tpu.vector_store %arg13[%c0_39, %c0_40, %c0_41], %72 {strides = array<i32>} : memref<1x8x32xf32, #tpu.memory_space<vmem>>, vector<1x8x32xf32>,
    return
  }
  func.func @transform_0(%arg0: i32, %arg1: i32) -> (i32, i32, i32) {
    %c0_i32 = arith.constant 0 : i32
    %c0_i32_0 = arith.constant 0 : i32
    return %arg0, %arg1, %c0_i32 : i32, i32, i32
  }
  func.func @transform_1(%arg0: i32, %arg1: i32) -> (i32, i32, i32) {
    %c0_i32 = arith.constant 0 : i32
    %c0_i32_0 = arith.constant 0 : i32
    %c0_i32_1 = arith.constant 0 : i32
    return %arg0, %c0_i32, %c0_i32_0 : i32, i32, i32
  }
  func.func @transform_2(%arg0: i32, %arg1: i32) -> (i32, i32) {
    %c0_i32 = arith.constant 0 : i32
    %c0_i32_0 = arith.constant 0 : i32
    %c0_i32_1 = arith.constant 0 : i32
    return %c0_i32, %c0_i32_0 : i32, i32
  }
  func.func @transform_3(%arg0: i32, %arg1: i32) -> (i32, i32) {
    %c0_i32 = arith.constant 0 : i32
    %c0_i32_0 = arith.constant 0 : i32
    %c0_i32_1 = arith.constant 0 : i32
    return %c0_i32, %c0_i32_0 : i32, i32
  }
  func.func @transform_4(%arg0: i32, %arg1: i32) -> (i32, i32) {
    %c0_i32 = arith.constant 0 : i32
    %c0_i32_0 = arith.constant 0 : i32
    %c0_i32_1 = arith.constant 0 : i32
    return %c0_i32, %c0_i32_0 : i32, i32
  }
  func.func @transform_5(%arg0: i32, %arg1: i32) -> (i32, i32) {
    %c0_i32 = arith.constant 0 : i32
    %c0_i32_0 = arith.constant 0 : i32
    %c0_i32_1 = arith.constant 0 : i32
    return %c0_i32, %c0_i32_0 : i32, i32
  }
  func.func @transform_6(%arg0: i32, %arg1: i32) -> (i32, i32) {
    %c0_i32 = arith.constant 0 : i32
    %c0_i32_0 = arith.constant 0 : i32
    %c0_i32_1 = arith.constant 0 : i32
    return %c0_i32, %c0_i32_0 : i32, i32
  }
  func.func @transform_7(%arg0: i32, %arg1: i32) -> (i32, i32) {
    %c0_i32 = arith.constant 0 : i32
    %c0_i32_0 = arith.constant 0 : i32
    %c0_i32_1 = arith.constant 0 : i32
    return %c0_i32, %c0_i32_0 : i32, i32
  }
  func.func @transform_8(%arg0: i32, %arg1: i32) -> (i32, i32) {
    %c0_i32 = arith.constant 0 : i32
    %c0_i32_0 = arith.constant 0 : i32
    %c0_i32_1 = arith.constant 0 : i32
    return %c0_i32, %c0_i32_0 : i32, i32
  }
  func.func @transform_9(%arg0: i32, %arg1: i32) -> (i32, i32) {
    %c0_i32 = arith.constant 0 : i32
    %c0_i32_0 = arith.constant 0 : i32
    %c0_i32_1 = arith.constant 0 : i32
    return %c0_i32, %c0_i32_0 : i32, i32
  }
  func.func @transform_10(%arg0: i32, %arg1: i32) -> (i32, i32, i32) {
    %c0_i32 = arith.constant 0 : i32
    %c0_i32_0 = arith.constant 0 : i32
    %c0_i32_1 = arith.constant 0 : i32
    return %c0_i32, %arg1, %c0_i32_0 : i32, i32, i32
  }
  func.func @transform_11(%arg0: i32, %arg1: i32) -> (i32, i32, i32) {
    %c0_i32 = arith.constant 0 : i32
    %c0_i32_0 = arith.constant 0 : i32
    return %arg0, %arg1, %c0_i32 : i32, i32, i32
  }
}

module attributes {stable_mosaic.version = 11 : i64} {
  func.func @cross_attn_sublayer_kernel(%arg0: i32, %arg1: i32, %arg2: memref<1x8x32xf32, #tpu.memory_space<vmem>>, %arg3: memref<1x8x32xf32, #tpu.memory_space<vmem>>, %arg4: memref<1x32xf32, #tpu.memory_space<vmem>>, %arg5: memref<1x32xf32, #tpu.memory_space<vmem>>, %arg6: memref<32x32xf32, #tpu.memory_space<vmem>>, %arg7: memref<1x32xf32, #tpu.memory_space<vmem>>, %arg8: memref<32x64xf32, #tpu.memory_space<vmem>>, %arg9: memref<1x64xf32, #tpu.memory_space<vmem>>, %arg10: memref<32x32xf32, #tpu.memory_space<vmem>>, %arg11: memref<1x32xf32, #tpu.memory_space<vmem>>, %arg12: memref<1x1x8xi8, #tpu.memory_space<vmem>>, %arg13: memref<1x8x32xf32, #tpu.memory_space<vmem>>, %arg14: memref<4x8x8xf32, #tpu.memory_space<vmem>>, %arg15: memref<4x8x8xf32, #tpu.memory_space<vmem>>) attributes {dimension_semantics = [#tpu.dimension_semantics<parallel>, #tpu.dimension_semantics<arbitrary>], iteration_bounds = array<i64: 2, 1>, scalar_prefetch = 0 : i64, scratch_operands = 2 : i64, tpu.core_type = #tpu.core_type<tc>, window_params = [{transform_indices = @transform_0, window_bounds = array<i64: 1, 8, 32>}, {transform_indices = @transform_1, window_bounds = array<i64: 1, 8, 32>}, {pipeline_mode = #tpu.pipeline_mode<synchronous>, transform_indices = @transform_2, window_bounds = array<i64: 1, 32>}, {pipeline_mode = #tpu.pipeline_mode<synchronous>, transform_indices = @transform_3, window_bounds = array<i64: 1, 32>}, {pipeline_mode = #tpu.pipeline_mode<synchronous>, transform_indices = @transform_4, window_bounds = array<i64: 32, 32>}, {pipeline_mode = #tpu.pipeline_mode<synchronous>, transform_indices = @transform_5, window_bounds = array<i64: 1, 32>}, {pipeline_mode = #tpu.pipeline_mode<synchronous>, transform_indices = @transform_6, window_bounds = array<i64: 32, 64>}, {pipeline_mode = #tpu.pipeline_mode<synchronous>, transform_indices = @transform_7, window_bounds = array<i64: 1, 64>}, {pipeline_mode = #tpu.pipeline_mode<synchronous>, transform_indices = @transform_8, window_bounds = array<i64: 32, 32>}, {pipeline_mode = #tpu.pipeline_mode<synchronous>, transform_indices = @transform_9, window_bounds = array<i64: 1, 32>}, {transform_indices = @transform_10, window_bounds = array<i64: 1, 1, 8>}, {transform_indices = @transform_11, window_bounds = array<i64: 1, 8, 32>}]} {
    %c0_i32 = arith.constant 0 : i32
    %0 = arith.cmpi eq, %arg1, %c0_i32 : i32
    %1 = arith.extui %0 : i1 to i32
    %c0_i32_0 = arith.constant 0 : i32
    %2 = arith.cmpi ne, %1, %c0_i32_0 : i32
    scf.if %2 {
      %c0_42 = arith.constant 0 : index
      %c0_43 = arith.constant 0 : index
      %c0_44 = arith.constant 0 : index
      %73 = vector.load %arg3[%c0_42, %c0_43, %c0_44] : memref<1x8x32xf32, #tpu.memory_space<vmem>>, vector<1x8x32xf32>
      %74 = vector.shape_cast %73 : vector<1x8x32xf32> to vector<8x32xf32>
      %c0_45 = arith.constant 0 : index
      %c0_46 = arith.constant 0 : index
      %75 = vector.load %arg8[%c0_45, %c0_46] : memref<32x64xf32, #tpu.memory_space<vmem>>, vector<32x64xf32>
      %cst_47 = arith.constant dense<0.000000e+00> : vector<8x64xf32>
      %76 = tpu.matmul %74, %75, %cst_47 {dimension_numbers = #tpu.dot_dimension_numbers<[1], [0], [0], [1], [0, 0, 1, 1], [], []>} : vector<8x32xf32>, vector<32x64xf32>, vector<8x64xf32> -> vector<8x64xf32>
      %c0_48 = arith.constant 0 : index
      %c0_49 = arith.constant 0 : index
      %77 = vector.load %arg9[%c0_48, %c0_49] : memref<1x64xf32, #tpu.memory_space<vmem>>, vector<1x64xf32>
      %78 = vector.broadcast %77 : vector<1x64xf32> to vector<8x64xf32>
      %79 = arith.addf %76, %78 : vector<8x64xf32>
      %80 = vector.extract_strided_slice %79 {offsets = [0, 0], sizes = [8, 32], strides = [1, 1]} : vector<8x64xf32> to vector<8x32xf32>
      %81 = vector.shape_cast %80 : vector<8x32xf32> to vector<8x4x8xf32>
      %82 = tpu.transpose %81, [1, 0, 2] : vector<8x4x8xf32> -> vector<4x8x8xf32>
      %c0_50 = arith.constant 0 : index
      %c0_51 = arith.constant 0 : index
      %c0_52 = arith.constant 0 : index
      %83 = vector.load %arg14[%c0_50, %c0_51, %c0_52] : memref<4x8x8xf32, #tpu.memory_space<vmem>>, vector<4x8x8xf32>
      tpu.vector_store %arg14[%c0_50, %c0_51, %c0_52], %82 {strides = array<i32>} : memref<4x8x8xf32, #tpu.memory_space<vmem>>, vector<4x8x8xf32>,
      %84 = vector.extract_strided_slice %79 {offsets = [0, 32], sizes = [8, 32], strides = [1, 1]} : vector<8x64xf32> to vector<8x32xf32>
      %85 = vector.shape_cast %84 : vector<8x32xf32> to vector<8x4x8xf32>
      %86 = tpu.transpose %85, [1, 0, 2] : vector<8x4x8xf32> -> vector<4x8x8xf32>
      %c0_53 = arith.constant 0 : index
      %c0_54 = arith.constant 0 : index
      %c0_55 = arith.constant 0 : index
      %87 = vector.load %arg15[%c0_53, %c0_54, %c0_55] : memref<4x8x8xf32, #tpu.memory_space<vmem>>, vector<4x8x8xf32>
      tpu.vector_store %arg15[%c0_53, %c0_54, %c0_55], %86 {strides = array<i32>} : memref<4x8x8xf32, #tpu.memory_space<vmem>>, vector<4x8x8xf32>,
    } else {
    }
    %c0 = arith.constant 0 : index
    %c0_1 = arith.constant 0 : index
    %c0_2 = arith.constant 0 : index
    %3 = vector.load %arg2[%c0, %c0_1, %c0_2] : memref<1x8x32xf32, #tpu.memory_space<vmem>>, vector<1x8x32xf32>
    %4 = vector.shape_cast %3 : vector<1x8x32xf32> to vector<8x32xf32>
    %c0_3 = arith.constant 0 : index
    %c0_4 = arith.constant 0 : index
    %c0_5 = arith.constant 0 : index
    %5 = vector.load %arg2[%c0_3, %c0_4, %c0_5] : memref<1x8x32xf32, #tpu.memory_space<vmem>>, vector<1x8x32xf32>
    %6 = vector.shape_cast %5 : vector<1x8x32xf32> to vector<8x32xf32>
    %c0_6 = arith.constant 0 : index
    %c0_7 = arith.constant 0 : index
    %7 = vector.load %arg4[%c0_6, %c0_7] : memref<1x32xf32, #tpu.memory_space<vmem>>, vector<1x32xf32>
    %c0_8 = arith.constant 0 : index
    %c0_9 = arith.constant 0 : index
    %8 = vector.load %arg5[%c0_8, %c0_9] : memref<1x32xf32, #tpu.memory_space<vmem>>, vector<1x32xf32>
    %cst = arith.constant dense<0.000000e+00> : vector<8xf32>
    %9 = vector.multi_reduction <add>, %6, %cst [1] : vector<8x32xf32> to vector<8xf32>
    %10 = vector.shape_cast %9 : vector<8xf32> to vector<8x1xf32>
    %cst_10 = arith.constant 3.200000e+01 : f32
    %11 = vector.broadcast %cst_10 : f32 to vector<8x1xf32>
    %12 = arith.divf %10, %11 : vector<8x1xf32>
    %13 = vector.broadcast %12 : vector<8x1xf32> to vector<8x32xf32>
    %14 = arith.subf %6, %13 : vector<8x32xf32>
    %15 = arith.mulf %14, %14 : vector<8x32xf32>
    %cst_11 = arith.constant dense<0.000000e+00> : vector<8xf32>
    %16 = vector.multi_reduction <add>, %15, %cst_11 [1] : vector<8x32xf32> to vector<8xf32>
    %17 = vector.shape_cast %16 : vector<8xf32> to vector<8x1xf32>
    %cst_12 = arith.constant 3.100000e+01 : f32
    %18 = vector.broadcast %cst_12 : f32 to vector<8x1xf32>
    %19 = arith.divf %17, %18 : vector<8x1xf32>
    %20 = vector.broadcast %12 : vector<8x1xf32> to vector<8x32xf32>
    %21 = arith.subf %6, %20 : vector<8x32xf32>
    %22 = vector.broadcast %7 : vector<1x32xf32> to vector<8x32xf32>
    %23 = arith.mulf %22, %21 : vector<8x32xf32>
    %24 = math.sqrt %19 : vector<8x1xf32>
    %cst_13 = arith.constant 9.99999997E-7 : f32
    %25 = vector.broadcast %cst_13 : f32 to vector<8x1xf32>
    %26 = arith.addf %24, %25 : vector<8x1xf32>
    %27 = vector.broadcast %26 : vector<8x1xf32> to vector<8x32xf32>
    %28 = arith.divf %23, %27 : vector<8x32xf32>
    %29 = vector.broadcast %8 : vector<1x32xf32> to vector<8x32xf32>
    %30 = arith.addf %28, %29 : vector<8x32xf32>
    %c0_14 = arith.constant 0 : index
    %c0_15 = arith.constant 0 : index
    %31 = vector.load %arg6[%c0_14, %c0_15] : memref<32x32xf32, #tpu.memory_space<vmem>>, vector<32x32xf32>
    %cst_16 = arith.constant dense<0.000000e+00> : vector<8x32xf32>
    %32 = tpu.matmul %30, %31, %cst_16 {dimension_numbers = #tpu.dot_dimension_numbers<[1], [0], [0], [1], [0, 0, 1, 1], [], []>} : vector<8x32xf32>, vector<32x32xf32>, vector<8x32xf32> -> vector<8x32xf32>
    %c0_17 = arith.constant 0 : index
    %c0_18 = arith.constant 0 : index
    %33 = vector.load %arg7[%c0_17, %c0_18] : memref<1x32xf32, #tpu.memory_space<vmem>>, vector<1x32xf32>
    %34 = vector.broadcast %33 : vector<1x32xf32> to vector<8x32xf32>
    %35 = arith.addf %32, %34 : vector<8x32xf32>
    %c0_19 = arith.constant 0 : index
    %c0_20 = arith.constant 0 : index
    %c0_21 = arith.constant 0 : index
    %36 = vector.load %arg14[%c0_19, %c0_20, %c0_21] : memref<4x8x8xf32, #tpu.memory_space<vmem>>, vector<4x8x8xf32>
    %c0_22 = arith.constant 0 : index
    %c0_23 = arith.constant 0 : index
    %c0_24 = arith.constant 0 : index
    %37 = vector.load %arg15[%c0_22, %c0_23, %c0_24] : memref<4x8x8xf32, #tpu.memory_space<vmem>>, vector<4x8x8xf32>
    %c0_25 = arith.constant 0 : index
    %c0_26 = arith.constant 0 : index
    %c0_27 = arith.constant 0 : index
    %38 = vector.load %arg12[%c0_25, %c0_26, %c0_27] : memref<1x1x8xi8, #tpu.memory_space<vmem>>, vector<1x1x8xi8>
    %39 = vector.shape_cast %38 : vector<1x1x8xi8> to vector<1x8xi8>
    %40 = arith.sitofp %39 : vector<1x8xi8> to vector<1x8xf32>
    %41 = vector.shape_cast %35 : vector<8x32xf32> to vector<8x4x8xf32>
    %42 = tpu.transpose %41, [1, 0, 2] : vector<8x4x8xf32> -> vector<4x8x8xf32>
    "tpu.trace_start"() <{level = 10 : i32, message = "hqd,hkd->hqk"}> : () -> ()
    %cst_28 = arith.constant dense<0.000000e+00> : vector<4x8x8xf32>
    %43 = tpu.matmul %42, %36, %cst_28 {dimension_numbers = #tpu.dot_dimension_numbers<[2], [2], [1], [1], [0, 0, 0, 1, 1, 1], [0], [0]>} : vector<4x8x8xf32>, vector<4x8x8xf32>, vector<4x8x8xf32> -> vector<4x8x8xf32>
    "tpu.trace_stop"() : () -> ()
    %44 = vector.shape_cast %40 : vector<1x8xf32> to vector<1x1x8xf32>
    %cst_29 = arith.constant 0.000000e+00 : f32
    %45 = vector.broadcast %cst_29 : f32 to vector<1x1x8xf32>
    %46 = arith.cmpf oeq, %44, %45 : vector<1x1x8xf32>
    %cst_30 = arith.constant -1.000000e+09 : f32
    %47 = vector.shape_cast %46 : vector<1x1x8xi1> to vector<1x1x8xi1>
    %48 = vector.broadcast %47 : vector<1x1x8xi1> to vector<4x8x8xi1>
    %49 = vector.broadcast %cst_30 : f32 to vector<4x8x8xf32>
    %50 = arith.select %48, %49, %43 : vector<4x8x8xi1>, vector<4x8x8xf32>
    %cst_31 = arith.constant dense<0xFF800000> : vector<4x8xf32>
    %51 = vector.multi_reduction <maximumf>, %50, %cst_31 [2] : vector<4x8x8xf32> to vector<4x8xf32>
    %52 = vector.shape_cast %51 : vector<4x8xf32> to vector<4x8x1xf32>
    %53 = vector.broadcast %52 : vector<4x8x1xf32> to vector<4x8x8xf32>
    %54 = arith.subf %50, %53 : vector<4x8x8xf32>
    %55 = math.exp %54 : vector<4x8x8xf32>
    %cst_32 = arith.constant dense<0.000000e+00> : vector<4x8xf32>
    %56 = vector.multi_reduction <add>, %55, %cst_32 [2] : vector<4x8x8xf32> to vector<4x8xf32>
    %57 = vector.shape_cast %56 : vector<4x8xf32> to vector<4x8x1xf32>
    %58 = tpu.reciprocal %57 {approx = true} : vector<4x8x1xf32> -> vector<4x8x1xf32>
    %59 = vector.broadcast %58 : vector<4x8x1xf32> to vector<4x8x8xf32>
    %60 = arith.mulf %55, %59 : vector<4x8x8xf32>
    "tpu.trace_start"() <{level = 10 : i32, message = "hqk,hkd->hqd"}> : () -> ()
    %cst_33 = arith.constant dense<0.000000e+00> : vector<4x8x8xf32>
    %61 = tpu.matmul %60, %37, %cst_33 {dimension_numbers = #tpu.dot_dimension_numbers<[2], [1], [1], [2], [0, 0, 0, 1, 1, 2], [0], [0]>} : vector<4x8x8xf32>, vector<4x8x8xf32>, vector<4x8x8xf32> -> vector<4x8x8xf32>
    "tpu.trace_stop"() : () -> ()
    %62 = tpu.transpose %61, [1, 0, 2] : vector<4x8x8xf32> -> vector<8x4x8xf32>
    %63 = vector.shape_cast %62 : vector<8x4x8xf32> to vector<8x32xf32>
    %c0_34 = arith.constant 0 : index
    %c0_35 = arith.constant 0 : index
    %64 = vector.load %arg10[%c0_34, %c0_35] : memref<32x32xf32, #tpu.memory_space<vmem>>, vector<32x32xf32>
    %cst_36 = arith.constant dense<0.000000e+00> : vector<8x32xf32>
    %65 = tpu.matmul %63, %64, %cst_36 {dimension_numbers = #tpu.dot_dimension_numbers<[1], [0], [0], [1], [0, 0, 1, 1], [], []>} : vector<8x32xf32>, vector<32x32xf32>, vector<8x32xf32> -> vector<8x32xf32>
    %c0_37 = arith.constant 0 : index
    %c0_38 = arith.constant 0 : index
    %66 = vector.load %arg11[%c0_37, %c0_38] : memref<1x32xf32, #tpu.memory_space<vmem>>, vector<1x32xf32>
    %67 = vector.broadcast %66 : vector<1x32xf32> to vector<8x32xf32>
    %68 = arith.addf %65, %67 : vector<8x32xf32>
    %69 = arith.addf %68, %4 : vector<8x32xf32>
    %c0_39 = arith.constant 0 : index
    %c0_40 = arith.constant 0 : index
    %c0_41 = arith.constant 0 : index
    %70 = vector.load %arg13[%c0_39, %c0_40, %c0_41] : memref<1x8x32xf32, #tpu.memory_space<vmem>>, vector<1x8x32xf32>
    %71 = vector.shape_cast %70 : vector<1x8x32xf32> to vector<8x32xf32>
    %72 = vector.shape_cast %69 : vector<8x32xf32> to vector<1x8x32xf32>
    tpu.vector_store %arg13[%c0_39, %c0_40, %c0_41], %72 {strides = array<i32>} : memref<1x8x32xf32, #tpu.memory_space<vmem>>, vector<1x8x32xf32>,
    return
  }
  func.func @transform_0(%arg0: i32, %arg1: i32) -> (i32, i32, i32) {
    %c0_i32 = arith.constant 0 : i32
    %c0_i32_0 = arith.constant 0 : i32
    return %arg0, %arg1, %c0_i32 : i32, i32, i32
  }
  func.func @transform_1(%arg0: i32, %arg1: i32) -> (i32, i32, i32) {
    %c0_i32 = arith.constant 0 : i32
    %c0_i32_0 = arith.constant 0 : i32
    %c0_i32_1 = arith.constant 0 : i32
    return %arg0, %c0_i32, %c0_i32_0 : i32, i32, i32
  }
  func.func @transform_2(%arg0: i32, %arg1: i32) -> (i32, i32) {
    %c0_i32 = arith.constant 0 : i32
    %c0_i32_0 = arith.constant 0 : i32
    %c0_i32_1 = arith.constant 0 : i32
    return %c0_i32, %c0_i32_0 : i32, i32
  }
  func.func @transform_3(%arg0: i32, %arg1: i32) -> (i32, i32) {
    %c0_i32 = arith.constant 0 : i32
    %c0_i32_0 = arith.constant 0 : i32
    %c0_i32_1 = arith.constant 0 : i32
    return %c0_i32, %c0_i32_0 : i32, i32
  }
  func.func @transform_4(%arg0: i32, %arg1: i32) -> (i32, i32) {
    %c0_i32 = arith.constant 0 : i32
    %c0_i32_0 = arith.constant 0 : i32
    %c0_i32_1 = arith.constant 0 : i32
    return %c0_i32, %c0_i32_0 : i32, i32
  }
  func.func @transform_5(%arg0: i32, %arg1: i32) -> (i32, i32) {
    %c0_i32 = arith.constant 0 : i32
    %c0_i32_0 = arith.constant 0 : i32
    %c0_i32_1 = arith.constant 0 : i32
    return %c0_i32, %c0_i32_0 : i32, i32
  }
  func.func @transform_6(%arg0: i32, %arg1: i32) -> (i32, i32) {
    %c0_i32 = arith.constant 0 : i32
    %c0_i32_0 = arith.constant 0 : i32
    %c0_i32_1 = arith.constant 0 : i32
    return %c0_i32, %c0_i32_0 : i32, i32
  }
  func.func @transform_7(%arg0: i32, %arg1: i32) -> (i32, i32) {
    %c0_i32 = arith.constant 0 : i32
    %c0_i32_0 = arith.constant 0 : i32
    %c0_i32_1 = arith.constant 0 : i32
    return %c0_i32, %c0_i32_0 : i32, i32
  }
  func.func @transform_8(%arg0: i32, %arg1: i32) -> (i32, i32) {
    %c0_i32 = arith.constant 0 : i32
    %c0_i32_0 = arith.constant 0 : i32
    %c0_i32_1 = arith.constant 0 : i32
    return %c0_i32, %c0_i32_0 : i32, i32
  }
  func.func @transform_9(%arg0: i32, %arg1: i32) -> (i32, i32) {
    %c0_i32 = arith.constant 0 : i32
    %c0_i32_0 = arith.constant 0 : i32
    %c0_i32_1 = arith.constant 0 : i32
    return %c0_i32, %c0_i32_0 : i32, i32
  }
  func.func @transform_10(%arg0: i32, %arg1: i32) -> (i32, i32, i32) {
    %c0_i32 = arith.constant 0 : i32
    %c0_i32_0 = arith.constant 0 : i32
    %c0_i32_1 = arith.constant 0 : i32
    return %arg0, %c0_i32, %c0_i32_0 : i32, i32, i32
  }
  func.func @transform_11(%arg0: i32, %arg1: i32) -> (i32, i32, i32) {
    %c0_i32 = arith.constant 0 : i32
    %c0_i32_0 = arith.constant 0 : i32
    return %arg0, %arg1, %c0_i32 : i32, i32, i32
  }
}

module attributes {stable_mosaic.version = 11 : i64} {
  func.func @ln_ffn_residual_kernel(%arg0: i32, %arg1: memref<16x32xf32, #tpu.memory_space<vmem>>, %arg2: memref<1x32xf32, #tpu.memory_space<vmem>>, %arg3: memref<1x32xf32, #tpu.memory_space<vmem>>, %arg4: memref<32x64xf32, #tpu.memory_space<vmem>>, %arg5: memref<1x64xf32, #tpu.memory_space<vmem>>, %arg6: memref<64x32xf32, #tpu.memory_space<vmem>>, %arg7: memref<1x32xf32, #tpu.memory_space<vmem>>, %arg8: memref<16x32xf32, #tpu.memory_space<vmem>>) attributes {dimension_semantics = [#tpu.dimension_semantics<parallel>], iteration_bounds = array<i64: 1>, scalar_prefetch = 0 : i64, scratch_operands = 0 : i64, tpu.core_type = #tpu.core_type<tc>, window_params = [{transform_indices = @transform_0, window_bounds = array<i64: 16, 32>}, {pipeline_mode = #tpu.pipeline_mode<synchronous>, transform_indices = @transform_1, window_bounds = array<i64: 1, 32>}, {pipeline_mode = #tpu.pipeline_mode<synchronous>, transform_indices = @transform_2, window_bounds = array<i64: 1, 32>}, {pipeline_mode = #tpu.pipeline_mode<synchronous>, transform_indices = @transform_3, window_bounds = array<i64: 32, 64>}, {pipeline_mode = #tpu.pipeline_mode<synchronous>, transform_indices = @transform_4, window_bounds = array<i64: 1, 64>}, {pipeline_mode = #tpu.pipeline_mode<synchronous>, transform_indices = @transform_5, window_bounds = array<i64: 64, 32>}, {pipeline_mode = #tpu.pipeline_mode<synchronous>, transform_indices = @transform_6, window_bounds = array<i64: 1, 32>}, {transform_indices = @transform_7, window_bounds = array<i64: 16, 32>}]} {
    %c0 = arith.constant 0 : index
    %c0_0 = arith.constant 0 : index
    %0 = vector.load %arg1[%c0, %c0_0] : memref<16x32xf32, #tpu.memory_space<vmem>>, vector<16x32xf32>
    %c0_1 = arith.constant 0 : index
    %c0_2 = arith.constant 0 : index
    %1 = vector.load %arg1[%c0_1, %c0_2] : memref<16x32xf32, #tpu.memory_space<vmem>>, vector<16x32xf32>
    %c0_3 = arith.constant 0 : index
    %c0_4 = arith.constant 0 : index
    %2 = vector.load %arg2[%c0_3, %c0_4] : memref<1x32xf32, #tpu.memory_space<vmem>>, vector<1x32xf32>
    %c0_5 = arith.constant 0 : index
    %c0_6 = arith.constant 0 : index
    %3 = vector.load %arg3[%c0_5, %c0_6] : memref<1x32xf32, #tpu.memory_space<vmem>>, vector<1x32xf32>
    %cst = arith.constant dense<0.000000e+00> : vector<16xf32>
    %4 = vector.multi_reduction <add>, %1, %cst [1] : vector<16x32xf32> to vector<16xf32>
    %5 = vector.shape_cast %4 : vector<16xf32> to vector<16x1xf32>
    %cst_7 = arith.constant 3.200000e+01 : f32
    %6 = vector.broadcast %cst_7 : f32 to vector<16x1xf32>
    %7 = arith.divf %5, %6 : vector<16x1xf32>
    %8 = vector.broadcast %7 : vector<16x1xf32> to vector<16x32xf32>
    %9 = arith.subf %1, %8 : vector<16x32xf32>
    %10 = arith.mulf %9, %9 : vector<16x32xf32>
    %cst_8 = arith.constant dense<0.000000e+00> : vector<16xf32>
    %11 = vector.multi_reduction <add>, %10, %cst_8 [1] : vector<16x32xf32> to vector<16xf32>
    %12 = vector.shape_cast %11 : vector<16xf32> to vector<16x1xf32>
    %cst_9 = arith.constant 3.100000e+01 : f32
    %13 = vector.broadcast %cst_9 : f32 to vector<16x1xf32>
    %14 = arith.divf %12, %13 : vector<16x1xf32>
    %15 = vector.broadcast %7 : vector<16x1xf32> to vector<16x32xf32>
    %16 = arith.subf %1, %15 : vector<16x32xf32>
    %17 = vector.broadcast %2 : vector<1x32xf32> to vector<16x32xf32>
    %18 = arith.mulf %17, %16 : vector<16x32xf32>
    %19 = math.sqrt %14 : vector<16x1xf32>
    %cst_10 = arith.constant 9.99999997E-7 : f32
    %20 = vector.broadcast %cst_10 : f32 to vector<16x1xf32>
    %21 = arith.addf %19, %20 : vector<16x1xf32>
    %22 = vector.broadcast %21 : vector<16x1xf32> to vector<16x32xf32>
    %23 = arith.divf %18, %22 : vector<16x32xf32>
    %24 = vector.broadcast %3 : vector<1x32xf32> to vector<16x32xf32>
    %25 = arith.addf %23, %24 : vector<16x32xf32>
    %c0_11 = arith.constant 0 : index
    %c0_12 = arith.constant 0 : index
    %26 = vector.load %arg4[%c0_11, %c0_12] : memref<32x64xf32, #tpu.memory_space<vmem>>, vector<32x64xf32>
    %cst_13 = arith.constant dense<0.000000e+00> : vector<16x64xf32>
    %27 = tpu.matmul %25, %26, %cst_13 {dimension_numbers = #tpu.dot_dimension_numbers<[1], [0], [0], [1], [0, 0, 1, 1], [], []>} : vector<16x32xf32>, vector<32x64xf32>, vector<16x64xf32> -> vector<16x64xf32>
    %c0_14 = arith.constant 0 : index
    %c0_15 = arith.constant 0 : index
    %28 = vector.load %arg5[%c0_14, %c0_15] : memref<1x64xf32, #tpu.memory_space<vmem>>, vector<1x64xf32>
    %29 = vector.broadcast %28 : vector<1x64xf32> to vector<16x64xf32>
    %30 = arith.addf %27, %29 : vector<16x64xf32>
    %cst_16 = arith.constant 0.000000e+00 : f32
    %31 = vector.broadcast %cst_16 : f32 to vector<16x64xf32>
    %32 = arith.maximumf %30, %31 : vector<16x64xf32>
    %c0_17 = arith.constant 0 : index
    %c0_18 = arith.constant 0 : index
    %33 = vector.load %arg6[%c0_17, %c0_18] : memref<64x32xf32, #tpu.memory_space<vmem>>, vector<64x32xf32>
    %cst_19 = arith.constant dense<0.000000e+00> : vector<16x32xf32>
    %34 = tpu.matmul %32, %33, %cst_19 {dimension_numbers = #tpu.dot_dimension_numbers<[1], [0], [0], [1], [0, 0, 1, 1], [], []>} : vector<16x64xf32>, vector<64x32xf32>, vector<16x32xf32> -> vector<16x32xf32>
    %c0_20 = arith.constant 0 : index
    %c0_21 = arith.constant 0 : index
    %35 = vector.load %arg7[%c0_20, %c0_21] : memref<1x32xf32, #tpu.memory_space<vmem>>, vector<1x32xf32>
    %36 = vector.broadcast %35 : vector<1x32xf32> to vector<16x32xf32>
    %37 = arith.addf %34, %36 : vector<16x32xf32>
    %38 = arith.addf %37, %0 : vector<16x32xf32>
    %c0_22 = arith.constant 0 : index
    %c0_23 = arith.constant 0 : index
    %39 = vector.load %arg8[%c0_22, %c0_23] : memref<16x32xf32, #tpu.memory_space<vmem>>, vector<16x32xf32>
    tpu.vector_store %arg8[%c0_22, %c0_23], %38 {strides = array<i32>} : memref<16x32xf32, #tpu.memory_space<vmem>>, vector<16x32xf32>,
    return
  }
  func.func @transform_0(%arg0: i32) -> (i32, i32) {
    %c0_i32 = arith.constant 0 : i32
    %c0_i32_0 = arith.constant 0 : i32
    return %arg0, %c0_i32 : i32, i32
  }
  func.func @transform_1(%arg0: i32) -> (i32, i32) {
    %c0_i32 = arith.constant 0 : i32
    %c0_i32_0 = arith.constant 0 : i32
    %c0_i32_1 = arith.constant 0 : i32
    return %c0_i32, %c0_i32_0 : i32, i32
  }
  func.func @transform_2(%arg0: i32) -> (i32, i32) {
    %c0_i32 = arith.constant 0 : i32
    %c0_i32_0 = arith.constant 0 : i32
    %c0_i32_1 = arith.constant 0 : i32
    return %c0_i32, %c0_i32_0 : i32, i32
  }
  func.func @transform_3(%arg0: i32) -> (i32, i32) {
    %c0_i32 = arith.constant 0 : i32
    %c0_i32_0 = arith.constant 0 : i32
    %c0_i32_1 = arith.constant 0 : i32
    return %c0_i32, %c0_i32_0 : i32, i32
  }
  func.func @transform_4(%arg0: i32) -> (i32, i32) {
    %c0_i32 = arith.constant 0 : i32
    %c0_i32_0 = arith.constant 0 : i32
    %c0_i32_1 = arith.constant 0 : i32
    return %c0_i32, %c0_i32_0 : i32, i32
  }
  func.func @transform_5(%arg0: i32) -> (i32, i32) {
    %c0_i32 = arith.constant 0 : i32
    %c0_i32_0 = arith.constant 0 : i32
    %c0_i32_1 = arith.constant 0 : i32
    return %c0_i32, %c0_i32_0 : i32, i32
  }
  func.func @transform_6(%arg0: i32) -> (i32, i32) {
    %c0_i32 = arith.constant 0 : i32
    %c0_i32_0 = arith.constant 0 : i32
    %c0_i32_1 = arith.constant 0 : i32
    return %c0_i32, %c0_i32_0 : i32, i32
  }
  func.func @transform_7(%arg0: i32) -> (i32, i32) {
    %c0_i32 = arith.constant 0 : i32
    %c0_i32_0 = arith.constant 0 : i32
    return %arg0, %c0_i32 : i32, i32
  }
}

module attributes {stable_mosaic.version = 11 : i64} {
  func.func @layernorm_kernel(%arg0: i32, %arg1: memref<16x32xf32, #tpu.memory_space<vmem>>, %arg2: memref<1x32xf32, #tpu.memory_space<vmem>>, %arg3: memref<1x32xf32, #tpu.memory_space<vmem>>, %arg4: memref<16x32xf32, #tpu.memory_space<vmem>>) attributes {dimension_semantics = [#tpu.dimension_semantics<parallel>], iteration_bounds = array<i64: 1>, scalar_prefetch = 0 : i64, scratch_operands = 0 : i64, tpu.core_type = #tpu.core_type<tc>, window_params = [{transform_indices = @transform_0, window_bounds = array<i64: 16, 32>}, {pipeline_mode = #tpu.pipeline_mode<synchronous>, transform_indices = @transform_1, window_bounds = array<i64: 1, 32>}, {pipeline_mode = #tpu.pipeline_mode<synchronous>, transform_indices = @transform_2, window_bounds = array<i64: 1, 32>}, {transform_indices = @transform_3, window_bounds = array<i64: 16, 32>}]} {
    %c0 = arith.constant 0 : index
    %c0_0 = arith.constant 0 : index
    %0 = vector.load %arg1[%c0, %c0_0] : memref<16x32xf32, #tpu.memory_space<vmem>>, vector<16x32xf32>
    %c0_1 = arith.constant 0 : index
    %c0_2 = arith.constant 0 : index
    %1 = vector.load %arg2[%c0_1, %c0_2] : memref<1x32xf32, #tpu.memory_space<vmem>>, vector<1x32xf32>
    %c0_3 = arith.constant 0 : index
    %c0_4 = arith.constant 0 : index
    %2 = vector.load %arg3[%c0_3, %c0_4] : memref<1x32xf32, #tpu.memory_space<vmem>>, vector<1x32xf32>
    %cst = arith.constant dense<0.000000e+00> : vector<16xf32>
    %3 = vector.multi_reduction <add>, %0, %cst [1] : vector<16x32xf32> to vector<16xf32>
    %4 = vector.shape_cast %3 : vector<16xf32> to vector<16x1xf32>
    %cst_5 = arith.constant 3.200000e+01 : f32
    %5 = vector.broadcast %cst_5 : f32 to vector<16x1xf32>
    %6 = arith.divf %4, %5 : vector<16x1xf32>
    %7 = vector.broadcast %6 : vector<16x1xf32> to vector<16x32xf32>
    %8 = arith.subf %0, %7 : vector<16x32xf32>
    %9 = arith.mulf %8, %8 : vector<16x32xf32>
    %cst_6 = arith.constant dense<0.000000e+00> : vector<16xf32>
    %10 = vector.multi_reduction <add>, %9, %cst_6 [1] : vector<16x32xf32> to vector<16xf32>
    %11 = vector.shape_cast %10 : vector<16xf32> to vector<16x1xf32>
    %cst_7 = arith.constant 3.100000e+01 : f32
    %12 = vector.broadcast %cst_7 : f32 to vector<16x1xf32>
    %13 = arith.divf %11, %12 : vector<16x1xf32>
    %14 = vector.broadcast %6 : vector<16x1xf32> to vector<16x32xf32>
    %15 = arith.subf %0, %14 : vector<16x32xf32>
    %16 = vector.broadcast %1 : vector<1x32xf32> to vector<16x32xf32>
    %17 = arith.mulf %16, %15 : vector<16x32xf32>
    %18 = math.sqrt %13 : vector<16x1xf32>
    %cst_8 = arith.constant 9.99999997E-7 : f32
    %19 = vector.broadcast %cst_8 : f32 to vector<16x1xf32>
    %20 = arith.addf %18, %19 : vector<16x1xf32>
    %21 = vector.broadcast %20 : vector<16x1xf32> to vector<16x32xf32>
    %22 = arith.divf %17, %21 : vector<16x32xf32>
    %23 = vector.broadcast %2 : vector<1x32xf32> to vector<16x32xf32>
    %24 = arith.addf %22, %23 : vector<16x32xf32>
    %c0_9 = arith.constant 0 : index
    %c0_10 = arith.constant 0 : index
    %25 = vector.load %arg4[%c0_9, %c0_10] : memref<16x32xf32, #tpu.memory_space<vmem>>, vector<16x32xf32>
    tpu.vector_store %arg4[%c0_9, %c0_10], %24 {strides = array<i32>} : memref<16x32xf32, #tpu.memory_space<vmem>>, vector<16x32xf32>,
    return
  }
  func.func @transform_0(%arg0: i32) -> (i32, i32) {
    %c0_i32 = arith.constant 0 : i32
    %c0_i32_0 = arith.constant 0 : i32
    return %arg0, %c0_i32 : i32, i32
  }
  func.func @transform_1(%arg0: i32) -> (i32, i32) {
    %c0_i32 = arith.constant 0 : i32
    %c0_i32_0 = arith.constant 0 : i32
    %c0_i32_1 = arith.constant 0 : i32
    return %c0_i32, %c0_i32_0 : i32, i32
  }
  func.func @transform_2(%arg0: i32) -> (i32, i32) {
    %c0_i32 = arith.constant 0 : i32
    %c0_i32_0 = arith.constant 0 : i32
    %c0_i32_1 = arith.constant 0 : i32
    return %c0_i32, %c0_i32_0 : i32, i32
  }
  func.func @transform_3(%arg0: i32) -> (i32, i32) {
    %c0_i32 = arith.constant 0 : i32
    %c0_i32_0 = arith.constant 0 : i32
    return %arg0, %c0_i32 : i32, i32
  }
}

</mosaic_0001>

<bundles_post_ra>
// kernel: decoder_forward.13
= control target key start
LH: loop header
LB: loop body
LE: loop exit
PB: predicated region body
PF: predicated region fallthrough
CT: control target
= control target key end

     0   :  { %vm19_vm0 = vcmask 261120   ;;  %s241_s0 = inlined_call_operand.vmem [shape: f32[16,32], index: 0, kind: input, shape index: {}]   ;;  %s242_s1 = inlined_call_operand.vmem [shape: f32[1,32], index: 1, kind: input, shape index: {}]   ;;  %s243_s2 = inlined_call_operand.vmem [shape: f32[1,32], index: 2, kind: input, shape index: {}]   ;;  %s244_s3 = inlined_call_operand.hbm [shape: f32[16,32], index: 3, kind: output, shape index: {}]  }
   0x1   :  { %v15_v0 = vld [vmem:[%s241_s0] sm:$0xff] }
   0x2   :  { %v20_v1 = vsel %vm19_vm0, %v15_v0, 0.0 }
   0x3   :  { %8 = vsyncpa [#allocation3], 0  ;;  %21 = vadd.xlane.f32.xlu0 %v20_v1  ;;  %v16_v2 = vld [vmem:[%s241_s0 + $0x8] sm:$0xff]  ;;  %v185_v4 = vmov 32.0   ;;  %v186_v21 = vmov 31.0   ;;  %s128_s21 = sshll.u32 %s244_s3, 4  ;;  %s129_s21 = int_to_ptr.hbm [resolvable:$true] %s128_s21 }
   0x4   :  { %v23_v3 = vsel %vm19_vm0, %v16_v2, 0.0  ;;  %147 = vrcp.f32 %v185_v4  ;;  %v145_v58 = vld [vmem:[%s242_s1] ss:$0 sm:$0xff]  ;;  %s187_s1 = smov [#allocation2]   ;;  %s188_s22 = smov 128  }
   0x5   :  { %149 = vrcp.f32 %v186_v21  ;;  %s189_s23 = smov 8  }
   0xa   :  { %v148_v5 = vpop.eup %147 }
   0xb   :  { %24 = vadd.xlane.f32.xlu0 %v23_v3  ;;  %v27_v6 = vmul.f32 32.0, %v148_v5  ;;  %vm31_vm1 = vweird.f32 %v148_v5  ;;  %v150_v22 = vpop.eup %149  ;;  %v146_v3 = vld [vmem:[%s243_s2] ss:$0 sm:$0xff]  ;;  %s126_s2 = sshll.u32 %s187_s1, 4  ;;  %s127_s2 = int_to_ptr.vmem [resolvable:$true] %s126_s2 }
   0xc   :  { %v46_v23 = vmul.f32 31.0, %v150_v22  ;;  %vm50_vm2 = vweird.f32 %v150_v22 }
   0xd   :  { %v28_v7 = vsub.f32 1.0, %v27_v6 }
   0xe   :  { %v47_v24 = vsub.f32 1.0, %v46_v23 }
   0xf   :  { %v29_v8 = vmul.f32 %v148_v5, %v28_v7 }
  0x10   :  { %v48_v25 = vmul.f32 %v150_v22, %v47_v24 }
  0x11   :  { %v30_v9 = vadd.f32 %v148_v5, %v29_v8 }
  0x12   :  { %v49_v26 = vadd.f32 %v150_v22, %v48_v25 }
  0x13   :  { %v32_v10 = vsel %vm31_vm1, %v148_v5, %v30_v9 }
  0x14   :  { %v51_v27 = vsel %vm50_vm2, %v150_v22, %v49_v26 }
  0x76   :  { %v22_v11 = vpop.xlane.xlu0 %21 }
  0x77   :  { %v33_v12 = vmul.f32 %v32_v10, %v22_v11 }
  0x79   :  { %v218_v13 = vsub.f32 %v15_v0, %v33_v12 }
  0x7b   :  { %v37_v14 = vmul.f32 %v218_v13, %v218_v13  ;;  %v57_v0 = vmul.f32 %v145_v58, %v218_v13 }
  0x7d   :  { %v39_v15 = vsel %vm19_vm0, %v37_v14, 0.0 }
  0x7e   :  { %40 = vadd.xlane.f32.xlu1 %v39_v15  ;;  %v25_v16 = vpop.xlane.xlu0 %24 }
  0x7f   :  { %v34_v17 = vmul.f32 %v32_v10, %v25_v16 }
  0x81   :  { %v223_v18 = vsub.f32 %v16_v2, %v34_v17 }
  0x83   :  { %v38_v19 = vmul.f32 %v223_v18, %v223_v18  ;;  %v58_v13 = vmul.f32 %v145_v58, %v223_v18 }
  0x85   :  { %v42_v20 = vsel %vm19_vm0, %v38_v19, 0.0 }
  0x86   :  { %43 = vadd.xlane.f32.xlu1 %v42_v20 }
  0xf1   :  { %v41_v28 = vpop.xlane.xlu1 %40 }
  0xf2   :  { %v52_v29 = vmul.f32 %v51_v27, %v41_v28 }
  0xf4   :  { %151 = vrsqrt.f32 %v52_v29  ;;  %vm66_vm3 = vcmp.eq.f32.partialorder %v52_v29, inf  ;;  %v69_v42 = vand.u32 2147483648, %v52_v29  ;;  %vm68_vm4 = vcmp.eq.f32.partialorder %v52_v29, 0.0 }
  0xf9   :  { %v44_v30 = vpop.xlane.xlu1 %43 }
  0xfa   :  { %v152_v31 = vpop.eup %151  ;;  %v53_v32 = vmul.f32 %v51_v27, %v44_v30 }
  0xfb   :  { %v60_v33 = vmul.f32 %v152_v31, %v52_v29 }
  0xfc   :  { %153 = vrsqrt.f32 %v53_v32  ;;  %vm78_vm5 = vcmp.eq.f32.partialorder %v53_v32, inf  ;;  %v81_v50 = vand.u32 2147483648, %v53_v32  ;;  %vm80_vm6 = vcmp.eq.f32.partialorder %v53_v32, 0.0 }
  0xfd   :  { %v61_v34 = vmul.f32 %v152_v31, %v60_v33 }
  0xff   :  { %v62_v35 = vmul.f32 0.5, %v61_v34 }
 0x101   :  { %v63_v36 = vsub.f32 1.5, %v62_v35 }
 0x102   :  { %v154_v37 = vpop.eup %153 }
 0x103   :  { %v64_v38 = vmul.f32 %v152_v31, %v63_v36  ;;  %v72_v39 = vmul.f32 %v154_v37, %v53_v32 }
 0x105   :  { %v65_v40 = vmul.f32 %v64_v38, %v52_v29  ;;  %v73_v41 = vmul.f32 %v154_v37, %v72_v39 }
 0x107   :  { %v67_v43 = vsel %vm66_vm3, %v52_v29, %v65_v40  ;;  %v74_v44 = vmul.f32 0.5, %v73_v41 }
 0x108   :  { %v70_v45 = vsel %vm68_vm4, %v69_v42, %v67_v43 }
 0x109   :  { %v83_v46 = vadd.f32 1e-06, %v70_v45  ;;  %v75_v47 = vsub.f32 1.5, %v74_v44 }
 0x10b   :  { %155 = vrcp.f32 %v83_v46  ;;  %v76_v48 = vmul.f32 %v154_v37, %v75_v47  ;;  %v96_v57 = vand.u32 2147483648, %v83_v46  ;;  %v94_v60 = vand.u32 2147483647, %v83_v46 }
 0x10c   :  { %vm90_vm8 = vweird.f32 %v83_v46 }
 0x10d   :  { %v77_v49 = vmul.f32 %v76_v48, %v53_v32  ;;  %v97_v63 = vor.u32 1.1754944e-38, %v96_v57  ;;  %vm95_vm10 = vcmp.eq.f32.partialorder %v94_v60, 8.507059e+37 }
 0x10f   :  { %v79_v51 = vsel %vm78_vm5, %v53_v32, %v77_v49 }
 0x110   :  { %v82_v52 = vsel %vm80_vm6, %v81_v50, %v79_v51 }
 0x111   :  { %v156_v53 = vpop.eup %155  ;;  %v84_v54 = vadd.f32 1e-06, %v82_v52 }
 0x112   :  { %v86_v55 = vmul.f32 %v156_v53, %v83_v46  ;;  %vm91_vm7 = vweird.f32 %v156_v53 }
 0x113   :  { %157 = vrcp.f32 %v84_v54  ;;  %vm92_vm9 = vmor %vm90_vm8, %vm91_vm7  ;;  %v111_v7 = vand.u32 2147483648, %v84_v54  ;;  %v109_v9 = vand.u32 2147483647, %v84_v54  ;;  %vm105_vm12 = vweird.f32 %v84_v54 }
 0x114   :  { %v87_v56 = vsub.f32 1.0, %v86_v55 }
 0x115   :  { %v112_v12 = vor.u32 1.1754944e-38, %v111_v7  ;;  %vm110_vm14 = vcmp.eq.f32.partialorder %v109_v9, 8.507059e+37 }
 0x116   :  { %v88_v59 = vmul.f32 %v156_v53, %v87_v56 }
 0x118   :  { %v89_v61 = vadd.f32 %v156_v53, %v88_v59 }
 0x119   :  { %v158_v62 = vpop.eup %157 }
 0x11a   :  { %v93_v1 = vsel %vm92_vm9, %v156_v53, %v89_v61  ;;  %v101_v2 = vmul.f32 %v158_v62, %v84_v54  ;;  %vm106_vm11 = vweird.f32 %v158_v62 }
 0x11b   :  { %v98_v4 = vsel %vm95_vm10, %v97_v63, %v93_v1  ;;  %vm107_vm13 = vmor %vm105_vm12, %vm106_vm11 }
 0x11c   :  { %v99_v5 = vmul.f32 %v98_v4, %v57_v0  ;;  %v102_v6 = vsub.f32 1.0, %v101_v2 }
 0x11e   :  { %v103_v8 = vmul.f32 %v158_v62, %v102_v6  ;;  %v118_v10 = vadd.f32 %v146_v3, %v99_v5 }
 0x120   :  { %v104_v11 = vadd.f32 %v158_v62, %v103_v8  ;;  %120 = vst.msk [vmem:[#allocation2] sm:$0xff] %vm19_vm0, %v118_v10 }
 0x122   :  { %v108_v14 = vsel %vm107_vm13, %v158_v62, %v104_v11 }
 0x123   :  { %v113_v15 = vsel %vm110_vm14, %v112_v12, %v108_v14 }
 0x124   :  { %v114_v16 = vmul.f32 %v113_v15, %v58_v13 }
 0x126   :  { %v119_v17 = vadd.f32 %v146_v3, %v114_v16 }
 0x128   :  { %121 = vst.msk [vmem:[#allocation2 + $0x8] sm:$0xff] %vm19_vm0, %v119_v17 }
 0x129   :  { %134 = dma.vmem_to_hbm [thread:$0]  %s127_s2, 256, %s129_s21, [#allocation3], %s188_s22, %s188_s22, %s189_s23  }
 0x12a   :  { %183 = dma.done.wait [#allocation3], 256  }
 0x12b   :  { %184 = vsyncadd [#allocation3], 4294967040 }
 0x12c   :  { %139 = vsyncpa [#allocation3], 1 }

// kernel: decoder_forward.9
= control target key start
LH: loop header
LB: loop body
LE: loop exit
PB: predicated region body
PF: predicated region fallthrough
CT: control target
= control target key end

     0   :  { %vm30_vm0 = vcmask 261120   ;;  %v254_v4 = vmov 32.0   ;;  %v255_v24 = vmov 31.0   ;;  %vm182_vm15 = vcmask 523264   ;;  %s380_s0 = inlined_call_operand.vmem [shape: f32[16,32], index: 0, kind: input, shape index: {}, may-alias: {0,7}]   ;;  %s381_s1 = inlined_call_operand.vmem [shape: f32[1,32], index: 1, kind: input, shape index: {}]   ;;  %s382_s2 = inlined_call_operand.vmem [shape: f32[1,32], index: 2, kind: input, shape index: {}]   ;;  %s383_s4 = inlined_call_operand.vmem [shape: f32[1,64], index: 4, kind: input, shape index: {}]   ;;  %s384_s3 = inlined_call_operand.vmem [shape: f32[32,64], index: 3, kind: input, shape index: {}]   ;;  %s385_s5 = inlined_call_operand.vmem [shape: f32[64,32], index: 5, kind: input, shape index: {}]   ;;  %s386_s6 = inlined_call_operand.vmem [shape: f32[1,32], index: 6, kind: input, shape index: {}]   ;;  %s387_s7 = inlined_call_operand.vmem [shape: f32[16,32], index: 7, kind: output, shape index: {}, may-alias: {0,7}]  }
   0x1   :  { %v299_v0 = vld [vmem:[%s380_s0 + $0x8] sm:$0xff]  ;;  %v306_v2 = vld [vmem:[%s380_s0] sm:$0xff]  ;;  %242 = vrcp.f32 %v254_v4  ;;  %v134_v30 = vld [vmem:[%s384_s3 + $0x18] sm:$0xff] }
   0x2   :  { %v34_v1 = vsel %vm30_vm0, %v299_v0, 0.0  ;;  %v31_v3 = vsel %vm30_vm0, %v306_v2, 0.0  ;;  %v238_v12 = vld [vmem:[%s381_s1] ss:$0 sm:$0xff]  ;;  %244 = vrcp.f32 %v255_v24  ;;  %v133_v31 = vld [vmem:[%s384_s3 + $0x10] sm:$0xff]  ;;  %224 = vmatpush.msra.mxu3 %v134_v30  ;;  %157 = vmatpush.msra.mxu0 %v134_v30  ;;  %v132_v33 = vld [vmem:[%s384_s3 + $0x8] sm:$0xff] }
   0x3   :  { %35 = vadd.xlane.f32.xlu0 %v34_v1  ;;  %v131_v35 = vld [vmem:[%s384_s3] sm:$0xff]  ;;  %v177_v53 = vld [vmem:[%s385_s5 + $0x38] sm:$0xff]  ;;  %v176_v54 = vld [vmem:[%s385_s5 + $0x30] sm:$0xff] }
   0x4   :  { %225 = vmatpush.msra.mxu3 %v133_v31  ;;  %158 = vmatpush.msra.mxu0 %v133_v31  ;;  %v175_v57 = vld [vmem:[%s385_s5 + $0x28] sm:$0xff]  ;;  %v174_v59 = vld [vmem:[%s385_s5 + $0x20] sm:$0xff]  ;;  %v173_v62 = vld [vmem:[%s385_s5 + $0x18] sm:$0xff] }
   0x5   :  { %228 = vmatpush.msra.mxu2 %v177_v53  ;;  %197 = vmatpush.msra.mxu1 %v177_v53  ;;  %v171_v31 = vld [vmem:[%s385_s5 + $0x8] sm:$0xff] }
   0x6   :  { %226 = vmatpush.msra.mxu3 %v132_v33  ;;  %159 = vmatpush.msra.mxu0 %v132_v33 }
   0x7   :  { %v243_v5 = vpop.eup %242  ;;  %229 = vmatpush.msra.mxu2 %v176_v54  ;;  %198 = vmatpush.msra.mxu1 %v176_v54 }
   0x8   :  { %v38_v6 = vmul.f32 32.0, %v243_v5  ;;  %vm42_vm1 = vweird.f32 %v243_v5  ;;  %v245_v25 = vpop.eup %244  ;;  %227 = vmatpush.msra.mxu3 %v131_v35  ;;  %160 = vmatpush.msra.mxu0 %v131_v35 }
   0x9   :  { %v57_v26 = vmul.f32 31.0, %v245_v25  ;;  %vm61_vm2 = vweird.f32 %v245_v25  ;;  %230 = vmatpush.msra.mxu2 %v175_v57  ;;  %199 = vmatpush.msra.mxu1 %v175_v57 }
   0xa   :  { %v39_v7 = vsub.f32 1.0, %v38_v6 }
   0xb   :  { %32 = vadd.xlane.f32.xlu0 %v31_v3  ;;  %v58_v27 = vsub.f32 1.0, %v57_v26  ;;  %231 = vmatpush.msra.mxu2 %v174_v59 }
   0xc   :  { %v40_v8 = vmul.f32 %v243_v5, %v39_v7  ;;  %200 = vmatpush.msra.mxu1 %v174_v59 }
   0xd   :  { %v59_v28 = vmul.f32 %v245_v25, %v58_v27  ;;  %232 = vmatpush.msra.mxu2 %v173_v62 }
   0xe   :  { %v41_v9 = vadd.f32 %v243_v5, %v40_v8  ;;  %201 = vmatpush.msra.mxu1 %v173_v62 }
   0xf   :  { %v60_v29 = vadd.f32 %v245_v25, %v59_v28 }
  0x10   :  { %v43_v10 = vsel %vm42_vm1, %v243_v5, %v41_v9 }
  0x11   :  { %v62_v32 = vsel %vm61_vm2, %v245_v25, %v60_v29 }
  0x76   :  { %v36_v11 = vpop.xlane.xlu0 %35 }
  0x77   :  { %v45_v13 = vmul.f32 %v43_v10, %v36_v11 }
  0x79   :  { %v47_v14 = vsub.f32 %v299_v0, %v45_v13 }
  0x7b   :  { %v314_v15 = vmul.f32 %v238_v12, %v47_v14  ;;  %v49_v16 = vmul.f32 %v47_v14, %v47_v14  ;;  %v239_v14 = vld [vmem:[%s382_s2] ss:$0 sm:$0xff] }
  0x7d   :  { %v53_v17 = vsel %vm30_vm0, %v49_v16, 0.0 }
  0x7e   :  { %54 = vadd.xlane.f32.xlu1 %v53_v17  ;;  %v33_v18 = vpop.xlane.xlu0 %32 }
  0x7f   :  { %v44_v19 = vmul.f32 %v43_v10, %v33_v18 }
  0x81   :  { %v46_v20 = vsub.f32 %v306_v2, %v44_v19 }
  0x83   :  { %v318_v21 = vmul.f32 %v238_v12, %v46_v20  ;;  %v48_v22 = vmul.f32 %v46_v20, %v46_v20 }
  0x85   :  { %v50_v23 = vsel %vm30_vm0, %v48_v22, 0.0 }
  0x86   :  { %51 = vadd.xlane.f32.xlu1 %v50_v23 }
  0xf1   :  { %v55_v34 = vpop.xlane.xlu1 %54 }
  0xf2   :  { %v64_v36 = vmul.f32 %v62_v32, %v55_v34 }
  0xf4   :  { %246 = vrsqrt.f32 %v64_v36  ;;  %vm89_vm3 = vcmp.eq.f32.partialorder %v64_v36, inf  ;;  %v92_v49 = vand.u32 2147483648, %v64_v36  ;;  %vm91_vm4 = vcmp.eq.f32.partialorder %v64_v36, 0.0 }
  0xf9   :  { %v52_v37 = vpop.xlane.xlu1 %51 }
  0xfa   :  { %v247_v38 = vpop.eup %246  ;;  %v63_v39 = vmul.f32 %v62_v32, %v52_v37  ;;  %v170_v32 = vld [vmem:[%s385_s5] sm:$0xff] }
  0xfb   :  { %v83_v40 = vmul.f32 %v247_v38, %v64_v36 }
  0xfc   :  { %248 = vrsqrt.f32 %v63_v39  ;;  %vm77_vm5 = vcmp.eq.f32.partialorder %v63_v39, inf  ;;  %v80_v61 = vand.u32 2147483648, %v63_v39  ;;  %vm79_vm6 = vcmp.eq.f32.partialorder %v63_v39, 0.0 }
  0xfd   :  { %v84_v41 = vmul.f32 %v247_v38, %v83_v40 }
  0xff   :  { %v85_v42 = vmul.f32 0.5, %v84_v41 }
 0x101   :  { %v86_v43 = vsub.f32 1.5, %v85_v42 }
 0x102   :  { %v249_v44 = vpop.eup %248 }
 0x103   :  { %v87_v45 = vmul.f32 %v247_v38, %v86_v43  ;;  %v71_v46 = vmul.f32 %v249_v44, %v63_v39 }
 0x105   :  { %v88_v47 = vmul.f32 %v87_v45, %v64_v36  ;;  %v72_v48 = vmul.f32 %v249_v44, %v71_v46 }
 0x107   :  { %v73_v50 = vmul.f32 0.5, %v72_v48  ;;  %v90_v51 = vsel %vm89_vm3, %v64_v36, %v88_v47 }
 0x108   :  { %v93_v52 = vsel %vm91_vm4, %v92_v49, %v90_v51 }
 0x109   :  { %v74_v55 = vsub.f32 1.5, %v73_v50  ;;  %v95_v56 = vadd.f32 1e-06, %v93_v52 }
 0x10b   :  { %v75_v58 = vmul.f32 %v249_v44, %v74_v55  ;;  %250 = vrcp.f32 %v95_v56  ;;  %v122_v7 = vand.u32 2147483648, %v95_v56  ;;  %v120_v9 = vand.u32 2147483647, %v95_v56 }
 0x10c   :  { %vm116_vm8 = vweird.f32 %v95_v56 }
 0x10d   :  { %v76_v60 = vmul.f32 %v75_v58, %v63_v39  ;;  %v123_v12 = vor.u32 1.1754944e-38, %v122_v7  ;;  %vm121_vm10 = vcmp.eq.f32.partialorder %v120_v9, 8.507059e+37 }
 0x10f   :  { %v78_v63 = vsel %vm77_vm5, %v63_v39, %v76_v60  ;;  %v241_v39 = vld [vmem:[%s386_s6] ss:$0 sm:$0xff] }
 0x110   :  { %v81_v1 = vsel %vm79_vm6, %v80_v61, %v78_v63 }
 0x111   :  { %v251_v3 = vpop.eup %250  ;;  %v94_v4 = vadd.f32 1e-06, %v81_v1 }
 0x112   :  { %v112_v5 = vmul.f32 %v251_v3, %v95_v56  ;;  %vm117_vm7 = vweird.f32 %v251_v3 }
 0x113   :  { %252 = vrcp.f32 %v94_v4  ;;  %vm118_vm9 = vmor %vm116_vm8, %vm117_vm7  ;;  %v107_v20 = vand.u32 2147483648, %v94_v4  ;;  %v105_v24 = vand.u32 2147483647, %v94_v4  ;;  %vm101_vm12 = vweird.f32 %v94_v4 }
 0x114   :  { %v113_v6 = vsub.f32 1.0, %v112_v5 }
 0x115   :  { %v108_v26 = vor.u32 1.1754944e-38, %v107_v20  ;;  %vm106_vm14 = vcmp.eq.f32.partialorder %v105_v24, 8.507059e+37 }
 0x116   :  { %v114_v8 = vmul.f32 %v251_v3, %v113_v6 }
 0x118   :  { %v115_v10 = vadd.f32 %v251_v3, %v114_v8 }
 0x119   :  { %v253_v11 = vpop.eup %252 }
 0x11a   :  { %v119_v13 = vsel %vm118_vm9, %v251_v3, %v115_v10  ;;  %v97_v16 = vmul.f32 %v253_v11, %v94_v4  ;;  %vm102_vm11 = vweird.f32 %v253_v11 }
 0x11b   :  { %v124_v17 = vsel %vm121_vm10, %v123_v12, %v119_v13  ;;  %vm103_vm13 = vmor %vm101_vm12, %vm102_vm11 }
 0x11c   :  { %v125_v18 = vmul.f32 %v124_v17, %v314_v15  ;;  %v98_v19 = vsub.f32 1.0, %v97_v16  ;;  %v172_v15 = vld [vmem:[%s385_s5 + $0x10] sm:$0xff] }
 0x11d   :  { %233 = vmatpush.msra.mxu2 %v172_v15  ;;  %202 = vmatpush.msra.mxu1 %v172_v15 }
 0x11e   :  { %v130_v22 = vadd.f32 %v239_v14, %v125_v18  ;;  %v99_v23 = vmul.f32 %v253_v11, %v98_v19 }
 0x11f   :  { %234 = vmatpush.msra.mxu2 %v171_v31  ;;  %203 = vmatpush.msra.mxu1 %v171_v31 }
 0x120   :  { %221 = vmatmul.msk.f32.vlgmr.msra.gmra.mxu3 %vm30_vm0, %v130_v22  ;;  %v100_v25 = vadd.f32 %v253_v11, %v99_v23 }
 0x121   :  { %235 = vmatpush.msra.mxu2 %v170_v32  ;;  %204 = vmatpush.msra.mxu1 %v170_v32 }
 0x122   :  { %v104_v27 = vsel %vm103_vm13, %v253_v11, %v100_v25 }
 0x123   :  { %v109_v28 = vsel %vm106_vm14, %v108_v26, %v104_v27 }
 0x124   :  { %v110_v29 = vmul.f32 %v109_v28, %v318_v21  ;;  %v240_v21 = vld [vmem:[%s383_s4] ss:$0 sm:$0xff] }
 0x126   :  { %v129_v30 = vadd.f32 %v239_v14, %v110_v29 }
 0x128   :  { %220 = vmatmul.msk.f32.vlgmr.msra.gmra.mxu0 %vm30_vm0, %v129_v30 }
 0x1a3   :  { %v165_v33 = vpop.f32.mrf.mxu3 }
 0x1a4   :  { %v166_v34 = vadd.f32 %v240_v21, %v165_v33 }
 0x1a5   :  { %v162_v35 = vpop.f32.mrf.mxu0 }
 0x1a6   :  { %v169_v36 = vmax.f32 %v166_v34, 0.0  ;;  %v163_v37 = vadd.f32 %v240_v21, %v162_v35 }
 0x1a8   :  { %v168_v38 = vmax.f32 %v163_v37, 0.0  ;;  %223 = vmatmul.msk.f32.vlgmr.msra.gmra.mxu2 %vm182_vm15, %v169_v36 }
 0x1aa   :  { %222 = vmatmul.msk.f32.vlgmr.msra.gmra.mxu1 %vm182_vm15, %v168_v38 }
 0x227   :  { %v206_v40 = vpop.f32.mrf.mxu1 }
 0x228   :  { %v207_v41 = vadd.f32 %v241_v39, %v206_v40 }
 0x22a   :  { %v212_v42 = vadd.f32 %v207_v41, %v306_v2 }
 0x22b   :  { %v209_v43 = vpop.f32.mrf.mxu2 }
 0x22c   :  { %214 = vst.msk [vmem:[%s387_s7] sm:$0xff] %vm30_vm0, %v212_v42  ;;  %v210_v44 = vadd.f32 %v241_v39, %v209_v43 }
 0x22e   :  { %v213_v45 = vadd.f32 %v210_v44, %v299_v0 }
 0x230   :  { %215 = vst.msk [vmem:[%s387_s7 + $0x8] sm:$0xff] %vm30_vm0, %v213_v45 }

// kernel: decoder_forward.7
= control target key start
LH: loop header
LB: loop body
LE: loop exit
PB: predicated region body
PF: predicated region fallthrough
CT: control target
= control target key end

     0   :  { %s1727_s17 = smov 0   ;;  %s1729_s18 = smov 0   ;;  %s2078_s0 = inlined_call_operand.vmem [shape: f32[2,8,32], index: 0, kind: input, shape index: {}, may-alias: {0,1}]   ;;  %s2079_s1 = inlined_call_operand.vmem [shape: f32[2,8,32], index: 1, kind: input, shape index: {}, may-alias: {0,1}]   ;;  %s2080_s2 = inlined_call_operand.vmem [shape: f32[1,32], index: 2, kind: input, shape index: {}]   ;;  %s2081_s3 = inlined_call_operand.vmem [shape: f32[1,32], index: 3, kind: input, shape index: {}]   ;;  %s2082_s4 = inlined_call_operand.vmem [shape: f32[32,32], index: 4, kind: input, shape index: {}]   ;;  %s2083_s5 = inlined_call_operand.vmem [shape: f32[1,32], index: 5, kind: input, shape index: {}]   ;;  %s2084_s6 = inlined_call_operand.vmem [shape: f32[32,64], index: 6, kind: input, shape index: {}]   ;;  %s2085_s7 = inlined_call_operand.vmem [shape: f32[1,64], index: 7, kind: input, shape index: {}]   ;;  %s2086_s8 = inlined_call_operand.vmem [shape: f32[32,32], index: 8, kind: input, shape index: {}]   ;;  %s2087_s9 = inlined_call_operand.vmem [shape: f32[1,32], index: 9, kind: input, shape index: {}]   ;;  %s2088_s10 = inlined_call_operand.vmem [shape: s8[1,8,8], index: 10, kind: input, shape index: {}]   ;;  %s2089_s11 = inlined_call_operand.vmem [shape: f32[2,8,32], index: 11, kind: output, shape index: {}]  }
   0x1   :  { %s1731_s19 = smov 0  }
   0x2 LB: > { %s33_s20 = sadd.s32 1, %s1650_s18  ;;  %p1540_p0 = scmp.ge.s32.totalorder %s1654_s19, 1  ;;  %s1654_s19 = sphi %s1731_s19, %s21_s19   ;;  %s1650_s18 = sphi %s1729_s18, %s2091_s18   ;;  %s1646_s17 = sphi %s1727_s17, %s2090_s17  }
   0x3   : > { %p35_p1 = scmp.ge.s32.totalorder %s33_s20, 2  ;;  %p373_p2 = scmp.lt.s32.totalorder %s1654_s19, 3 }
   0x5   : > { %s2093_s20 = smov (%p35_p1, %s33_s20), 0  ;;  %p374_p3 = pnand %p1540_p0, %p373_p2 }
   0x6   : > { %p425_p4 = scmp.lt.s32.totalorder (!%p374_p3), %s1646_s17, 1  ;;  %s1658_s25 = smov (!%p374_p3), 120  }
   0x7   : > { %377 = sbr.rel (%p374_p3) target bundleno = 1385 (0x569), region = 64  ;;  %s1659_s26 = smov (!%p374_p3), 104  }
   0x8   : > { %s1660_s30 = smov (!%p374_p3), 112   ;;  %s1661_s12 = smov (!%p374_p3), 96  }
   0x9   : > { %s1664_s15 = smov (!%p374_p3), 24   ;;  %s1665_s16 = smov (!%p374_p3), 16  }
   0xc   : > { %s2095_s17 = smov (!%p425_p4, %s1646_s17), 1  ;;  %vm454_vm0 = vcmask 261120   ;;  %v1656_v4 = vmov 32.0   ;;  %v1657_v21 = vmov 31.0   ;;  %v518_v27 = vld [vmem:[%s2084_s6 + $0x18] sm:$0xff]  ;;  %v517_v28 = vld [vmem:[%s2084_s6 + $0x10] sm:$0xff] }
   0xd   : > { %s1745_s21 = sshll.u32 %s2095_s17, 3  ;;  %1603 = vrcp.f32 %v1656_v4  ;;  %538 = vmatpush.msra.mxu0 %v518_v27  ;;  %v516_v30 = vld [vmem:[%s2084_s6 + $0x8] sm:$0xff]  ;;  %v515_v32 = vld [vmem:[%s2084_s6] sm:$0xff]  ;;  %v865_v40 = vld [vmem:[%s2082_s4 + $0x18] sm:$0xff]  ;;  %vm557_vm15 = vcmask 1047556   ;;  %s1666_s17 = smov 8  }
   0xe   : > { %s435_s24 = scalar_lea.vmem %s2079_s1, %s1745_s21  ;;  %s1756_s27 = scalar_lea.vmem %s2078_s0, %s1745_s21  ;;  %1605 = vrcp.f32 %v1657_v21  ;;  %v864_v41 = vld [vmem:[%s2082_s4 + $0x10] sm:$0xff]  ;;  %885 = vmatpush.msra.mxu1 %v865_v40  ;;  %v863_v44 = vld [vmem:[%s2082_s4 + $0x8] sm:$0xff]  ;;  %v862_v47 = vld [vmem:[%s2082_s4] sm:$0xff] }
   0xf   : > { %v451_v0 = vld [vmem:[%s435_s24] sm:$0xff]  ;;  %539 = vmatpush.msra.mxu0 %v517_v28 }
  0x10   : > { %v455_v1 = vsel %vm454_vm0, %v451_v0, 0.0  ;;  %v798_v2 = vld [vmem:[%s1756_s27] sm:$0xff]  ;;  %886 = vmatpush.msra.mxu1 %v864_v41 }
  0x11   : > { %456 = vadd.xlane.f32.xlu0 %v455_v1  ;;  %v802_v3 = vsel %vm454_vm0, %v798_v2, 0.0  ;;  %540 = vmatpush.msra.mxu0 %v516_v30 }
  0x12   : > { %887 = vmatpush.msra.mxu1 %v863_v44 }
  0x13   : > { %v1604_v5 = vpop.eup %1603  ;;  %541 = vmatpush.msra.mxu0 %v515_v32 }
  0x14   : > { %v459_v6 = vmul.f32 32.0, %v1604_v5  ;;  %vm463_vm1 = vweird.f32 %v1604_v5  ;;  %v1606_v22 = vpop.eup %1605  ;;  %888 = vmatpush.msra.mxu1 %v862_v47 }
  0x15   : > { %v472_v23 = vmul.f32 31.0, %v1606_v22  ;;  %vm476_vm2 = vweird.f32 %v1606_v22 }
  0x16   : > { %v460_v7 = vsub.f32 1.0, %v459_v6 }
  0x17   : > { %v473_v24 = vsub.f32 1.0, %v472_v23 }
  0x18   : > { %v461_v8 = vmul.f32 %v1604_v5, %v460_v7 }
  0x19   : > { %803 = vadd.xlane.f32.xlu0 %v802_v3  ;;  %v474_v25 = vmul.f32 %v1606_v22, %v473_v24 }
  0x1a   : > { %v462_v9 = vadd.f32 %v1604_v5, %v461_v8 }
  0x1b   : > { %v475_v26 = vadd.f32 %v1606_v22, %v474_v25  ;;  %v1599_v25 = vld [vmem:[%s2081_s3] ss:$0 sm:$0xff] }
  0x1c   : > { %v464_v10 = vsel %vm463_vm1, %v1604_v5, %v462_v9  ;;  %vm667_vm1 = vcmask 64512  }
  0x1d   : > { %v477_v29 = vsel %vm476_vm2, %v1606_v22, %v475_v26 }
  0x84   : > { %v457_v11 = vpop.xlane.xlu0 %456 }
  0x85   : > { %v465_v12 = vmul.f32 %v464_v10, %v457_v11 }
  0x87   : > { %v1760_v13 = vsub.f32 %v451_v0, %v465_v12 }
  0x89   : > { %v467_v14 = vmul.f32 %v1760_v13, %v1760_v13 }
  0x8b   : > { %v468_v15 = vsel %vm454_vm0, %v467_v14, 0.0 }
  0x8c   : > { %469 = vadd.xlane.f32.xlu1 %v468_v15  ;;  %v804_v16 = vpop.xlane.xlu0 %803 }
  0x8d   : > { %v812_v17 = vmul.f32 %v804_v16, %v464_v10  ;;  %v1598_v10 = vld [vmem:[%s2081_s3] ss:$0 sm:$0xff] }
  0x8f   : > { %v1765_v18 = vsub.f32 %v798_v2, %v812_v17  ;;  %v1596_v2 = vld [vmem:[%s2080_s2] ss:$0 sm:$0xff] }
  0x90   : > { %v482_v8 = vmul.f32 %v1596_v2, %v1760_v13  ;;  %v1597_v17 = vld [vmem:[%s2080_s2] ss:$0 sm:$0xff] }
  0x91   : > { %v814_v19 = vmul.f32 %v1765_v18, %v1765_v18  ;;  %v829_v23 = vmul.f32 %v1597_v17, %v1765_v18  ;;  %v1601_v18 = vld [vmem:[%s2083_s5] ss:$0 sm:$0xff] }
  0x93   : > { %v815_v20 = vsel %vm454_vm0, %v814_v19, 0.0 }
  0x94   : > { %816 = vadd.xlane.f32.xlu1 %v815_v20 }
  0xff   : > { %v470_v31 = vpop.xlane.xlu1 %469 }
 0x100   : > { %v478_v33 = vmul.f32 %v477_v29, %v470_v31 }
 0x102   : > { %1607 = vrsqrt.f32 %v478_v33  ;;  %vm490_vm3 = vcmp.eq.f32.partialorder %v478_v33, inf  ;;  %v493_v50 = vand.u32 2147483648, %v478_v33  ;;  %vm492_vm4 = vcmp.eq.f32.partialorder %v478_v33, 0.0 }
 0x107   : > { %v817_v34 = vpop.xlane.xlu1 %816 }
 0x108   : > { %v1608_v35 = vpop.eup %1607  ;;  %v825_v36 = vmul.f32 %v817_v34, %v477_v29  ;;  %v1600_v29 = vld [vmem:[%s2085_s7] ss:$0 sm:$0xff] }
 0x109   : > { %v484_v37 = vmul.f32 %v1608_v35, %v478_v33 }
 0x10a   : > { %1609 = vrsqrt.f32 %v825_v36  ;;  %vm837_vm5 = vcmp.eq.f32.partialorder %v825_v36, inf  ;;  %v840_v58 = vand.u32 2147483648, %v825_v36  ;;  %vm839_vm6 = vcmp.eq.f32.partialorder %v825_v36, 0.0 }
 0x10b   : > { %v485_v38 = vmul.f32 %v1608_v35, %v484_v37 }
 0x10d   : > { %v486_v39 = vmul.f32 0.5, %v485_v38 }
 0x10f   : > { %v487_v42 = vsub.f32 1.5, %v486_v39 }
 0x110   : > { %v1610_v43 = vpop.eup %1609 }
 0x111   : > { %v488_v45 = vmul.f32 %v1608_v35, %v487_v42  ;;  %v831_v46 = vmul.f32 %v1610_v43, %v825_v36 }
 0x113   : > { %v489_v48 = vmul.f32 %v488_v45, %v478_v33  ;;  %v832_v49 = vmul.f32 %v1610_v43, %v831_v46  ;;  %v1663_v45 = vmov 1934713408  }
 0x114   : > { %v586_v46 = vunpack.c.l.s4 %v1663_v45 }
 0x115   : > { %v833_v51 = vmul.f32 0.5, %v832_v49  ;;  %v491_v52 = vsel %vm490_vm3, %v478_v33, %v489_v48  ;;  %vm1396_vm3 = vcmask 130048  }
 0x116   : > { %v494_v53 = vsel %vm492_vm4, %v493_v50, %v491_v52  ;;  %vm1398_vm4 = vcmask 195584  }
 0x117   : > { %v834_v54 = vsub.f32 1.5, %v833_v51  ;;  %v495_v55 = vadd.f32 1e-06, %v494_v53 }
 0x119   : > { %v835_v56 = vmul.f32 %v1610_v43, %v834_v54  ;;  %1611 = vrcp.f32 %v495_v55  ;;  %v507_v1 = vand.u32 2147483648, %v495_v55  ;;  %v505_v4 = vand.u32 2147483647, %v495_v55 }
 0x11a   : > { %vm501_vm8 = vweird.f32 %v495_v55  ;;  %v1834_v54 = vunpack.c.0.s8 %v586_v46 }
 0x11b   : > { %v836_v57 = vmul.f32 %v835_v56, %v825_v36  ;;  %v508_v7 = vor.u32 1.1754944e-38, %v507_v1  ;;  %vm506_vm10 = vcmp.eq.f32.partialorder %v505_v4, 8.507059e+37 }
 0x11d   : > { %v838_v59 = vsel %vm837_vm5, %v825_v36, %v836_v57  ;;  %v1662_v36 = vmov 1983009808  }
 0x11e   : > { %v841_v60 = vsel %vm839_vm6, %v840_v58, %v838_v59  ;;  %v562_v37 = vunpack.c.l.s4 %v1662_v36 }
 0x11f   : > { %v1612_v61 = vpop.eup %1611  ;;  %v842_v62 = vadd.f32 1e-06, %v841_v60 }
 0x120   : > { %v497_v63 = vmul.f32 %v1612_v61, %v495_v55  ;;  %vm502_vm7 = vweird.f32 %v1612_v61  ;;  %v1822_v40 = vunpack.c.0.s8 %v562_v37 }
 0x121   : > { %1613 = vrcp.f32 %v842_v62  ;;  %vm503_vm9 = vmor %vm501_vm8, %vm502_vm7  ;;  %v854_v16 = vand.u32 2147483648, %v842_v62  ;;  %v852_v21 = vand.u32 2147483647, %v842_v62  ;;  %vm848_vm12 = vweird.f32 %v842_v62 }
 0x122   : > { %v498_v0 = vsub.f32 1.0, %v497_v63 }
 0x123   : > { %v855_v22 = vor.u32 1.1754944e-38, %v854_v16  ;;  %vm853_vm14 = vcmp.eq.f32.partialorder %v852_v21, 8.507059e+37 }
 0x124   : > { %v499_v3 = vmul.f32 %v1612_v61, %v498_v0 }
 0x126   : > { %v500_v5 = vadd.f32 %v1612_v61, %v499_v3 }
 0x127   : > { %v1614_v6 = vpop.eup %1613 }
 0x128   : > { %v504_v9 = vsel %vm503_vm9, %v1612_v61, %v500_v5  ;;  %v844_v11 = vmul.f32 %v1614_v6, %v842_v62  ;;  %vm849_vm11 = vweird.f32 %v1614_v6 }
 0x129   : > { %v509_v12 = vsel %vm506_vm10, %v508_v7, %v504_v9  ;;  %vm850_vm13 = vmor %vm848_vm12, %vm849_vm11 }
 0x12a   : > { %v510_v14 = vmul.f32 %v509_v12, %v482_v8  ;;  %v845_v15 = vsub.f32 1.0, %v844_v11 }
 0x12c   : > { %v514_v19 = vadd.f32 %v1598_v10, %v510_v14  ;;  %v846_v20 = vmul.f32 %v1614_v6, %v845_v15 }
 0x12e   : > { %1544 = vmatmul.msk.f32.vlgmr.msra.gmra.mxu0 %vm454_vm0, %v514_v19  ;;  %v847_v13 = vadd.f32 %v1614_v6, %v846_v20 }
 0x130   : > { %v851_v24 = vsel %vm850_vm13, %v1614_v6, %v847_v13 }
 0x131   : > { %v856_v26 = vsel %vm853_vm14, %v855_v22, %v851_v24 }
 0x132   : > { %v857_v27 = vmul.f32 %v856_v26, %v829_v23 }
 0x134   : > { %v861_v28 = vadd.f32 %v1599_v25, %v857_v27 }
 0x136   : > { %1545 = vmatmul.msk.f32.vlgmr.msra.gmra.mxu1 %vm454_vm0, %v861_v28 }
 0x1ab   : > { %v543_v30 = vpop.f32.mrf.mxu0 }
 0x1ac   : > { %v544_v31 = vadd.f32 %v1600_v29, %v543_v30 }
 0x1ae   : > { %547 = vrot.lane.b32.xlu2 %v544_v31, %s1658_s25  ;;  %553 = vrot.lane.b32.xlu0 %v544_v31, %s1659_s26  ;;  %v559_v39 = vrot.slane %v544_v31, 4 }
 0x1b3   : > { %v890_v32 = vpop.f32.mrf.mxu1 }
 0x1b4   : > { %v891_v33 = vadd.f32 %v1601_v18, %v890_v32 }
 0x1b6   : > { %550 = vrot.lane.b32.xlu2 %v544_v31, %s1660_s30  ;;  %672 = vrot.lane.b32.xlu0 %v544_v31, %s1661_s12  ;;  %v917_v48 = vrot.slane %v891_v33, 4 }
 0x1b7   : > { %905 = vrot.lane.b32.xlu1 %v891_v33, %s1658_s25 }
 0x1be   : > { %908 = vrot.lane.b32.xlu2 %v891_v33, %s1660_s30 }
 0x1c6   : > { %911 = vrot.lane.b32.xlu2 %v891_v33, %s1659_s26 }
 0x208   : > { %v1817_v34 = vpop.permute.xlu2 %547 }
 0x209   : > { %v571_v49 = vrot.slane %v1817_v34, 4 }
 0x210   : > { %v1819_v35 = vpop.permute.xlu2 %550 }
 0x211   : > { %v556_v38 = vrot.slane %v1819_v35, 4  ;;  %v560_v42 = vsel %vm557_vm15, %v1819_v35, %v559_v39 }
 0x212   : > { %v568_v47 = vperm.slane %v560_v42, %v1822_v40 }
 0x213   : > { %v558_v43 = vsel %vm557_vm15, %v556_v38, %v544_v31 }
 0x214   : > { %v564_v50 = vperm.slane %v558_v43, %v1822_v40  ;;  %v595_v57 = vrot.slane %v568_v47, 4 }
 0x216   : > { %v583_v59 = vrot.slane %v564_v50, 4 }
 0x218   : > { %v909_v41 = vpop.permute.xlu2 %908 }
 0x219   : > { %v914_v44 = vrot.slane %v909_v41, 4  ;;  %v918_v51 = vsel %vm557_vm15, %v909_v41, %v917_v48 }
 0x21a   : > { %v926_v60 = vperm.slane %v918_v51, %v1822_v40 }
 0x21b   : > { %v916_v53 = vsel %vm557_vm15, %v914_v44, %v891_v33 }
 0x21c   : > { %v922_v62 = vperm.slane %v916_v53, %v1822_v40  ;;  %v953_v11 = vrot.slane %v926_v60, 4 }
 0x21e   : > { %v941_v10 = vrot.slane %v922_v62, 4 }
 0x220   : > { %v1831_v52 = vpop.permute.xlu0 %553  ;;  %v912_v2 = vpop.permute.xlu2 %911 }
 0x221   : > { %v569_v55 = vrot.slane %v1831_v52, 4  ;;  %v572_v56 = vsel %vm557_vm15, %v1831_v52, %v571_v49  ;;  %v927_v12 = vrot.slane %v912_v2, 4 }
 0x222   : > { %v580_v58 = vperm.slane %v572_v56, %v1822_v40 }
 0x223   : > { %v570_v61 = vsel %vm557_vm15, %v569_v55, %v1817_v34 }
 0x224   : > { %v576_v63 = vperm.slane %v570_v61, %v1822_v40  ;;  %v593_v0 = vrot.slane %v580_v58, 4  ;;  %v596_v1 = vsel %vm557_vm15, %v580_v58, %v595_v57 }
 0x225   : > { %v604_v3 = vperm.slane %v596_v1, %v1834_v54 }
 0x226   : > { %v581_v4 = vrot.slane %v576_v63, 4  ;;  %v584_v5 = vsel %vm557_vm15, %v576_v63, %v583_v59  ;;  %v594_v6 = vsel %vm557_vm15, %v593_v0, %v568_v47 }
 0x227   : > { %v592_v7 = vperm.slane %v584_v5, %v1834_v54  ;;  %v600_v8 = vperm.slane %v594_v6, %v1834_v54  ;;  %v611_v9 = vrot.slane %v604_v3, 4 }
 0x228   : > { %v582_v14 = vsel %vm557_vm15, %v581_v4, %v564_v50 }
 0x229   : > { %v588_v15 = vperm.slane %v582_v14, %v1834_v54  ;;  %v607_v16 = vrot.slane %v592_v7, 4  ;;  %v609_v17 = vrot.slane %v600_v8, 4  ;;  %v612_v19 = vsel %vm557_vm15, 0.0, %v611_v9  ;;  %v906_v20 = vpop.permute.xlu1 %905 }
 0x22a   : > { %v624_v21 = vsel %vm557_vm15, %v611_v9, %v600_v8  ;;  %v629_v13 = vrot.slane %v612_v19, 4  ;;  %v928_v22 = vsel %vm557_vm15, %v927_v12, %v906_v20  ;;  %v929_v23 = vrot.slane %v906_v20, 4 }
 0x22b   : > { %v605_v24 = vrot.slane %v588_v15, 4  ;;  %v608_v25 = vsel %vm557_vm15, 0.0, %v607_v16  ;;  %v610_v26 = vsel %vm557_vm15, 0.0, %v609_v17  ;;  %v613_v27 = vsel %vm557_vm15, %v607_v16, %v588_v15 }
 0x22c   : > { %v617_v28 = vperm.slane %v613_v27, %v1822_v40  ;;  %v618_v29 = vrot.slane %v608_v25, 4  ;;  %v628_v30 = vperm.slane %v624_v21, %v1822_v40  ;;  %v630_v31 = vsel %vm557_vm15, %v629_v13, %v610_v26 }
 0x22d   : > { %v606_v18 = vsel %vm557_vm15, 0.0, %v605_v24  ;;  %v634_v32 = vperm.slane %v630_v31, %v1822_v40  ;;  %v930_v33 = vsel %vm557_vm15, %v912_v2, %v929_v23  ;;  %v934_v36 = vperm.slane %v928_v22, %v1822_v40 }
 0x22e   : > { %v619_v37 = vsel %vm557_vm15, %v618_v29, %v606_v18  ;;  %v637_v38 = vrot.slane %v617_v28, 4  ;;  %v649_v39 = vrot.slane %v628_v30, 4  ;;  %v938_v41 = vperm.slane %v930_v33, %v1822_v40 }
 0x22f   : > { %v623_v42 = vperm.slane %v619_v37, %v1822_v40  ;;  %v647_v43 = vrot.slane %v634_v32, 4  ;;  %v939_v44 = vrot.slane %v934_v36, 4  ;;  %v942_v45 = vsel %vm557_vm15, %v934_v36, %v941_v10 }
 0x230   : > { %v650_v46 = vsel %vm557_vm15, %v634_v32, %v649_v39  ;;  %v950_v47 = vperm.slane %v942_v45, %v1834_v54  ;;  %v951_v48 = vrot.slane %v938_v41, 4  ;;  %v954_v49 = vsel %vm557_vm15, %v938_v41, %v953_v11 }
 0x231   : > { %v635_v50 = vrot.slane %v623_v42, 4  ;;  %v638_v51 = vsel %vm557_vm15, %v623_v42, %v637_v38  ;;  %v648_v53 = vsel %vm557_vm15, %v647_v43, %v628_v30  ;;  %v658_v55 = vperm.slane %v650_v46, %v1834_v54 }
 0x232   : > { %v646_v56 = vperm.slane %v638_v51, %v1834_v54  ;;  %v654_v57 = vperm.slane %v648_v53, %v1834_v54  ;;  %v940_v58 = vsel %vm557_vm15, %v939_v44, %v922_v62  ;;  %v952_v59 = vsel %vm557_vm15, %v951_v48, %v926_v60 }
 0x233   : > { %v636_v61 = vsel %vm557_vm15, %v635_v50, %v617_v28  ;;  %v663_v63 = vrot.slane %v658_v55, 4  ;;  %v946_v0 = vperm.slane %v940_v58, %v1834_v54  ;;  %v958_v1 = vperm.slane %v952_v59, %v1834_v54 }
 0x234   : > { %v642_v2 = vperm.slane %v636_v61, %v1834_v54  ;;  %v659_v3 = vrot.slane %v654_v57, 4  ;;  %v665_v4 = vrot.slane %v646_v56, 4  ;;  %v962_v5 = vperm.slane %v954_v49, %v1834_v54 }
 0x235   : > { %v664_v6 = vsel %vm557_vm15, %v663_v63, %v646_v56  ;;  %v963_v7 = vrot.slane %v946_v0, 4  ;;  %v965_v8 = vrot.slane %v950_v47, 4  ;;  %v967_v62 = vrot.slane %v958_v1, 4  ;;  %v901_v56 = vld [vmem:[%s2088_s10] sm:$0x3] }
 0x236   : > { %v660_v60 = vsel %vm557_vm15, %v659_v3, %v642_v2  ;;  %v661_v9 = vrot.slane %v642_v2, 4  ;;  %v666_v10 = vsel %vm557_vm15, %v658_v55, %v665_v4  ;;  %670 = vst.msk [vmem:[#allocation2 + $0x10] sm:$0xff] %vm667_vm1, %v664_v6  ;;  %v969_v11 = vrot.slane %v962_v5, 4 }
 0x237   : > { %668 = vst.msk [vmem:[#allocation2] sm:$0xff] %vm667_vm1, %v660_v60  ;;  %v964_v12 = vsel %vm557_vm15, 0.0, %v963_v7  ;;  %v966_v14 = vsel %vm557_vm15, 0.0, %v965_v8  ;;  %v968_v15 = vsel %vm557_vm15, 0.0, %v967_v62  ;;  %v971_v20 = vsel %vm557_vm15, %v965_v8, %v946_v0  ;;  %v673_v62 = vpop.permute.xlu0 %672 }
 0x238   : > { %v662_v16 = vsel %vm557_vm15, %v654_v57, %v661_v9  ;;  %671 = vst.msk [vmem:[#allocation2 + $0x18] sm:$0xff] %vm667_vm1, %v666_v10  ;;  %v970_v17 = vsel %vm557_vm15, 0.0, %v969_v11  ;;  %v976_v19 = vrot.slane %v966_v14, 4  ;;  %v975_v13 = vperm.slane %v971_v20, %v1822_v40 }
 0x239   : > { %669 = vst.msk [vmem:[#allocation2 + $0x8] sm:$0xff] %vm667_vm1, %v662_v16  ;;  %v987_v21 = vrot.slane %v970_v17, 4  ;;  %v982_v22 = vsel %vm557_vm15, %v969_v11, %v958_v1  ;;  %v902_v57 = vunpack.c.0.s8 %v901_v56 }
 0x23a   : > { %v977_v23 = vsel %vm557_vm15, %v976_v19, %v964_v12  ;;  %v986_v24 = vperm.slane %v982_v22, %v1822_v40  ;;  %v995_v29 = vrot.slane %v975_v13, 4 }
 0x23b   : > { %v981_v25 = vperm.slane %v977_v23, %v1822_v40  ;;  %v988_v26 = vsel %vm557_vm15, %v987_v21, %v968_v15  ;;  %v903_v58 = vcvt.s32.f32 %v902_v57 }
 0x23c   : > { %v992_v27 = vperm.slane %v988_v26, %v1822_v40  ;;  %v1007_v18 = vrot.slane %v986_v24, 4 }
 0x23d   : > { %v993_v28 = vrot.slane %v981_v25, 4  ;;  %v895_v32 = vld [vmem:[#allocation2 + $0x10] sm:$0xff]  ;;  %v996_v42 = vsel %vm557_vm15, %v981_v25, %v995_v29  ;;  %vm1130_vm2 = vcmp.eq.f32.partialorder %v903_v58, 0.0  ;;  %v686_v25 = vrot.slane %v673_v62, 4 }
 0x23e   : > { %v893_v30 = vld [vmem:[#allocation2] sm:$0xff]  ;;  %v1005_v31 = vrot.slane %v992_v27, 4  ;;  %v1008_v44 = vsel %vm557_vm15, %v992_v27, %v1007_v18  ;;  %v1004_v47 = vperm.slane %v996_v42, %v1834_v54 }
 0x23f   : > { %1546 = vmatpush.xpose.msk.msra.mxu2 %vm667_vm1, %v893_v30  ;;  %v994_v33 = vsel %vm557_vm15, %v993_v28, %v975_v13  ;;  %v896_v41 = vld [vmem:[#allocation2 + $0x18] sm:$0xff]  ;;  %v1016_v49 = vperm.slane %v1008_v44, %v1834_v54 }
 0x240   : > { %v894_v36 = vld [vmem:[#allocation2 + $0x8] sm:$0xff]  ;;  %v1000_v37 = vperm.slane %v994_v33, %v1834_v54  ;;  %v1006_v38 = vsel %vm557_vm15, %v1005_v31, %v986_v24  ;;  %v1023_v50 = vrot.slane %v1004_v47, 4 }
 0x241   : > { %1548 = vmatpush.xpose.msk.msra.mxu3 %vm667_vm1, %v894_v36  ;;  %v1012_v39 = vperm.slane %v1006_v38, %v1834_v54  ;;  %v1021_v51 = vrot.slane %v1016_v49, 4 }
 0x242   : > { %v1019_v43 = vrot.slane %v1000_v37, 4  ;;  %v1024_v53 = vsel %vm557_vm15, %v1016_v49, %v1023_v50 }
 0x243   : > { %1550 = vmatpush.xpose.msk.msrb.mxu2 %vm667_vm1, %v895_v32  ;;  %v1017_v45 = vrot.slane %v1012_v39, 4  ;;  %v1022_v55 = vsel %vm557_vm15, %v1021_v51, %v1004_v47 }
 0x244   : > { %v1020_v46 = vsel %vm557_vm15, %v1012_v39, %v1019_v43 }
 0x245   : > { %1552 = vmatpush.xpose.msk.msrb.mxu3 %vm667_vm1, %v896_v41  ;;  %v1018_v48 = vsel %vm557_vm15, %v1017_v45, %v1000_v37 }
 0x246   : > { %1549 = vmatmul.msk.f32.vlgmr.msra.gmra.mxu3 %vm667_vm1, %v1020_v46  ;;  %1547 = vmatmul.msk.f32.vlgmr.msra.gmra.mxu2 %vm667_vm1, %v1018_v48 }
 0x24e   : > { %1553 = vmatmul.msk.f32.vlgmr.msrb.gmra.mxu3 %vm667_vm1, %v1024_v53  ;;  %1551 = vmatmul.msk.f32.vlgmr.msrb.gmra.mxu2 %vm667_vm1, %v1022_v55 }
 0x2c9   : > { %v1075_v59 = vpop.f32.mrf.mxu3  ;;  %v1049_v61 = vpop.f32.mrf.mxu2 }
 0x2ca   : > { %v1134_v63 = vsel %vm1130_vm2, -1e+09, %v1075_v59  ;;  %v1133_v0 = vsel %vm1130_vm2, -1e+09, %v1049_v61 }
 0x2cb   : > { %v1140_v1 = vsel %vm667_vm1, %v1134_v63, -inf  ;;  %v1137_v2 = vsel %vm667_vm1, %v1133_v0, -inf }
 0x2cc   : > { %1141 = vmax.xlane.f32.xlu2 %v1140_v1  ;;  %1138 = vmax.xlane.f32.xlu1 %v1137_v2 }
 0x2d1   : > { %v1127_v3 = vpop.f32.mrf.mxu3  ;;  %v1101_v4 = vpop.f32.mrf.mxu2 }
 0x2d2   : > { %v1136_v5 = vsel %vm1130_vm2, -1e+09, %v1127_v3  ;;  %v1135_v6 = vsel %vm1130_vm2, -1e+09, %v1101_v4 }
 0x2d3   : > { %v1146_v7 = vsel %vm667_vm1, %v1136_v5, -inf  ;;  %v1143_v8 = vsel %vm667_vm1, %v1135_v6, -inf }
 0x2d4   : > { %1147 = vmax.xlane.f32.xlu0 %v1146_v7  ;;  %1144 = vmax.xlane.f32.xlu2 %v1143_v8 }
 0x2e5   : > { %676 = vrot.lane.b32.xlu1 %v1819_v35, %s1661_s12 }
 0x2e8   : > { %678 = vrot.lane.b32.xlu0 %v1831_v52, %s1661_s12 }
 0x2ec   : > { %674 = vrot.lane.b32.xlu2 %v1817_v34, %s1661_s12 }
 0x33f   : > { %v1142_v60 = vpop.xlane.xlu2 %1141  ;;  %v1139_v9 = vpop.xlane.xlu1 %1138 }
 0x340   : > { %v1149_v10 = vsub.f32 %v1133_v0, %v1139_v9  ;;  %v1150_v35 = vsub.f32 %v1134_v63, %v1142_v60 }
 0x342   : > { %v1153_v11 = vmul.f32 1.442695, %v1149_v10  ;;  %v1155_v34 = vmul.f32 1.442695, %v1150_v35 }
 0x344   : > { %1615 = vpow2.f32 %v1153_v11 }
 0x347   : > { %v1148_v12 = vpop.xlane.xlu0 %1147  ;;  %v1145_v14 = vpop.xlane.xlu2 %1144 }
 0x348   : > { %v1152_v15 = vsub.f32 %v1136_v5, %v1148_v12  ;;  %v1151_v16 = vsub.f32 %v1135_v6, %v1145_v14 }
 0x34a   : > { %v1159_v17 = vmul.f32 1.442695, %v1152_v15  ;;  %v1938_v19 = vpop.eup %1615  ;;  %v1157_v20 = vmul.f32 1.442695, %v1151_v16 }
 0x34b   : > { %v1161_v52 = vsel %vm667_vm1, %v1938_v19, 0.0 }
 0x34c   : > { %1617 = vpow2.f32 %v1159_v17  ;;  %1162 = vadd.xlane.f32.xlu1 %v1161_v52 }
 0x34d   : > { %1619 = vpow2.f32 %v1157_v20 }
 0x34e   : > { %1621 = vpow2.f32 %v1155_v34 }
 0x34f   : > { %v675_v24 = vpop.permute.xlu2 %674 }
 0x350   : > { %v698_v28 = vrot.slane %v675_v24, 4 }
 0x352   : > { %v1942_v21 = vpop.eup %1617 }
 0x353   : > { %v1944_v13 = vpop.eup %1619  ;;  %v1170_v22 = vsel %vm667_vm1, %v1942_v21, 0.0 }
 0x354   : > { %v1167_v23 = vsel %vm667_vm1, %v1944_v13, 0.0  ;;  %1171 = vadd.xlane.f32.xlu0 %v1170_v22  ;;  %v1950_v27 = vpop.eup %1621 }
 0x355   : > { %1168 = vadd.xlane.f32.xlu2 %v1167_v23  ;;  %v1164_v41 = vsel %vm667_vm1, %v1950_v27, 0.0 }
 0x357   : > { %v677_v26 = vpop.permute.xlu1 %676 }
 0x358   : > { %v684_v29 = vrot.slane %v677_v26, 4  ;;  %v687_v30 = vsel %vm557_vm15, %v677_v26, %v686_v25 }
 0x359   : > { %v695_v31 = vperm.slane %v687_v30, %v1822_v40 }
 0x35a   : > { %v679_v18 = vpop.permute.xlu0 %678  ;;  %v685_v32 = vsel %vm557_vm15, %v684_v29, %v673_v62 }
 0x35b   : > { %v696_v33 = vrot.slane %v679_v18, 4  ;;  %v699_v36 = vsel %vm557_vm15, %v679_v18, %v698_v28  ;;  %v691_v37 = vperm.slane %v685_v32, %v1822_v40  ;;  %v722_v38 = vrot.slane %v695_v31, 4 }
 0x35c   : > { %v707_v39 = vperm.slane %v699_v36, %v1822_v40 }
 0x35d   : > { %v697_v42 = vsel %vm557_vm15, %v696_v33, %v675_v24  ;;  %1165 = vadd.xlane.f32.xlu2 %v1164_v41  ;;  %v710_v43 = vrot.slane %v691_v37, 4 }
 0x35e   : > { %v703_v44 = vperm.slane %v697_v42, %v1822_v40  ;;  %v720_v45 = vrot.slane %v707_v39, 4  ;;  %v723_v46 = vsel %vm557_vm15, %v707_v39, %v722_v38 }
 0x35f   : > { %v731_v47 = vperm.slane %v723_v46, %v1834_v54 }
 0x360   : > { %v708_v48 = vrot.slane %v703_v44, 4  ;;  %v711_v49 = vsel %vm557_vm15, %v703_v44, %v710_v43  ;;  %v721_v50 = vsel %vm557_vm15, %v720_v45, %v695_v31 }
 0x361   : > { %v719_v51 = vperm.slane %v711_v49, %v1834_v54  ;;  %v727_v53 = vperm.slane %v721_v50, %v1834_v54  ;;  %v738_v55 = vrot.slane %v731_v47, 4 }
 0x362   : > { %v709_v56 = vsel %vm557_vm15, %v708_v48, %v691_v37 }
 0x363   : > { %v715_v57 = vperm.slane %v709_v56, %v1834_v54  ;;  %v734_v58 = vrot.slane %v719_v51, 4  ;;  %v736_v59 = vrot.slane %v727_v53, 4  ;;  %v739_v61 = vsel %vm557_vm15, 0.0, %v738_v55 }
 0x364   : > { %v751_v63 = vsel %vm557_vm15, %v738_v55, %v727_v53  ;;  %v756_v0 = vrot.slane %v739_v61, 4 }
 0x365   : > { %v732_v1 = vrot.slane %v715_v57, 4  ;;  %v735_v2 = vsel %vm557_vm15, 0.0, %v734_v58  ;;  %v737_v3 = vsel %vm557_vm15, 0.0, %v736_v59  ;;  %v740_v4 = vsel %vm557_vm15, %v734_v58, %v715_v57 }
 0x366   : > { %v744_v5 = vperm.slane %v740_v4, %v1822_v40  ;;  %v745_v6 = vrot.slane %v735_v2, 4  ;;  %v755_v7 = vperm.slane %v751_v63, %v1822_v40  ;;  %v757_v8 = vsel %vm557_vm15, %v756_v0, %v737_v3 }
 0x367   : > { %v733_v62 = vsel %vm557_vm15, 0.0, %v732_v1  ;;  %v761_v60 = vperm.slane %v757_v8, %v1822_v40 }
 0x368   : > { %v746_v9 = vsel %vm557_vm15, %v745_v6, %v733_v62  ;;  %v764_v10 = vrot.slane %v744_v5, 4  ;;  %v776_v11 = vrot.slane %v755_v7, 4 }
 0x369   : > { %v750_v12 = vperm.slane %v746_v9, %v1822_v40  ;;  %v774_v14 = vrot.slane %v761_v60, 4 }
 0x36a   : > { %v777_v15 = vsel %vm557_vm15, %v761_v60, %v776_v11 }
 0x36b   : > { %v762_v16 = vrot.slane %v750_v12, 4  ;;  %v765_v17 = vsel %vm557_vm15, %v750_v12, %v764_v10  ;;  %v775_v35 = vsel %vm557_vm15, %v774_v14, %v755_v7  ;;  %v785_v20 = vperm.slane %v777_v15, %v1834_v54 }
 0x36c   : > { %v773_v52 = vperm.slane %v765_v17, %v1834_v54  ;;  %v781_v34 = vperm.slane %v775_v35, %v1834_v54 }
 0x36d   : > { %v763_v22 = vsel %vm557_vm15, %v762_v16, %v744_v5  ;;  %v790_v23 = vrot.slane %v785_v20, 4 }
 0x36e   : > { %v769_v24 = vperm.slane %v763_v22, %v1834_v54  ;;  %v786_v25 = vrot.slane %v781_v34, 4  ;;  %v792_v26 = vrot.slane %v773_v52, 4 }
 0x36f   : > { %v791_v28 = vsel %vm557_vm15, %v790_v23, %v773_v52 }
 0x370   : > { %v787_v29 = vsel %vm557_vm15, %v786_v25, %v769_v24  ;;  %v788_v30 = vrot.slane %v769_v24, 4  ;;  %v793_v31 = vsel %vm557_vm15, %v785_v20, %v792_v26  ;;  %796 = vst.msk [vmem:[#allocation3 + $0x10] sm:$0xff] %vm667_vm1, %v791_v28 }
 0x371   : > { %794 = vst.msk [vmem:[#allocation3] sm:$0xff] %vm667_vm1, %v787_v29 }
 0x372   : > { %v789_v18 = vsel %vm557_vm15, %v781_v34, %v788_v30  ;;  %797 = vst.msk [vmem:[#allocation3 + $0x18] sm:$0xff] %vm667_vm1, %v793_v31 }
 0x373   : > { %795 = vst.msk [vmem:[#allocation3 + $0x8] sm:$0xff] %vm667_vm1, %v789_v18 }
 0x377   : > { %v899_v32 = vld [vmem:[#allocation3 + $0x10] sm:$0xff] }
 0x378   : > { %1245 = vmatpush.msra.mxu2 %v899_v32  ;;  %v897_v33 = vld [vmem:[#allocation3] sm:$0xff] }
 0x379   : > { %1199 = vmatpush.msrb.mxu0 %v897_v33  ;;  %v900_v36 = vld [vmem:[#allocation3 + $0x18] sm:$0xff] }
 0x37a   : > { %1268 = vmatpush.msra.mxu3 %v900_v36  ;;  %v898_v37 = vld [vmem:[#allocation3 + $0x8] sm:$0xff] }
 0x37b   : > { %1222 = vmatpush.msrb.mxu1 %v898_v37 }
 0x3bf   : > { %v1163_v38 = vpop.xlane.xlu1 %1162 }
 0x3c0   : > { %1623 = vrcp.f32 %v1163_v38 }
 0x3c6   : > { %v1624_v39 = vpop.eup %1623 }
 0x3c7   : > { %v1172_v41 = vpop.xlane.xlu0 %1171  ;;  %v1177_v43 = vmul.f32 %v1624_v39, %v1938_v19 }
 0x3c8   : > { %v1169_v42 = vpop.xlane.xlu2 %1168  ;;  %1625 = vrcp.f32 %v1172_v41 }
 0x3c9   : > { %1627 = vrcp.f32 %v1169_v42  ;;  %1554 = vmatmul.msk.f32.vlgmr.msrb.gmra.mxu0 %vm667_vm1, %v1177_v43 }
 0x3ce   : > { %v1626_v44 = vpop.eup %1625 }
 0x3cf   : > { %v1628_v45 = vpop.eup %1627  ;;  %v1180_v46 = vmul.f32 %v1626_v44, %v1942_v21 }
 0x3d0   : > { %v1179_v47 = vmul.f32 %v1628_v45, %v1944_v13  ;;  %v1166_v48 = vpop.xlane.xlu2 %1165 }
 0x3d1   : > { %1629 = vrcp.f32 %v1166_v48  ;;  %1557 = vmatmul.msk.f32.vlgmr.msra.gmra.mxu3 %vm667_vm1, %v1180_v46 }
 0x3d2   : > { %1556 = vmatmul.msk.f32.vlgmr.msra.gmra.mxu2 %vm667_vm1, %v1179_v47 }
 0x3d7   : > { %v1630_v49 = vpop.eup %1629 }
 0x3d8   : > { %v1178_v50 = vmul.f32 %v1630_v49, %v1950_v27 }
 0x3da   : > { %1555 = vmatmul.msk.f32.vlgmr.msrb.gmra.mxu1 %vm667_vm1, %v1178_v50 }
 0x446   : > { %v1201_v19 = vpop.f32.mrf.mxu0 }
 0x447   : > { %v1275_v51 = vrot.slane %v1201_v19, 4 }
 0x454   : > { %v1270_v53 = vpop.f32.mrf.mxu3 }
 0x455   : > { %v1247_v55 = vpop.f32.mrf.mxu2  ;;  %v1285_v56 = vrot.slane %v1270_v53, 4 }
 0x456   : > { %v1273_v57 = vrot.slane %v1247_v55, 4  ;;  %v1276_v21 = vsel %vm557_vm15, %v1247_v55, %v1275_v51  ;;  %v1402_v55 = vld [vmem:[%s2086_s8 + $0x10] sm:$0xff] }
 0x457   : > { %v1284_v13 = vperm.slane %v1276_v21, %v1822_v40  ;;  %v1224_v58 = vpop.f32.mrf.mxu1 }
 0x458   : > { %v1274_v59 = vsel %vm557_vm15, %v1273_v57, %v1201_v19  ;;  %v1286_v61 = vsel %vm557_vm15, %v1285_v56, %v1224_v58  ;;  %v1287_v63 = vrot.slane %v1224_v58, 4  ;;  %v1401_v56 = vld [vmem:[%s2086_s8 + $0x8] sm:$0xff]  ;;  %v1400_v57 = vld [vmem:[%s2086_s8] sm:$0xff] }
 0x459   : > { %v1280_v27 = vperm.slane %v1274_v59, %v1822_v40  ;;  %v1292_v0 = vperm.slane %v1286_v61, %v1822_v40  ;;  %v1311_v3 = vrot.slane %v1284_v13, 4 }
 0x45a   : > { %v1288_v1 = vsel %vm557_vm15, %v1270_v53, %v1287_v63 }
 0x45b   : > { %v1299_v2 = vrot.slane %v1280_v27, 4  ;;  %v1296_v4 = vperm.slane %v1288_v1, %v1822_v40  ;;  %v1297_v5 = vrot.slane %v1292_v0, 4 }
 0x45d   : > { %v1298_v6 = vsel %vm557_vm15, %v1297_v5, %v1280_v27  ;;  %v1300_v7 = vsel %vm557_vm15, %v1292_v0, %v1299_v2  ;;  %v1309_v8 = vrot.slane %v1296_v4, 4  ;;  %v1312_v62 = vsel %vm557_vm15, %v1296_v4, %v1311_v3  ;;  %v1602_v27 = vld [vmem:[%s2087_s9] ss:$0 sm:$0xff] }
 0x45e   : > { %v1304_v60 = vperm.slane %v1298_v6, %v1834_v54  ;;  %v1308_v9 = vperm.slane %v1300_v7, %v1834_v54  ;;  %v1320_v10 = vperm.slane %v1312_v62, %v1834_v54  ;;  %v1631_v2 = vld [vmem:[%s1756_s27] sm:$0xff] }
 0x45f   : > { %v1310_v11 = vsel %vm557_vm15, %v1309_v8, %v1284_v13 }
 0x460   : > { %v1316_v12 = vperm.slane %v1310_v11, %v1834_v54  ;;  %v1321_v14 = vrot.slane %v1304_v60, 4  ;;  %v1323_v15 = vrot.slane %v1308_v9, 4  ;;  %v1327_v16 = vrot.slane %v1320_v10, 4 }
 0x462   : > { %v1324_v17 = vsel %vm557_vm15, 0.0, %v1323_v15  ;;  %v1325_v35 = vrot.slane %v1316_v12, 4  ;;  %v1328_v20 = vsel %vm557_vm15, 0.0, %v1327_v16  ;;  %v1329_v52 = vsel %vm557_vm15, %v1323_v15, %v1304_v60 }
 0x463   : > { %v1334_v34 = vrot.slane %v1324_v17, 4  ;;  %v1345_v22 = vrot.slane %v1328_v20, 4  ;;  %v1340_v23 = vsel %vm557_vm15, %v1327_v16, %v1316_v12  ;;  %v1322_v24 = vsel %vm557_vm15, 0.0, %v1321_v14 }
 0x464   : > { %v1333_v25 = vperm.slane %v1329_v52, %v1822_v40  ;;  %v1326_v26 = vsel %vm557_vm15, 0.0, %v1325_v35  ;;  %v1344_v28 = vperm.slane %v1340_v23, %v1822_v40 }
 0x465   : > { %v1335_v29 = vsel %vm557_vm15, %v1334_v34, %v1322_v24  ;;  %v1346_v30 = vsel %vm557_vm15, %v1345_v22, %v1326_v26 }
 0x466   : > { %v1339_v31 = vperm.slane %v1335_v29, %v1822_v40  ;;  %v1350_v18 = vperm.slane %v1346_v30, %v1822_v40  ;;  %v1353_v32 = vrot.slane %v1333_v25, 4  ;;  %v1365_v33 = vrot.slane %v1344_v28, 4 }
 0x468   : > { %v1354_v36 = vsel %vm557_vm15, %v1339_v31, %v1353_v32  ;;  %v1366_v37 = vsel %vm557_vm15, %v1350_v18, %v1365_v33  ;;  %v1351_v38 = vrot.slane %v1339_v31, 4  ;;  %v1363_v39 = vrot.slane %v1350_v18, 4 }
 0x469   : > { %v1362_v41 = vperm.slane %v1354_v36, %v1834_v54  ;;  %v1374_v42 = vperm.slane %v1366_v37, %v1834_v54 }
 0x46a   : > { %v1352_v43 = vsel %vm557_vm15, %v1351_v38, %v1333_v25  ;;  %v1364_v44 = vsel %vm557_vm15, %v1363_v39, %v1344_v28 }
 0x46b   : > { %v1381_v45 = vrot.slane %v1362_v41, 4  ;;  %v1379_v46 = vrot.slane %v1374_v42, 4  ;;  %v1358_v40 = vperm.slane %v1352_v43, %v1834_v54  ;;  %v1370_v47 = vperm.slane %v1364_v44, %v1834_v54  ;;  %v1403_v54 = vld [vmem:[%s2086_s8 + $0x18] sm:$0xff] }
 0x46c   : > { %1423 = vmatpush.msra.mxu0 %v1403_v54 }
 0x46d   : > { %v1382_v48 = vsel %vm557_vm15, %v1374_v42, %v1381_v45  ;;  %v1380_v49 = vsel %vm557_vm15, %v1379_v46, %v1362_v41  ;;  %v1375_v50 = vrot.slane %v1370_v47, 4  ;;  %v1377_v19 = vrot.slane %v1358_v40, 4 }
 0x46e   : > { %1392 = vrot.lane.b32.xlu2 %v1382_v48, %s1664_s15  ;;  %1388 = vrot.lane.b32.xlu1 %v1380_v49, %s1665_s16  ;;  %s446_s16 = scalar_lea.vmem %s2089_s11, %s1745_s21 }
 0x46f   : > { %v1378_v51 = vsel %vm557_vm15, %v1370_v47, %v1377_v19  ;;  %v1376_v53 = vsel %vm557_vm15, %v1375_v50, %v1358_v40  ;;  %1424 = vmatpush.msra.mxu0 %v1402_v55 }
 0x470   : > { %1384 = vrot.lane.b32.xlu0 %v1378_v51, %s1666_s17 }
 0x471   : > { %1425 = vmatpush.msra.mxu0 %v1401_v56 }
 0x473   : > { %1426 = vmatpush.msra.mxu0 %v1400_v57 }
 0x4c8   : > { %v1393_v59 = vpop.permute.xlu2 %1392 }
 0x4e0   : > { %v1389_v13 = vpop.permute.xlu1 %1388 }
 0x4e2   : > { %v1385_v21 = vpop.permute.xlu0 %1384 }
 0x4e3   : > { %v1395_v58 = vsel %vm667_vm1, %v1376_v53, %v1385_v21 }
 0x4e4   : > { %v1397_v61 = vsel %vm1396_vm3, %v1395_v58, %v1389_v13 }
 0x4e5   : > { %v1399_v63 = vsel %vm1398_vm4, %v1397_v61, %v1393_v59 }
 0x4e6   : > { %1558 = vmatmul.msk.f32.vlgmr.msra.gmra.mxu0 %vm454_vm0, %v1399_v63 }
 0x563   : > { %v1428_v0 = vpop.f32.mrf.mxu0 }
 0x564   : > { %v1429_v1 = vadd.f32 %v1602_v27, %v1428_v0 }
 0x566   : > { %v1431_v3 = vadd.f32 %v1631_v2, %v1429_v1 }
 0x568   : > { %1432 = vst.msk [vmem:[%s446_s16] sm:$0xff] %vm454_vm0, %v1431_v3 }
 0x569 PF: > { %s21_s19 = sadd.s32 1, %s1654_s19   ;;  %s2090_s17 = smov %s1650_s18 }
 0x56a   : > { %p18_p5 = scmp.ge.s32.totalorder %s21_s19, 4   ;;  %s2091_s18 = smov %s2093_s20 }
 0x56c   :  { %20 = sbr.rel (!%p18_p5) target bundleno = 2 (0x2), region = 104 }

// kernel: decoder_forward.8
= control target key start
LH: loop header
LB: loop body
LE: loop exit
PB: predicated region body
PF: predicated region fallthrough
CT: control target
= control target key end

     0   :  { %s1650_s17 = smov 0   ;;  %s1652_s18 = smov 0   ;;  %s2002_s0 = inlined_call_operand.vmem [shape: f32[2,8,32], index: 0, kind: input, shape index: {}, may-alias: {0,11}]   ;;  %s2003_s1 = inlined_call_operand.vmem [shape: f32[2,8,32], index: 1, kind: input, shape index: {}]   ;;  %s2004_s2 = inlined_call_operand.vmem [shape: f32[1,32], index: 2, kind: input, shape index: {}]   ;;  %s2005_s3 = inlined_call_operand.vmem [shape: f32[1,32], index: 3, kind: input, shape index: {}]   ;;  %s2006_s4 = inlined_call_operand.vmem [shape: f32[32,32], index: 4, kind: input, shape index: {}]   ;;  %s2007_s5 = inlined_call_operand.vmem [shape: f32[1,32], index: 5, kind: input, shape index: {}]   ;;  %s2008_s6 = inlined_call_operand.vmem [shape: f32[32,64], index: 6, kind: input, shape index: {}]   ;;  %s2009_s7 = inlined_call_operand.vmem [shape: f32[1,64], index: 7, kind: input, shape index: {}]   ;;  %s2010_s8 = inlined_call_operand.vmem [shape: f32[32,32], index: 8, kind: input, shape index: {}]   ;;  %s2011_s9 = inlined_call_operand.vmem [shape: f32[1,32], index: 9, kind: input, shape index: {}]   ;;  %s2012_s10 = inlined_call_operand.vmem [shape: s8[2,1,8], index: 10, kind: input, shape index: {}]   ;;  %s2013_s11 = inlined_call_operand.vmem [shape: f32[2,8,32], index: 11, kind: output, shape index: {}, may-alias: {0,11}]  }
   0x1   :  { %s1654_s19 = smov 0  }
   0x2 LB: > { %s33_s20 = sadd.s32 1, %s1572_s18  ;;  %p1468_p0 = scmp.ge.s32.totalorder %s1576_s19, 1  ;;  %s1576_s19 = sphi %s1654_s19, %s21_s19   ;;  %s1572_s18 = sphi %s1652_s18, %s2015_s18   ;;  %s1568_s17 = sphi %s1650_s17, %s2014_s17  }
   0x3   : > { %p35_p1 = scmp.ge.s32.totalorder %s33_s20, 2  ;;  %p372_p2 = scmp.lt.s32.totalorder %s1576_s19, 3 }
   0x5   : > { %s2017_s20 = smov (%p35_p1, %s33_s20), 0  ;;  %p373_p3 = pnand %p1468_p0, %p372_p2 }
   0x6   : > { %p423_p4 = scmp.lt.s32.totalorder (!%p373_p3), %s1568_s17, 1  ;;  %s1580_s28 = smov (!%p373_p3), 120  }
   0x7   : > { %376 = sbr.rel (%p373_p3) target bundleno = 1371 (0x55b), region = 64  ;;  %s1581_s12 = smov (!%p373_p3), 104  }
   0x8   : > { %s1582_s15 = smov (!%p373_p3), 112   ;;  %s1585_s27 = smov (!%p373_p3), 96  }
   0x9   : > { %s1589_s13 = smov (!%p373_p3), 8  }
   0xc   : > { %s2019_s17 = smov (!%p423_p4, %s1568_s17), 1  ;;  %vm457_vm0 = vcmask 261120   ;;  %v1578_v2 = vmov 32.0   ;;  %v452_v3 = vld [vmem:[%s2008_s6 + $0x18] sm:$0xff]  ;;  %v451_v4 = vld [vmem:[%s2008_s6 + $0x10] sm:$0xff]  ;;  %v450_v5 = vld [vmem:[%s2008_s6 + $0x8] sm:$0xff] }
   0xd   : > { %s1671_s21 = sshll.u32 %s2019_s17, 3  ;;  %1530 = vrcp.f32 %v1578_v2  ;;  %473 = vmatpush.msra.mxu0 %v452_v3  ;;  %v449_v7 = vld [vmem:[%s2008_s6] sm:$0xff]  ;;  %v1579_v19 = vmov 31.0   ;;  %v800_v26 = vld [vmem:[%s2006_s4 + $0x18] sm:$0xff]  ;;  %v799_v27 = vld [vmem:[%s2006_s4 + $0x10] sm:$0xff]  ;;  %vm492_vm9 = vcmask 1047556   ;;  %s436_s30 = scalar_lea.vmem %s2012_s10, %s2019_s17 }
   0xe   : > { %s429_s24 = scalar_lea.vmem %s2002_s0, %s1671_s21  ;;  %s433_s14 = scalar_lea.vmem %s2003_s1, %s1671_s21  ;;  %1532 = vrcp.f32 %v1579_v19  ;;  %v1526_v23 = vld [vmem:[%s2009_s7] ss:$0 sm:$0xff]  ;;  %820 = vmatpush.msra.mxu1 %v800_v26  ;;  %v798_v29 = vld [vmem:[%s2006_s4 + $0x8] sm:$0xff]  ;;  %v1583_v62 = vmov 1983009808   ;;  %vm602_vm10 = vcmask 64512  }
   0xf   : > { %v1677_v0 = vld [vmem:[%s429_s24] sm:$0xff]  ;;  %474 = vmatpush.msra.mxu0 %v451_v4  ;;  %v497_v63 = vunpack.c.l.s4 %v1583_v62  ;;  %s1587_s17 = smov 24   ;;  %vm1332_vm13 = vcmask 130048   ;;  %vm1334_vm14 = vcmask 195584  }
  0x10   : > { %v737_v1 = vsel %vm457_vm0, %v1677_v0, 0.0  ;;  %v448_v8 = vld [vmem:[%s433_s14] sm:$0xff]  ;;  %821 = vmatpush.msra.mxu1 %v799_v27 }
  0x11   : > { %738 = vadd.xlane.f32.xlu0 %v737_v1  ;;  %475 = vmatpush.msra.mxu0 %v450_v5  ;;  %v797_v30 = vld [vmem:[%s2006_s4] sm:$0xff]  ;;  %v1736_v4 = vunpack.c.0.s8 %v497_v63 }
  0x12   : > { %822 = vmatpush.msra.mxu1 %v798_v29  ;;  %v1525_v50 = vld [vmem:[%s2004_s2] ss:$0 sm:$0xff] }
  0x13   : > { %v1531_v6 = vpop.eup %1530  ;;  %476 = vmatpush.msra.mxu0 %v449_v7  ;;  %v1527_v57 = vld [vmem:[%s2005_s3] ss:$0 sm:$0xff] }
  0x14   : > { %v741_v9 = vmul.f32 32.0, %v1531_v6  ;;  %1472 = vmatmul.msk.f32.vlgmr.msra.gmra.mxu0 %vm457_vm0, %v448_v8  ;;  %vm745_vm1 = vweird.f32 %v1531_v6  ;;  %v1533_v20 = vpop.eup %1532  ;;  %823 = vmatpush.msra.mxu1 %v797_v30 }
  0x15   : > { %v754_v21 = vmul.f32 31.0, %v1533_v20  ;;  %vm758_vm2 = vweird.f32 %v1533_v20 }
  0x16   : > { %v742_v10 = vsub.f32 1.0, %v741_v9 }
  0x17   : > { %v755_v22 = vsub.f32 1.0, %v754_v21 }
  0x18   : > { %v743_v11 = vmul.f32 %v1531_v6, %v742_v10  ;;  %v1584_v10 = vmov 1934713408  }
  0x19   : > { %v756_v28 = vmul.f32 %v1533_v20, %v755_v22 }
  0x1a   : > { %v744_v12 = vadd.f32 %v1531_v6, %v743_v11  ;;  %v521_v11 = vunpack.c.l.s4 %v1584_v10 }
  0x1b   : > { %v757_v31 = vadd.f32 %v1533_v20, %v756_v28 }
  0x1c   : > { %v746_v13 = vsel %vm745_vm1, %v1531_v6, %v744_v12  ;;  %v1753_v19 = vunpack.c.0.s8 %v521_v11 }
  0x1d   : > { %v759_v32 = vsel %vm758_vm2, %v1533_v20, %v757_v31 }
  0x84   : > { %v739_v14 = vpop.xlane.xlu0 %738 }
  0x85   : > { %v747_v15 = vmul.f32 %v746_v13, %v739_v14 }
  0x87   : > { %v748_v16 = vsub.f32 %v1677_v0, %v747_v15 }
  0x89   : > { %v749_v17 = vmul.f32 %v748_v16, %v748_v16  ;;  %v764_v55 = vmul.f32 %v1525_v50, %v748_v16 }
  0x8b   : > { %v750_v18 = vsel %vm457_vm0, %v749_v17, 0.0 }
  0x8c   : > { %751 = vadd.xlane.f32.xlu0 %v750_v18 }
  0x91   : > { %v478_v24 = vpop.f32.mrf.mxu0 }
  0x92   : > { %v1703_v25 = vadd.f32 %v1526_v23, %v478_v24 }
  0x94   : > { %482 = vrot.lane.b32.xlu1 %v1703_v25, %s1580_s28  ;;  %488 = vrot.lane.b32.xlu2 %v1703_v25, %s1581_s12  ;;  %v494_v8 = vrot.slane %v1703_v25, 4 }
  0x9c   : > { %485 = vrot.lane.b32.xlu1 %v1703_v25, %s1582_s15 }
  0xee   : > { %v1730_v61 = vpop.permute.xlu2 %488 }
  0xef   : > { %v504_v1 = vrot.slane %v1730_v61, 4 }
  0xff   : > { %v752_v33 = vpop.xlane.xlu0 %751 }
 0x100   : > { %v760_v34 = vmul.f32 %v759_v32, %v752_v33 }
 0x102   : > { %1534 = vrsqrt.f32 %v760_v34  ;;  %vm772_vm3 = vcmp.eq.f32.partialorder %v760_v34, inf  ;;  %v775_v42 = vand.u32 2147483648, %v760_v34  ;;  %vm774_vm4 = vcmp.eq.f32.partialorder %v760_v34, 0.0 }
 0x106   : > { %v1733_v2 = vpop.permute.xlu1 %482 }
 0x107   : > { %v506_v3 = vrot.slane %v1733_v2, 4  ;;  %v505_v5 = vsel %vm492_vm9, %v504_v1, %v1733_v2 }
 0x108   : > { %v1535_v35 = vpop.eup %1534  ;;  %v511_v9 = vperm.slane %v505_v5, %v1736_v4 }
 0x109   : > { %v766_v36 = vmul.f32 %v1535_v35, %v760_v34  ;;  %v507_v6 = vsel %vm492_vm9, %v1730_v61, %v506_v3 }
 0x10a   : > { %v515_v7 = vperm.slane %v507_v6, %v1736_v4  ;;  %v516_v17 = vrot.slane %v511_v9, 4 }
 0x10b   : > { %v767_v37 = vmul.f32 %v1535_v35, %v766_v36 }
 0x10c   : > { %v528_v13 = vrot.slane %v515_v7, 4 }
 0x10d   : > { %v768_v38 = vmul.f32 0.5, %v767_v37 }
 0x10e   : > { %v1745_v12 = vpop.permute.xlu1 %485 }
 0x10f   : > { %v769_v39 = vsub.f32 1.5, %v768_v38  ;;  %v491_v14 = vrot.slane %v1745_v12, 4  ;;  %v495_v15 = vsel %vm492_vm9, %v1745_v12, %v494_v8 }
 0x110   : > { %v503_v16 = vperm.slane %v495_v15, %v1736_v4  ;;  %v1528_v15 = vld [vmem:[%s2007_s5] ss:$0 sm:$0xff] }
 0x111   : > { %v770_v40 = vmul.f32 %v1535_v35, %v769_v39  ;;  %v493_v18 = vsel %vm492_vm9, %v491_v14, %v1703_v25 }
 0x112   : > { %v499_v20 = vperm.slane %v493_v18, %v1736_v4  ;;  %v530_v21 = vrot.slane %v503_v16, 4  ;;  %v529_v22 = vsel %vm492_vm9, %v528_v13, %v503_v16 }
 0x113   : > { %v771_v41 = vmul.f32 %v770_v40, %v760_v34  ;;  %v535_v23 = vperm.slane %v529_v22, %v1753_v19 }
 0x114   : > { %v518_v24 = vrot.slane %v499_v20, 4  ;;  %v517_v26 = vsel %vm492_vm9, %v516_v17, %v499_v20  ;;  %v531_v27 = vsel %vm492_vm9, %v515_v7, %v530_v21 }
 0x115   : > { %v773_v43 = vsel %vm772_vm3, %v760_v34, %v771_v41  ;;  %v523_v28 = vperm.slane %v517_v26, %v1753_v19  ;;  %v539_v29 = vperm.slane %v531_v27, %v1753_v19  ;;  %v544_v30 = vrot.slane %v535_v23, 4 }
 0x116   : > { %v776_v44 = vsel %vm774_vm4, %v775_v42, %v773_v43  ;;  %v519_v31 = vsel %vm492_vm9, %v511_v9, %v518_v24 }
 0x117   : > { %v777_v45 = vadd.f32 1e-06, %v776_v44  ;;  %v527_v32 = vperm.slane %v519_v31, %v1753_v19  ;;  %v540_v33 = vrot.slane %v523_v28, 4  ;;  %v546_v34 = vrot.slane %v539_v29, 4 }
 0x118   : > { %v545_v36 = vsel %vm492_vm9, 0.0, %v544_v30 }
 0x119   : > { %1536 = vrcp.f32 %v777_v45  ;;  %v789_v49 = vand.u32 2147483648, %v777_v45  ;;  %v787_v52 = vand.u32 2147483647, %v777_v45  ;;  %vm783_vm6 = vweird.f32 %v777_v45 }
 0x11a   : > { %v542_v35 = vrot.slane %v527_v32, 4  ;;  %v547_v37 = vsel %vm492_vm9, 0.0, %v546_v34  ;;  %v559_v38 = vsel %vm492_vm9, %v546_v34, %v535_v23  ;;  %v541_v41 = vsel %vm492_vm9, 0.0, %v540_v33 }
 0x11b   : > { %v790_v54 = vor.u32 1.1754944e-38, %v789_v49  ;;  %vm788_vm8 = vcmp.eq.f32.partialorder %v787_v52, 8.507059e+37  ;;  %v563_v39 = vperm.slane %v559_v38, %v1736_v4  ;;  %v564_v40 = vrot.slane %v547_v37, 4 }
 0x11c   : > { %v543_v42 = vsel %vm492_vm9, 0.0, %v542_v35  ;;  %v548_v43 = vsel %vm492_vm9, %v542_v35, %v523_v28 }
 0x11d   : > { %v552_v44 = vperm.slane %v548_v43, %v1736_v4 }
 0x11f   : > { %v1537_v46 = vpop.eup %1536  ;;  %v572_v50 = vrot.slane %v552_v44, 4 }
 0x120   : > { %v779_v47 = vmul.f32 %v1537_v46, %v777_v45  ;;  %vm784_vm5 = vweird.f32 %v1537_v46  ;;  %v553_v45 = vrot.slane %v543_v42, 4 }
 0x121   : > { %vm785_vm7 = vmor %vm783_vm6, %vm784_vm5 }
 0x122   : > { %v780_v48 = vsub.f32 1.0, %v779_v47  ;;  %v584_v47 = vrot.slane %v563_v39, 4  ;;  %v554_v49 = vsel %vm492_vm9, %v553_v45, %v541_v41 }
 0x124   : > { %v781_v51 = vmul.f32 %v1537_v46, %v780_v48 }
 0x126   : > { %v782_v53 = vadd.f32 %v1537_v46, %v781_v51  ;;  %v558_v51 = vperm.slane %v554_v49, %v1736_v4 }
 0x128   : > { %v786_v56 = vsel %vm785_vm7, %v1537_v46, %v782_v53  ;;  %v565_v46 = vsel %vm492_vm9, %v564_v40, %v545_v36 }
 0x129   : > { %v791_v58 = vsel %vm788_vm8, %v790_v54, %v786_v56  ;;  %v569_v48 = vperm.slane %v565_v46, %v1736_v4  ;;  %v573_v56 = vsel %vm492_vm9, %v558_v51, %v572_v50 }
 0x12a   : > { %v792_v59 = vmul.f32 %v791_v58, %v764_v55  ;;  %v570_v55 = vrot.slane %v558_v51, 4  ;;  %v581_v58 = vperm.slane %v573_v56, %v1753_v19 }
 0x12b   : > { %v582_v52 = vrot.slane %v569_v48, 4  ;;  %v585_v53 = vsel %vm492_vm9, %v569_v48, %v584_v47 }
 0x12c   : > { %v796_v60 = vadd.f32 %v1527_v57, %v792_v59  ;;  %v593_v54 = vperm.slane %v585_v53, %v1753_v19  ;;  %v571_v62 = vsel %vm492_vm9, %v570_v55, %v552_v44  ;;  %v600_v5 = vrot.slane %v581_v58, 4 }
 0x12d   : > { %v583_v57 = vsel %vm492_vm9, %v582_v52, %v563_v39  ;;  %v577_v63 = vperm.slane %v571_v62, %v1753_v19 }
 0x12e   : > { %1473 = vmatmul.msk.f32.vlgmr.msra.gmra.mxu1 %vm457_vm0, %v796_v60  ;;  %v589_v59 = vperm.slane %v583_v57, %v1753_v19  ;;  %v598_v60 = vrot.slane %v593_v54, 4  ;;  %v601_v8 = vsel %vm492_vm9, %v593_v54, %v600_v5 }
 0x12f   : > { %v596_v7 = vrot.slane %v577_v63, 4  ;;  %606 = vst.msk [vmem:[#allocation2 + $0x18] sm:$0xff] %vm602_vm10, %v601_v8 }
 0x130   : > { %v594_v1 = vrot.slane %v589_v59, 4  ;;  %v599_v3 = vsel %vm492_vm9, %v598_v60, %v581_v58 }
 0x131   : > { %605 = vst.msk [vmem:[#allocation2 + $0x10] sm:$0xff] %vm602_vm10, %v599_v3  ;;  %v597_v9 = vsel %vm492_vm9, %v589_v59, %v596_v7 }
 0x132   : > { %v595_v6 = vsel %vm492_vm9, %v594_v1, %v577_v63  ;;  %604 = vst.msk [vmem:[#allocation2 + $0x8] sm:$0xff] %vm602_vm10, %v597_v9 }
 0x133   : > { %603 = vst.msk [vmem:[#allocation2] sm:$0xff] %vm602_vm10, %v595_v6 }
 0x136   : > { %v831_v13 = vld [vmem:[#allocation2 + $0x18] sm:$0xff] }
 0x138   : > { %v830_v11 = vld [vmem:[#allocation2 + $0x10] sm:$0xff] }
 0x139   : > { %v829_v14 = vld [vmem:[#allocation2 + $0x8] sm:$0xff] }
 0x13a   : > { %v828_v10 = vld [vmem:[#allocation2] sm:$0xff]  ;;  %1476 = vmatpush.xpose.msk.msra.mxu3 %vm602_vm10, %v829_v14 }
 0x13b   : > { %1474 = vmatpush.xpose.msk.msra.mxu2 %vm602_vm10, %v828_v10 }
 0x13e   : > { %1480 = vmatpush.xpose.msk.msrb.mxu3 %vm602_vm10, %v831_v13 }
 0x13f   : > { %1478 = vmatpush.xpose.msk.msrb.mxu2 %vm602_vm10, %v830_v11 }
 0x1ab   : > { %v825_v16 = vpop.f32.mrf.mxu1 }
 0x1ac   : > { %v826_v17 = vadd.f32 %v1528_v15, %v825_v16 }
 0x1ae   : > { %846 = vrot.lane.b32.xlu1 %v826_v17, %s1581_s12  ;;  %843 = vrot.lane.b32.xlu0 %v826_v17, %s1582_s15  ;;  %v852_v21 = vrot.slane %v826_v17, 4  ;;  %s1588_s12 = smov 16  }
 0x1af   : > { %840 = vrot.lane.b32.xlu2 %v826_v17, %s1580_s28 }
 0x1b7   : > { %607 = vrot.lane.b32.xlu2 %v1703_v25, %s1585_s27 }
 0x209   : > { %v841_v18 = vpop.permute.xlu2 %840 }
 0x20a   : > { %v864_v20 = vrot.slane %v841_v18, 4 }
 0x220   : > { %v847_v22 = vpop.permute.xlu1 %846  ;;  %v844_v23 = vpop.permute.xlu0 %843 }
 0x221   : > { %v862_v24 = vrot.slane %v847_v22, 4  ;;  %v865_v26 = vsel %vm492_vm9, %v847_v22, %v864_v20  ;;  %v849_v27 = vrot.slane %v844_v23, 4  ;;  %v853_v28 = vsel %vm492_vm9, %v844_v23, %v852_v21 }
 0x222   : > { %v873_v29 = vperm.slane %v865_v26, %v1736_v4  ;;  %v861_v30 = vperm.slane %v853_v28, %v1736_v4 }
 0x223   : > { %v863_v31 = vsel %vm492_vm9, %v862_v24, %v841_v18  ;;  %v851_v32 = vsel %vm492_vm9, %v849_v27, %v826_v17  ;;  %v836_v27 = vld [vmem:[%s436_s30] sm:$0x1] }
 0x224   : > { %v869_v25 = vperm.slane %v863_v31, %v1736_v4  ;;  %v886_v33 = vrot.slane %v873_v29, 4  ;;  %v857_v34 = vperm.slane %v851_v32, %v1736_v4  ;;  %v888_v35 = vrot.slane %v861_v30, 4 }
 0x225   : > { %v837_v28 = vunpack.c.0.s8 %v836_v27 }
 0x226   : > { %v874_v36 = vrot.slane %v869_v25, 4  ;;  %v876_v37 = vrot.slane %v857_v34, 4  ;;  %v887_v38 = vsel %vm492_vm9, %v886_v33, %v861_v30  ;;  %v889_v39 = vsel %vm492_vm9, %v873_v29, %v888_v35 }
 0x227   : > { %v893_v40 = vperm.slane %v887_v38, %v1753_v19  ;;  %v897_v41 = vperm.slane %v889_v39, %v1753_v19  ;;  %v838_v29 = vcvt.s32.f32 %v837_v28  ;;  %v1586_v30 = vmov 0  }
 0x228   : > { %v875_v42 = vsel %vm492_vm9, %v874_v36, %v857_v34  ;;  %v877_v43 = vsel %vm492_vm9, %v869_v25, %v876_v37 }
 0x229   : > { %v881_v44 = vperm.slane %v875_v42, %v1753_v19  ;;  %v885_v45 = vperm.slane %v877_v43, %v1753_v19  ;;  %v902_v46 = vrot.slane %v893_v40, 4  ;;  %v904_v47 = vrot.slane %v897_v41, 4 }
 0x22a   : > { %vm1065_vm11 = vcmp.eq.f32.partialorder %v838_v29, 0.0 }
 0x22b   : > { %v898_v48 = vrot.slane %v881_v44, 4  ;;  %v900_v49 = vrot.slane %v885_v45, 4  ;;  %v905_v50 = vsel %vm492_vm9, 0.0, %v904_v47  ;;  %v917_v51 = vsel %vm492_vm9, %v904_v47, %v893_v40 }
 0x22c   : > { %v922_v52 = vrot.slane %v905_v50, 4  ;;  %v903_v54 = vsel %vm492_vm9, 0.0, %v902_v46  ;;  %v921_v56 = vperm.slane %v917_v51, %v1736_v4  ;;  %v1066_v31 = vsel %vm1065_vm11, 1, %v1586_v30 }
 0x22d   : > { %v901_v53 = vsel %vm492_vm9, 0.0, %v900_v49  ;;  %v906_v55 = vsel %vm492_vm9, %v900_v49, %v881_v44  ;;  %v899_v59 = vsel %vm492_vm9, 0.0, %v898_v48  ;;  %v1067_v32 = vperm.slane %v1066_v31, 0  ;;  %v608_v44 = vpop.permute.xlu2 %607 }
 0x22e   : > { %v911_v57 = vrot.slane %v901_v53, 4  ;;  %v923_v58 = vsel %vm492_vm9, %v922_v52, %v903_v54  ;;  %v910_v62 = vperm.slane %v906_v55, %v1736_v4  ;;  %v942_v5 = vrot.slane %v921_v56, 4 }
 0x22f   : > { %v927_v60 = vperm.slane %v923_v58, %v1736_v4  ;;  %vm1068_vm12 = vcmp.eq.s32.totalorder %v1067_v32, 1 }
 0x230   : > { %v912_v63 = vsel %vm492_vm9, %v911_v57, %v899_v59  ;;  %v930_v8 = vrot.slane %v910_v62, 4 }
 0x231   : > { %v916_v1 = vperm.slane %v912_v63, %v1736_v4  ;;  %v940_v3 = vrot.slane %v927_v60, 4  ;;  %v943_v11 = vsel %vm492_vm9, %v927_v60, %v942_v5 }
 0x232   : > { %v951_v18 = vperm.slane %v943_v11, %v1753_v19 }
 0x233   : > { %v928_v6 = vrot.slane %v916_v1, 4  ;;  %v941_v7 = vsel %vm492_vm9, %v940_v3, %v921_v56  ;;  %v931_v15 = vsel %vm492_vm9, %v916_v1, %v930_v8  ;;  %v621_v1 = vrot.slane %v608_v44, 4 }
 0x234   : > { %v947_v9 = vperm.slane %v941_v7, %v1753_v19  ;;  %v939_v21 = vperm.slane %v931_v15, %v1753_v19  ;;  %v956_v22 = vrot.slane %v951_v18, 4 }
 0x235   : > { %v929_v10 = vsel %vm492_vm9, %v928_v6, %v910_v62 }
 0x236   : > { %v935_v13 = vperm.slane %v929_v10, %v1753_v19  ;;  %v952_v14 = vrot.slane %v947_v9, 4  ;;  %v958_v23 = vrot.slane %v939_v21, 4  ;;  %v957_v24 = vsel %vm492_vm9, %v956_v22, %v939_v21 }
 0x238   : > { %v953_v16 = vsel %vm492_vm9, %v952_v14, %v935_v13  ;;  %v954_v17 = vrot.slane %v935_v13, 4  ;;  %v959_v26 = vsel %vm492_vm9, %v951_v18, %v958_v23 }
 0x239   : > { %1475 = vmatmul.msk.f32.vlgmr.msra.gmra.mxu2 %vm602_vm10, %v953_v16 }
 0x23a   : > { %v955_v20 = vsel %vm492_vm9, %v947_v9, %v954_v17 }
 0x23b   : > { %1477 = vmatmul.msk.f32.vlgmr.msra.gmra.mxu3 %vm602_vm10, %v955_v20 }
 0x241   : > { %1479 = vmatmul.msk.f32.vlgmr.msrb.gmra.mxu2 %vm602_vm10, %v957_v24 }
 0x243   : > { %1481 = vmatmul.msk.f32.vlgmr.msrb.gmra.mxu3 %vm602_vm10, %v959_v26 }
 0x2bc   : > { %v984_v25 = vpop.f32.mrf.mxu2 }
 0x2bd   : > { %v1069_v33 = vsel %vm1068_vm12, -1e+09, %v984_v25 }
 0x2be   : > { %v1010_v34 = vpop.f32.mrf.mxu3  ;;  %v1073_v35 = vsel %vm602_vm10, %v1069_v33, -inf }
 0x2bf   : > { %v1070_v36 = vsel %vm1068_vm12, -1e+09, %v1010_v34  ;;  %1074 = vmax.xlane.f32.xlu0 %v1073_v35 }
 0x2c0   : > { %v1076_v37 = vsel %vm602_vm10, %v1070_v36, -inf }
 0x2c1   : > { %1077 = vmax.xlane.f32.xlu2 %v1076_v37 }
 0x2c4   : > { %v1036_v38 = vpop.f32.mrf.mxu2 }
 0x2c5   : > { %v1071_v39 = vsel %vm1068_vm12, -1e+09, %v1036_v38 }
 0x2c6   : > { %v1062_v40 = vpop.f32.mrf.mxu3  ;;  %v1079_v43 = vsel %vm602_vm10, %v1071_v39, -inf }
 0x2c7   : > { %v1072_v41 = vsel %vm1068_vm12, -1e+09, %v1062_v40 }
 0x2c8   : > { %v1082_v42 = vsel %vm602_vm10, %v1072_v41, -inf }
 0x2c9   : > { %1083 = vmax.xlane.f32.xlu1 %v1082_v42  ;;  %1080 = vmax.xlane.f32.xlu2 %v1079_v43 }
 0x2d3   : > { %611 = vrot.lane.b32.xlu0 %v1745_v12, %s1585_s27 }
 0x2e1   : > { %613 = vrot.lane.b32.xlu2 %v1730_v61, %s1585_s27 }
 0x2e2   : > { %609 = vrot.lane.b32.xlu1 %v1733_v2, %s1585_s27 }
 0x332   : > { %v1075_v45 = vpop.xlane.xlu0 %1074 }
 0x333   : > { %v1085_v46 = vsub.f32 %v1069_v33, %v1075_v45 }
 0x334   : > { %v1078_v47 = vpop.xlane.xlu2 %1077 }
 0x335   : > { %v1089_v48 = vmul.f32 1.442695, %v1085_v46  ;;  %v1086_v55 = vsub.f32 %v1070_v36, %v1078_v47 }
 0x337   : > { %1538 = vpow2.f32 %v1089_v48  ;;  %v1091_v2 = vmul.f32 1.442695, %v1086_v55 }
 0x33c   : > { %v1084_v49 = vpop.xlane.xlu1 %1083  ;;  %v1081_v50 = vpop.xlane.xlu2 %1080 }
 0x33d   : > { %v1862_v51 = vpop.eup %1538  ;;  %v1088_v52 = vsub.f32 %v1072_v41, %v1084_v49  ;;  %v1087_v53 = vsub.f32 %v1071_v39, %v1081_v50 }
 0x33e   : > { %v1097_v12 = vsel %vm602_vm10, %v1862_v51, 0.0 }
 0x33f   : > { %v1095_v54 = vmul.f32 1.442695, %v1088_v52  ;;  %v1093_v61 = vmul.f32 1.442695, %v1087_v53  ;;  %1098 = vadd.xlane.f32.xlu0 %v1097_v12 }
 0x341   : > { %1540 = vpow2.f32 %v1095_v54 }
 0x342   : > { %1542 = vpow2.f32 %v1093_v61 }
 0x343   : > { %1544 = vpow2.f32 %v1091_v2 }
 0x344   : > { %v614_v5 = vpop.permute.xlu2 %613 }
 0x345   : > { %v612_v58 = vpop.permute.xlu0 %611  ;;  %v631_v9 = vrot.slane %v614_v5, 4 }
 0x346   : > { %v619_v62 = vrot.slane %v612_v58, 4  ;;  %v622_v6 = vsel %vm492_vm9, %v612_v58, %v621_v1 }
 0x347   : > { %v1866_v56 = vpop.eup %1540  ;;  %v630_v10 = vperm.slane %v622_v6, %v1736_v4 }
 0x348   : > { %v1868_v57 = vpop.eup %1542  ;;  %v1106_v59 = vsel %vm602_vm10, %v1866_v56, 0.0  ;;  %v620_v3 = vsel %vm492_vm9, %v619_v62, %v608_v44 }
 0x349   : > { %1107 = vadd.xlane.f32.xlu2 %v1106_v59  ;;  %v1103_v60 = vsel %vm602_vm10, %v1868_v57, 0.0  ;;  %v1874_v63 = vpop.eup %1544  ;;  %v626_v8 = vperm.slane %v620_v3, %v1736_v4  ;;  %v657_v18 = vrot.slane %v630_v10, 4 }
 0x34a   : > { %1104 = vadd.xlane.f32.xlu1 %v1103_v60  ;;  %v1100_v7 = vsel %vm602_vm10, %v1874_v63, 0.0 }
 0x34b   : > { %v645_v15 = vrot.slane %v626_v8, 4 }
 0x352   : > { %1101 = vadd.xlane.f32.xlu1 %v1100_v7 }
 0x354   : > { %v610_v11 = vpop.permute.xlu1 %609 }
 0x355   : > { %v632_v13 = vsel %vm492_vm9, %v631_v9, %v610_v11  ;;  %v633_v14 = vrot.slane %v610_v11, 4 }
 0x356   : > { %v638_v16 = vperm.slane %v632_v13, %v1736_v4 }
 0x357   : > { %v634_v17 = vsel %vm492_vm9, %v614_v5, %v633_v14 }
 0x358   : > { %v642_v20 = vperm.slane %v634_v17, %v1736_v4  ;;  %v643_v21 = vrot.slane %v638_v16, 4  ;;  %v646_v22 = vsel %vm492_vm9, %v638_v16, %v645_v15 }
 0x359   : > { %v654_v23 = vperm.slane %v646_v22, %v1753_v19 }
 0x35a   : > { %v644_v24 = vsel %vm492_vm9, %v643_v21, %v626_v8  ;;  %v655_v26 = vrot.slane %v642_v20, 4  ;;  %v658_v27 = vsel %vm492_vm9, %v642_v20, %v657_v18 }
 0x35b   : > { %v650_v28 = vperm.slane %v644_v24, %v1753_v19  ;;  %v666_v29 = vperm.slane %v658_v27, %v1753_v19  ;;  %v669_v30 = vrot.slane %v654_v23, 4 }
 0x35c   : > { %v656_v31 = vsel %vm492_vm9, %v655_v26, %v630_v10 }
 0x35d   : > { %v662_v32 = vperm.slane %v656_v31, %v1753_v19  ;;  %v667_v25 = vrot.slane %v650_v28, 4  ;;  %v670_v33 = vsel %vm492_vm9, 0.0, %v669_v30  ;;  %v673_v34 = vrot.slane %v666_v29, 4 }
 0x35e   : > { %v675_v35 = vsel %vm492_vm9, %v669_v30, %v650_v28  ;;  %v680_v36 = vrot.slane %v670_v33, 4 }
 0x35f   : > { %v668_v37 = vsel %vm492_vm9, 0.0, %v667_v25  ;;  %v671_v38 = vrot.slane %v662_v32, 4  ;;  %v674_v39 = vsel %vm492_vm9, 0.0, %v673_v34  ;;  %v679_v40 = vperm.slane %v675_v35, %v1736_v4 }
 0x360   : > { %v681_v41 = vsel %vm492_vm9, %v680_v36, %v668_v37  ;;  %v686_v42 = vsel %vm492_vm9, %v673_v34, %v662_v32  ;;  %v691_v43 = vrot.slane %v674_v39, 4 }
 0x361   : > { %v672_v44 = vsel %vm492_vm9, 0.0, %v671_v38  ;;  %v685_v45 = vperm.slane %v681_v41, %v1736_v4  ;;  %v690_v46 = vperm.slane %v686_v42, %v1736_v4  ;;  %v699_v47 = vrot.slane %v679_v40, 4 }
 0x362   : > { %v692_v48 = vsel %vm492_vm9, %v691_v43, %v672_v44 }
 0x363   : > { %v696_v49 = vperm.slane %v692_v48, %v1736_v4  ;;  %v697_v50 = vrot.slane %v685_v45, 4  ;;  %v700_v52 = vsel %vm492_vm9, %v685_v45, %v699_v47  ;;  %v711_v53 = vrot.slane %v690_v46, 4 }
 0x364   : > { %v708_v12 = vperm.slane %v700_v52, %v1753_v19 }
 0x365   : > { %v698_v54 = vsel %vm492_vm9, %v697_v50, %v679_v40  ;;  %v709_v61 = vrot.slane %v696_v49, 4  ;;  %v712_v55 = vsel %vm492_vm9, %v696_v49, %v711_v53 }
 0x366   : > { %v704_v2 = vperm.slane %v698_v54, %v1753_v19  ;;  %v720_v58 = vperm.slane %v712_v55, %v1753_v19  ;;  %v727_v59 = vrot.slane %v708_v12, 4 }
 0x367   : > { %v710_v60 = vsel %vm492_vm9, %v709_v61, %v690_v46 }
 0x368   : > { %v716_v62 = vperm.slane %v710_v60, %v1753_v19  ;;  %v723_v1 = vrot.slane %v704_v2, 4  ;;  %v725_v3 = vrot.slane %v720_v58, 4  ;;  %v728_v5 = vsel %vm492_vm9, %v720_v58, %v727_v59 }
 0x369   : > { %732 = vst.msk [vmem:[#allocation3 + $0x18] sm:$0xff] %vm602_vm10, %v728_v5 }
 0x36a   : > { %v721_v6 = vrot.slane %v716_v62, 4  ;;  %v724_v7 = vsel %vm492_vm9, %v716_v62, %v723_v1  ;;  %v726_v8 = vsel %vm492_vm9, %v725_v3, %v708_v12 }
 0x36b   : > { %730 = vst.msk [vmem:[#allocation3 + $0x8] sm:$0xff] %vm602_vm10, %v724_v7 }
 0x36c   : > { %v722_v9 = vsel %vm492_vm9, %v721_v6, %v704_v2  ;;  %731 = vst.msk [vmem:[#allocation3 + $0x10] sm:$0xff] %vm602_vm10, %v726_v8 }
 0x36d   : > { %729 = vst.msk [vmem:[#allocation3] sm:$0xff] %vm602_vm10, %v722_v9 }
 0x370   : > { %v835_v10 = vld [vmem:[#allocation3 + $0x18] sm:$0xff] }
 0x371   : > { %1204 = vmatpush.msra.mxu3 %v835_v10 }
 0x372   : > { %v833_v11 = vld [vmem:[#allocation3 + $0x8] sm:$0xff] }
 0x373   : > { %1158 = vmatpush.msrb.mxu1 %v833_v11  ;;  %v834_v13 = vld [vmem:[#allocation3 + $0x10] sm:$0xff] }
 0x374   : > { %1181 = vmatpush.msra.mxu2 %v834_v13  ;;  %v832_v14 = vld [vmem:[#allocation3] sm:$0xff] }
 0x375   : > { %1135 = vmatpush.msrb.mxu0 %v832_v14 }
 0x3b2   : > { %v1099_v15 = vpop.xlane.xlu0 %1098 }
 0x3b3   : > { %1546 = vrcp.f32 %v1099_v15 }
 0x3b9   : > { %v1547_v16 = vpop.eup %1546 }
 0x3ba   : > { %v1113_v17 = vmul.f32 %v1547_v16, %v1862_v51 }
 0x3bc   : > { %1482 = vmatmul.msk.f32.vlgmr.msrb.gmra.mxu0 %vm602_vm10, %v1113_v17  ;;  %v1108_v18 = vpop.xlane.xlu2 %1107 }
 0x3bd   : > { %v1105_v20 = vpop.xlane.xlu1 %1104  ;;  %1548 = vrcp.f32 %v1108_v18 }
 0x3be   : > { %1550 = vrcp.f32 %v1105_v20 }
 0x3c3   : > { %v1549_v21 = vpop.eup %1548 }
 0x3c4   : > { %v1551_v22 = vpop.eup %1550  ;;  %v1116_v23 = vmul.f32 %v1549_v21, %v1866_v56 }
 0x3c5   : > { %v1115_v24 = vmul.f32 %v1551_v22, %v1868_v57  ;;  %v1102_v26 = vpop.xlane.xlu1 %1101 }
 0x3c6   : > { %1552 = vrcp.f32 %v1102_v26  ;;  %1485 = vmatmul.msk.f32.vlgmr.msra.gmra.mxu3 %vm602_vm10, %v1116_v23 }
 0x3c7   : > { %1484 = vmatmul.msk.f32.vlgmr.msra.gmra.mxu2 %vm602_vm10, %v1115_v24 }
 0x3cc   : > { %v1553_v27 = vpop.eup %1552 }
 0x3cd   : > { %v1114_v51 = vmul.f32 %v1553_v27, %v1874_v63 }
 0x3cf   : > { %1483 = vmatmul.msk.f32.vlgmr.msrb.gmra.mxu1 %vm602_vm10, %v1114_v51 }
 0x439   : > { %v1137_v28 = vpop.f32.mrf.mxu0 }
 0x43a   : > { %v1211_v29 = vrot.slane %v1137_v28, 4 }
 0x449   : > { %v1206_v30 = vpop.f32.mrf.mxu3 }
 0x44a   : > { %v1183_v31 = vpop.f32.mrf.mxu2  ;;  %v1221_v32 = vrot.slane %v1206_v30, 4 }
 0x44b   : > { %v1209_v25 = vrot.slane %v1183_v31, 4  ;;  %v1212_v56 = vsel %vm492_vm9, %v1183_v31, %v1211_v29 }
 0x44c   : > { %v1220_v57 = vperm.slane %v1212_v56, %v1736_v4  ;;  %v1160_v33 = vpop.f32.mrf.mxu1  ;;  %v1336_v56 = vld [vmem:[%s2010_s8] sm:$0xff] }
 0x44d   : > { %v1210_v34 = vsel %vm492_vm9, %v1209_v25, %v1137_v28  ;;  %v1222_v35 = vsel %vm492_vm9, %v1221_v32, %v1160_v33  ;;  %v1223_v36 = vrot.slane %v1160_v33, 4  ;;  %v1338_v32 = vld [vmem:[%s2010_s8 + $0x10] sm:$0xff]  ;;  %v1337_v25 = vld [vmem:[%s2010_s8 + $0x8] sm:$0xff] }
 0x44e   : > { %v1216_v63 = vperm.slane %v1210_v34, %v1736_v4  ;;  %v1228_v37 = vperm.slane %v1222_v35, %v1736_v4  ;;  %v1247_v40 = vrot.slane %v1220_v57, 4 }
 0x44f   : > { %v1224_v38 = vsel %vm492_vm9, %v1206_v30, %v1223_v36 }
 0x450   : > { %v1235_v39 = vrot.slane %v1216_v63, 4  ;;  %v1232_v41 = vperm.slane %v1224_v38, %v1736_v4  ;;  %v1233_v42 = vrot.slane %v1228_v37, 4 }
 0x452   : > { %v1234_v43 = vsel %vm492_vm9, %v1233_v42, %v1216_v63  ;;  %v1236_v44 = vsel %vm492_vm9, %v1228_v37, %v1235_v39  ;;  %v1245_v45 = vrot.slane %v1232_v41, 4  ;;  %v1248_v46 = vsel %vm492_vm9, %v1232_v41, %v1247_v40  ;;  %v1529_v37 = vld [vmem:[%s2011_s9] ss:$0 sm:$0xff] }
 0x453   : > { %v1240_v47 = vperm.slane %v1234_v43, %v1753_v19  ;;  %v1244_v48 = vperm.slane %v1236_v44, %v1753_v19  ;;  %v1256_v49 = vperm.slane %v1248_v46, %v1753_v19 }
 0x454   : > { %v1246_v50 = vsel %vm492_vm9, %v1245_v45, %v1220_v57 }
 0x455   : > { %v1252_v52 = vperm.slane %v1246_v50, %v1753_v19  ;;  %v1257_v53 = vrot.slane %v1240_v47, 4  ;;  %v1259_v12 = vrot.slane %v1244_v48, 4  ;;  %v1263_v54 = vrot.slane %v1256_v49, 4 }
 0x457   : > { %v1260_v61 = vsel %vm492_vm9, 0.0, %v1259_v12  ;;  %v1261_v55 = vrot.slane %v1252_v52, 4  ;;  %v1264_v2 = vsel %vm492_vm9, 0.0, %v1263_v54  ;;  %v1265_v58 = vsel %vm492_vm9, %v1259_v12, %v1240_v47 }
 0x458   : > { %v1270_v59 = vrot.slane %v1260_v61, 4  ;;  %v1281_v60 = vrot.slane %v1264_v2, 4  ;;  %v1276_v62 = vsel %vm492_vm9, %v1263_v54, %v1252_v52  ;;  %v1258_v1 = vsel %vm492_vm9, 0.0, %v1257_v53 }
 0x459   : > { %v1269_v3 = vperm.slane %v1265_v58, %v1736_v4  ;;  %v1262_v5 = vsel %vm492_vm9, 0.0, %v1261_v55  ;;  %v1280_v6 = vperm.slane %v1276_v62, %v1736_v4 }
 0x45a   : > { %v1271_v7 = vsel %vm492_vm9, %v1270_v59, %v1258_v1  ;;  %v1282_v8 = vsel %vm492_vm9, %v1281_v60, %v1262_v5 }
 0x45b   : > { %v1275_v9 = vperm.slane %v1271_v7, %v1736_v4  ;;  %v1286_v10 = vperm.slane %v1282_v8, %v1736_v4  ;;  %v1289_v11 = vrot.slane %v1269_v3, 4  ;;  %v1301_v13 = vrot.slane %v1280_v6, 4 }
 0x45d   : > { %v1290_v14 = vsel %vm492_vm9, %v1275_v9, %v1289_v11  ;;  %v1302_v15 = vsel %vm492_vm9, %v1286_v10, %v1301_v13  ;;  %v1287_v16 = vrot.slane %v1275_v9, 4  ;;  %v1299_v17 = vrot.slane %v1286_v10, 4 }
 0x45e   : > { %v1298_v18 = vperm.slane %v1290_v14, %v1753_v19  ;;  %v1310_v20 = vperm.slane %v1302_v15, %v1753_v19 }
 0x45f   : > { %v1288_v21 = vsel %vm492_vm9, %v1287_v16, %v1269_v3  ;;  %v1300_v22 = vsel %vm492_vm9, %v1299_v17, %v1280_v6 }
 0x460   : > { %v1317_v23 = vrot.slane %v1298_v18, 4  ;;  %v1315_v24 = vrot.slane %v1310_v20, 4  ;;  %v1294_v4 = vperm.slane %v1288_v21, %v1753_v19  ;;  %v1306_v26 = vperm.slane %v1300_v22, %v1753_v19  ;;  %v1339_v19 = vld [vmem:[%s2010_s8 + $0x18] sm:$0xff] }
 0x461   : > { %1359 = vmatpush.msra.mxu0 %v1339_v19 }
 0x462   : > { %v1318_v27 = vsel %vm492_vm9, %v1310_v20, %v1317_v23  ;;  %v1316_v51 = vsel %vm492_vm9, %v1315_v24, %v1298_v18  ;;  %v1311_v28 = vrot.slane %v1306_v26, 4  ;;  %v1313_v29 = vrot.slane %v1294_v4, 4 }
 0x463   : > { %1328 = vrot.lane.b32.xlu1 %v1318_v27, %s1587_s17  ;;  %1324 = vrot.lane.b32.xlu0 %v1316_v51, %s1588_s12  ;;  %s443_s17 = scalar_lea.vmem %s2013_s11, %s1671_s21 }
 0x464   : > { %v1314_v30 = vsel %vm492_vm9, %v1306_v26, %v1313_v29  ;;  %v1312_v31 = vsel %vm492_vm9, %v1311_v28, %v1294_v4  ;;  %1360 = vmatpush.msra.mxu0 %v1338_v32 }
 0x465   : > { %1320 = vrot.lane.b32.xlu2 %v1314_v30, %s1589_s13 }
 0x466   : > { %1361 = vmatpush.msra.mxu0 %v1337_v25 }
 0x468   : > { %1362 = vmatpush.msra.mxu0 %v1336_v56 }
 0x4bf   : > { %v1321_v57 = vpop.permute.xlu2 %1320 }
 0x4c0   : > { %v1331_v33 = vsel %vm602_vm10, %v1312_v31, %v1321_v57 }
 0x4d5   : > { %v1329_v34 = vpop.permute.xlu1 %1328  ;;  %v1325_v35 = vpop.permute.xlu0 %1324 }
 0x4d6   : > { %v1333_v36 = vsel %vm1332_vm13, %v1331_v33, %v1325_v35 }
 0x4d7   : > { %v1335_v63 = vsel %vm1334_vm14, %v1333_v36, %v1329_v34 }
 0x4d8   : > { %1486 = vmatmul.msk.f32.vlgmr.msra.gmra.mxu0 %vm457_vm0, %v1335_v63 }
 0x555   : > { %v1364_v38 = vpop.f32.mrf.mxu0 }
 0x556   : > { %v1365_v39 = vadd.f32 %v1529_v37, %v1364_v38 }
 0x558   : > { %v1367_v40 = vadd.f32 %v1365_v39, %v1677_v0 }
 0x55a   : > { %1368 = vst.msk [vmem:[%s443_s17] sm:$0xff] %vm457_vm0, %v1367_v40 }
 0x55b PF: > { %s21_s19 = sadd.s32 1, %s1576_s19   ;;  %s2014_s17 = smov %s1572_s18 }
 0x55c   : > { %p18_p5 = scmp.ge.s32.totalorder %s21_s19, 4   ;;  %s2015_s18 = smov %s2017_s20 }
 0x55e   :  { %20 = sbr.rel (!%p18_p5) target bundleno = 2 (0x2), region = 104 }

</bundles_post_ra>
